<compile_context>
chip_gen: v7x
topology: tpu7x:2x2x1
jax: 0.10.0
libtpu: 0.0.40
codegen_flags: <defaults>
</compile_context>

<pallas_src>
import functools

import jax
import jax.numpy as jnp
from jax.experimental import pallas as pl
from jax.experimental.pallas import tpu as pltpu

EPS = 1e-5          # InstanceNorm3d default eps (affine=False, no running stats)
NEG_SLOPE = 0.2     # LeakyReLU(0.2)


def _fused_eval_kernel(x_ref, mrow_ref, mmat_ref, w1_ref, w2_ref, o_ref,
                       slab1_ref, rpad_ref, slab2_ref, *,
                       xstarts, rstarts, sp, rext, cin_p, cout_p, inv_count):
    """Fused Conv1+IN+LReLU -> Conv2+IN+LReLU + residual for one sample.

    Layouts (channels on sublanes, flattened padded spatial on lanes):
      x_ref     : (1, Cin_p, Sext)    bf16 zero-extended, zero-padded, flat input
      mrow_ref  : (1, Sp)             f32 1.0 at interior (valid) padded positions
      mmat_ref  : (Sp, 128)           f32 same mask, lane-dense RHS for MXU reductions
      w1_ref    : (Cout_p, 27*Cin_p)  bf16 stacked-K conv1 weights
      w2_ref    : (Cout_p, 27*Cout_p) bf16 stacked-K conv2 weights
      o_ref     : (1, Cout_p, Sp)     f32 output at every padded position
      slab1_ref : (27*Cin_p, Sp)      bf16 scratch: shifted-activation slab for conv1
      rpad_ref  : (Cout_p, Sp+2*rext) bf16 scratch: zero-extended intermediate `res`
      slab2_ref : (27*Cout_p, Sp)     bf16 scratch: shifted-activation slab for conv2
    """
    xv = x_ref[0]              # (Cin_p, Sext) bf16
    mrow = mrow_ref[...]       # (1, Sp) f32
    mmat = mmat_ref[...]       # (Sp, 128) f32

    # ---- Conv1: assemble the stacked-K slab (27 shifted row-block copies), then ONE
    #      bf16 matmul with f32 accumulation on the MXU.
    for t, s0 in enumerate(xstarts):
        slab1_ref[t * cin_p:(t + 1) * cin_p, :] = xv[:, s0:s0 + sp]
    acc = jnp.dot(w1_ref[...], slab1_ref[...],
                  preferred_element_type=jnp.float32)            # (Cout_p, Sp) f32
    # (conv bias intentionally omitted — exactly cancelled by the mean subtraction)

    # ---- InstanceNorm stats on the MXU (masked single-pass) + LeakyReLU(0.2).
    msum = jnp.dot(acc, mmat, preferred_element_type=jnp.float32)[:, 0:1]
    ssum = jnp.dot(acc * acc, mmat, preferred_element_type=jnp.float32)[:, 0:1]
    mean = msum * inv_count
    # TODO(synk): switch to shifted / two-pass variance together with spatial tiling
    # if large-magnitude activations make E[x^2]-E[x]^2 cancellation a problem.
    var = jnp.maximum(ssum * inv_count - mean * mean, 0.0)
    yn = (acc - mean) * jax.lax.rsqrt(var + EPS)
    res = jnp.where(yn >= 0, yn, NEG_SLOPE * yn) * mrow          # zero at padded border

    # ---- Stage `res` (bf16) into the zero-extended scratch for conv2's taps.  Only the
    #      two rext-wide border strips need zeroing; the interior is fully overwritten
    #      every step (re-zeroed per step so core-sharding of the grid stays correct).
    rpad_ref[:, :rext] = jnp.zeros((cout_p, rext), rpad_ref.dtype)
    rpad_ref[:, rext + sp:] = jnp.zeros((cout_p, rext), rpad_ref.dtype)
    rpad_ref[:, rext:rext + sp] = res.astype(rpad_ref.dtype)     # 128-aligned store
    rv = rpad_ref[...]                                           # (Cout_p, Sp+2*rext)

    # ---- Conv2: second stacked-K slab + one bf16 matmul.
    for t, s0 in enumerate(rstarts):
        slab2_ref[t * cout_p:(t + 1) * cout_p, :] = rv[:, s0:s0 + sp]
    acc2 = jnp.dot(w2_ref[...], slab2_ref[...],
                   preferred_element_type=jnp.float32)

    msum2 = jnp.dot(acc2, mmat, preferred_element_type=jnp.float32)[:, 0:1]
    ssum2 = jnp.dot(acc2 * acc2, mmat, preferred_element_type=jnp.float32)[:, 0:1]
    mean2 = msum2 * inv_count
    var2 = jnp.maximum(ssum2 * inv_count - mean2 * mean2, 0.0)
    zn = (acc2 - mean2) * jax.lax.rsqrt(var2 + EPS)
    act2 = jnp.where(zn >= 0, zn, NEG_SLOPE * zn)

    o_ref[0] = (act2 + res).astype(o_ref.dtype)


def evaluation_forward(x_ncdhw, params):
    """Matches evaluation.forward; input/output are PyTorch NCDHW float32."""
    n, cin, d, h, w = x_ncdhw.shape
    cout = params["w1"].shape[0]

    dp, hp, wp = d + 2, h + 2, w + 2
    plane = hp * wp
    sp = dp * plane
    c0 = plane + wp + 1                          # max |flat offset| of a 3x3x3 tap

    # Channel padding to sublane multiples keeps every slab row-block store 8-aligned;
    # the zero channels are inert through conv / IN / LeakyReLU and are cropped at the end.
    cin_p = -(-cin // 8) * 8
    cout_p = -(-cout // 8) * 8

    # Flat zero-extension realised as extra (zero) D planes so the conv zero-padding,
    # the flat extension AND the channel padding come from a single jnp.pad.
    epad = -(-c0 // plane)                       # == 2 for any h, w >= 1
    ext = epad * plane
    sext = sp + 2 * ext
    xpad = jnp.pad(x_ncdhw.astype(jnp.bfloat16),
                   ((0, 0), (0, cin_p - cin),
                    (1 + epad, 1 + epad), (1, 1), (1, 1)))
    x_ext = xpad.reshape(n, cin_p, sext)

    # Interior-voxel mask: lane-row form (masks `res`) and lane-dense (Sp, 128) matrix
    # form so the InstanceNorm reductions run on the MXU instead of the XLU.
    mask3d = jnp.pad(jnp.ones((d, h, w), jnp.float32), ((1, 1), (1, 1), (1, 1)))
    mask_row = mask3d.reshape(1, sp)
    mask_mat = jnp.broadcast_to(mask3d.reshape(sp, 1), (sp, 128))

    # Stacked-K weight slabs; column order (kd, kh, kw, cin).  Conv biases are not
    # passed: they are exactly cancelled by InstanceNorm's mean subtraction.
    w1p = jnp.pad(params["w1"], ((0, cout_p - cout), (0, cin_p - cin),
                                 (0, 0), (0, 0), (0, 0)))
    w2p = jnp.pad(params["w2"], ((0, cout_p - cout), (0, cout_p - cout),
                                 (0, 0), (0, 0), (0, 0)))
    w1s = jnp.transpose(w1p, (0, 2, 3, 4, 1)).reshape(cout_p, 27 * cin_p).astype(jnp.bfloat16)
    w2s = jnp.transpose(w2p, (0, 2, 3, 4, 1)).reshape(cout_p, 27 * cout_p).astype(jnp.bfloat16)

    deltas = [(kd - 1) * plane + (kh - 1) * wp + (kw - 1)
              for kd in range(3) for kh in range(3) for kw in range(3)]
    xstarts = tuple(ext + dlt for dlt in deltas)

    rext = -(-c0 // 128) * 128                   # lane-aligned extension for `res` scratch
    rstarts = tuple(rext + dlt for dlt in deltas)

    kernel = functools.partial(
        _fused_eval_kernel, xstarts=xstarts, rstarts=rstarts, sp=sp, rext=rext,
        cin_p=cin_p, cout_p=cout_p, inv_count=1.0 / float(d * h * w))

    # Explicit VMEM budget sized from the live set (double-buffered blocks + scratches
    # + headroom for compiler temporaries), instead of the scoped default.
    est = (2 * cin_p * sext * 2 + 2 * cout_p * sp * 4
           + 2 * (8 * sp * 4 + sp * 128 * 4)
           + 2 * 27 * (cout_p * cin_p + cout_p * cout_p) * 2
           + 27 * (cin_p + cout_p) * sp * 2
           + cout_p * (sp + 2 * rext) * 2
           + 10 * cout_p * sp * 4)
    vmem_limit = int(min(max(2 * est, 32 * 1024 * 1024), 64 * 1024 * 1024))

    # NOTE: mask/weight inputs have constant index_maps (fetched once); at these sizes
    # their double-buffering costs <1.5 MiB, so pl.Buffered(1) is left as a TODO above.
    out_flat = pl.pallas_call(
        kernel,
        out_shape=jax.ShapeDtypeStruct((n, cout_p, sp), jnp.float32),
        grid_spec=pltpu.PrefetchScalarGridSpec(
            num_scalar_prefetch=0,
            grid=(n,),                                              # one sample per step
            in_specs=[
                pl.BlockSpec((1, cin_p, sext), lambda i: (i, 0, 0)),   # per-sample input
                pl.BlockSpec((1, sp), lambda i: (0, 0)),               # mask row
                pl.BlockSpec((sp, 128), lambda i: (0, 0)),             # mask matrix (MXU)
                pl.BlockSpec((cout_p, 27 * cin_p), lambda i: (0, 0)),  # conv1 weight slab
                pl.BlockSpec((cout_p, 27 * cout_p), lambda i: (0, 0)), # conv2 weight slab
            ],
            out_specs=pl.BlockSpec((1, cout_p, sp), lambda i: (i, 0, 0)),
            scratch_shapes=[
                pltpu.VMEM((27 * cin_p, sp), jnp.bfloat16),            # conv1 slab
                pltpu.VMEM((cout_p, sp + 2 * rext), jnp.bfloat16),     # zero-extended res
                pltpu.VMEM((27 * cout_p, sp), jnp.bfloat16),           # conv2 slab
            ],
        ),
        compiler_params=pltpu.CompilerParams(
            dimension_semantics=("parallel",),
            vmem_limit_bytes=vmem_limit,
        ),
    )(x_ext, mask_row, mask_mat, w1s, w2s)

    out = out_flat.reshape(n, cout_p, dp, hp, wp)
    # TODO(synk): fuse this interior crop into the consumer (it is a strided HBM copy
    # of the whole output) when this block is embedded in a larger network.
    return out[:, :cout, 1:-1, 1:-1, 1:-1]


def init_params(key, in_channels, out_channels):
    """Deterministic synthetic parameters with PyTorch Conv3d weight shapes."""
    k1, k2, k3, k4 = jax.random.split(key, 4)
    fan1 = in_channels * 27
    fan2 = out_channels * 27
    w1 = jax.random.normal(k1, (out_channels, in_channels, 3, 3, 3), jnp.float32) / jnp.sqrt(fan1)
    b1 = jax.random.normal(k2, (out_channels,), jnp.float32) * 0.01
    w2 = jax.random.normal(k3, (out_channels, out_channels, 3, 3, 3), jnp.float32) / jnp.sqrt(fan2)
    b2 = jax.random.normal(k4, (out_channels,), jnp.float32) * 0.01
    return {"w1": w1, "b1": b1, "w2": w2, "b2": b2}


def _reference_forward(x, params, conv_dtype=jnp.float32):
    """Pure-JAX reference of the PyTorch module.

    conv_dtype=jnp.bfloat16 mirrors the kernel's deliberate precision choice
    (bf16 conv operands, f32 accumulation / norm / residual).
    """
    def conv(inp, wgt, b):
        dn = jax.lax.conv_dimension_numbers(inp.shape, wgt.shape,
                                            ("NCDHW", "OIDHW", "NCDHW"))
        y = jax.lax.conv_general_dilated(inp.astype(conv_dtype), wgt.astype(conv_dtype),
                                         (1, 1, 1), ((1, 1), (1, 1), (1, 1)),
                                         dimension_numbers=dn,
                                         preferred_element_type=jnp.float32,
                                         precision=jax.lax.Precision.HIGHEST)
        return y + b.reshape(1, -1, 1, 1, 1)

    def inorm_lrelu(y):
        m = jnp.mean(y, axis=(2, 3, 4), keepdims=True)
        v = jnp.mean((y - m) ** 2, axis=(2, 3, 4), keepdims=True)
        yn = (y - m) * jax.lax.rsqrt(v + EPS)
        return jnp.where(yn >= 0, yn, NEG_SLOPE * yn)

    res = inorm_lrelu(conv(x, params["w1"], params["b1"]))
    act2 = inorm_lrelu(conv(res, params["w2"], params["b2"]))
    return act2 + res


if __name__ == "__main__":
    key = jax.random.PRNGKey(0)
    kx, kp = jax.random.split(key)

    N, Cin, Cout, D, H, W = 2, 4, 8, 8, 8, 8
    x = jax.random.normal(kx, (N, Cin, D, H, W), jnp.float32)
    params = init_params(kp, Cin, Cout)

    fwd = jax.jit(evaluation_forward)
    out = jax.block_until_ready(fwd(x, params))

    assert out.shape == (N, Cout, D, H, W), out.shape
    assert bool(jnp.all(jnp.isfinite(out)))

    # Matched-precision reference (bf16 conv operands, f32 accumulation/norm): tight check.
    ref_bf16 = _reference_forward(x, params, conv_dtype=jnp.bfloat16)
    err_bf16 = float(jnp.max(jnp.abs(out - ref_bf16)))
    assert bool(jnp.allclose(out, ref_bf16, rtol=1e-2, atol=1e-2)), err_bf16

    # Full-f32 reference: loose sanity check (bf16 operands are a deliberate trade-off).
    ref_f32 = _reference_forward(x, params, conv_dtype=jnp.float32)
    err_f32 = float(jnp.max(jnp.abs(out - ref_f32)))
    assert bool(jnp.allclose(out, ref_f32, rtol=5e-2, atol=5e-2)), err_f32

    print("KERNEL_OK")
</pallas_src>

<mosaic_0001>
module attributes {stable_mosaic.version = 11 : i64} {
  func.func @_fused_eval_kernel(%arg0: i32, %arg1: memref<1x8x1400xbf16, #tpu.memory_space<vmem>>, %arg2: memref<1x1000xf32, #tpu.memory_space<vmem>>, %arg3: memref<1000x128xf32, #tpu.memory_space<vmem>>, %arg4: memref<8x216xbf16, #tpu.memory_space<vmem>>, %arg5: memref<8x216xbf16, #tpu.memory_space<vmem>>, %arg6: memref<1x8x1000xf32, #tpu.memory_space<vmem>>, %arg7: memref<216x1000xbf16, #tpu.memory_space<vmem>>, %arg8: memref<8x1256xbf16, #tpu.memory_space<vmem>>, %arg9: memref<216x1000xbf16, #tpu.memory_space<vmem>>) attributes {dimension_semantics = [#tpu.dimension_semantics<parallel>], iteration_bounds = array<i64: 2>, scalar_prefetch = 0 : i64, scratch_operands = 3 : i64, tpu.core_type = #tpu.core_type<tc>, window_params = [{transform_indices = @transform_0, window_bounds = array<i64: 1, 8, 1400>}, {pipeline_mode = #tpu.pipeline_mode<synchronous>, transform_indices = @transform_1, window_bounds = array<i64: 1, 1000>}, {pipeline_mode = #tpu.pipeline_mode<synchronous>, transform_indices = @transform_2, window_bounds = array<i64: 1000, 128>}, {pipeline_mode = #tpu.pipeline_mode<synchronous>, transform_indices = @transform_3, window_bounds = array<i64: 8, 216>}, {pipeline_mode = #tpu.pipeline_mode<synchronous>, transform_indices = @transform_4, window_bounds = array<i64: 8, 216>}, {transform_indices = @transform_5, window_bounds = array<i64: 1, 8, 1000>}]} {
    %c0 = arith.constant 0 : index
    %c0_0 = arith.constant 0 : index
    %c0_1 = arith.constant 0 : index
    %0 = vector.load %arg1[%c0, %c0_0, %c0_1] : memref<1x8x1400xbf16, #tpu.memory_space<vmem>>, vector<1x8x1400xbf16>
    %1 = vector.shape_cast %0 : vector<1x8x1400xbf16> to vector<8x1400xbf16>
    %c0_2 = arith.constant 0 : index
    %c0_3 = arith.constant 0 : index
    %2 = vector.load %arg2[%c0_2, %c0_3] : memref<1x1000xf32, #tpu.memory_space<vmem>>, vector<1x1000xf32>
    %c0_4 = arith.constant 0 : index
    %c0_5 = arith.constant 0 : index
    %3 = vector.load %arg3[%c0_4, %c0_5] : memref<1000x128xf32, #tpu.memory_space<vmem>>, vector<1000x128xf32>
    %4 = vector.extract_strided_slice %1 {offsets = [0, 89], sizes = [8, 1000], strides = [1, 1]} : vector<8x1400xbf16> to vector<8x1000xbf16>
    %c0_6 = arith.constant 0 : index
    %c0_7 = arith.constant 0 : index
    %5 = vector.load %arg7[%c0_6, %c0_7] : memref<216x1000xbf16, #tpu.memory_space<vmem>>, vector<8x1000xbf16>
    tpu.vector_store %arg7[%c0_6, %c0_7], %4 {strides = array<i32>} : memref<216x1000xbf16, #tpu.memory_space<vmem>>, vector<8x1000xbf16>,
    %6 = vector.extract_strided_slice %1 {offsets = [0, 90], sizes = [8, 1000], strides = [1, 1]} : vector<8x1400xbf16> to vector<8x1000xbf16>
    %c8 = arith.constant 8 : index
    %c0_8 = arith.constant 0 : index
    %7 = vector.load %arg7[%c8, %c0_8] : memref<216x1000xbf16, #tpu.memory_space<vmem>>, vector<8x1000xbf16>
    tpu.vector_store %arg7[%c8, %c0_8], %6 {strides = array<i32>} : memref<216x1000xbf16, #tpu.memory_space<vmem>>, vector<8x1000xbf16>,
    %8 = vector.extract_strided_slice %1 {offsets = [0, 91], sizes = [8, 1000], strides = [1, 1]} : vector<8x1400xbf16> to vector<8x1000xbf16>
    %c16 = arith.constant 16 : index
    %c0_9 = arith.constant 0 : index
    %9 = vector.load %arg7[%c16, %c0_9] : memref<216x1000xbf16, #tpu.memory_space<vmem>>, vector<8x1000xbf16>
    tpu.vector_store %arg7[%c16, %c0_9], %8 {strides = array<i32>} : memref<216x1000xbf16, #tpu.memory_space<vmem>>, vector<8x1000xbf16>,
    %10 = vector.extract_strided_slice %1 {offsets = [0, 99], sizes = [8, 1000], strides = [1, 1]} : vector<8x1400xbf16> to vector<8x1000xbf16>
    %c24 = arith.constant 24 : index
    %c0_10 = arith.constant 0 : index
    %11 = vector.load %arg7[%c24, %c0_10] : memref<216x1000xbf16, #tpu.memory_space<vmem>>, vector<8x1000xbf16>
    tpu.vector_store %arg7[%c24, %c0_10], %10 {strides = array<i32>} : memref<216x1000xbf16, #tpu.memory_space<vmem>>, vector<8x1000xbf16>,
    %12 = vector.extract_strided_slice %1 {offsets = [0, 100], sizes = [8, 1000], strides = [1, 1]} : vector<8x1400xbf16> to vector<8x1000xbf16>
    %c32 = arith.constant 32 : index
    %c0_11 = arith.constant 0 : index
    %13 = vector.load %arg7[%c32, %c0_11] : memref<216x1000xbf16, #tpu.memory_space<vmem>>, vector<8x1000xbf16>
    tpu.vector_store %arg7[%c32, %c0_11], %12 {strides = array<i32>} : memref<216x1000xbf16, #tpu.memory_space<vmem>>, vector<8x1000xbf16>,
    %14 = vector.extract_strided_slice %1 {offsets = [0, 101], sizes = [8, 1000], strides = [1, 1]} : vector<8x1400xbf16> to vector<8x1000xbf16>
    %c40 = arith.constant 40 : index
    %c0_12 = arith.constant 0 : index
    %15 = vector.load %arg7[%c40, %c0_12] : memref<216x1000xbf16, #tpu.memory_space<vmem>>, vector<8x1000xbf16>
    tpu.vector_store %arg7[%c40, %c0_12], %14 {strides = array<i32>} : memref<216x1000xbf16, #tpu.memory_space<vmem>>, vector<8x1000xbf16>,
    %16 = vector.extract_strided_slice %1 {offsets = [0, 109], sizes = [8, 1000], strides = [1, 1]} : vector<8x1400xbf16> to vector<8x1000xbf16>
    %c48 = arith.constant 48 : index
    %c0_13 = arith.constant 0 : index
    %17 = vector.load %arg7[%c48, %c0_13] : memref<216x1000xbf16, #tpu.memory_space<vmem>>, vector<8x1000xbf16>
    tpu.vector_store %arg7[%c48, %c0_13], %16 {strides = array<i32>} : memref<216x1000xbf16, #tpu.memory_space<vmem>>, vector<8x1000xbf16>,
    %18 = vector.extract_strided_slice %1 {offsets = [0, 110], sizes = [8, 1000], strides = [1, 1]} : vector<8x1400xbf16> to vector<8x1000xbf16>
    %c56 = arith.constant 56 : index
    %c0_14 = arith.constant 0 : index
    %19 = vector.load %arg7[%c56, %c0_14] : memref<216x1000xbf16, #tpu.memory_space<vmem>>, vector<8x1000xbf16>
    tpu.vector_store %arg7[%c56, %c0_14], %18 {strides = array<i32>} : memref<216x1000xbf16, #tpu.memory_space<vmem>>, vector<8x1000xbf16>,
    %20 = vector.extract_strided_slice %1 {offsets = [0, 111], sizes = [8, 1000], strides = [1, 1]} : vector<8x1400xbf16> to vector<8x1000xbf16>
    %c64 = arith.constant 64 : index
    %c0_15 = arith.constant 0 : index
    %21 = vector.load %arg7[%c64, %c0_15] : memref<216x1000xbf16, #tpu.memory_space<vmem>>, vector<8x1000xbf16>
    tpu.vector_store %arg7[%c64, %c0_15], %20 {strides = array<i32>} : memref<216x1000xbf16, #tpu.memory_space<vmem>>, vector<8x1000xbf16>,
    %22 = vector.extract_strided_slice %1 {offsets = [0, 189], sizes = [8, 1000], strides = [1, 1]} : vector<8x1400xbf16> to vector<8x1000xbf16>
    %c72 = arith.constant 72 : index
    %c0_16 = arith.constant 0 : index
    %23 = vector.load %arg7[%c72, %c0_16] : memref<216x1000xbf16, #tpu.memory_space<vmem>>, vector<8x1000xbf16>
    tpu.vector_store %arg7[%c72, %c0_16], %22 {strides = array<i32>} : memref<216x1000xbf16, #tpu.memory_space<vmem>>, vector<8x1000xbf16>,
    %24 = vector.extract_strided_slice %1 {offsets = [0, 190], sizes = [8, 1000], strides = [1, 1]} : vector<8x1400xbf16> to vector<8x1000xbf16>
    %c80 = arith.constant 80 : index
    %c0_17 = arith.constant 0 : index
    %25 = vector.load %arg7[%c80, %c0_17] : memref<216x1000xbf16, #tpu.memory_space<vmem>>, vector<8x1000xbf16>
    tpu.vector_store %arg7[%c80, %c0_17], %24 {strides = array<i32>} : memref<216x1000xbf16, #tpu.memory_space<vmem>>, vector<8x1000xbf16>,
    %26 = vector.extract_strided_slice %1 {offsets = [0, 191], sizes = [8, 1000], strides = [1, 1]} : vector<8x1400xbf16> to vector<8x1000xbf16>
    %c88 = arith.constant 88 : index
    %c0_18 = arith.constant 0 : index
    %27 = vector.load %arg7[%c88, %c0_18] : memref<216x1000xbf16, #tpu.memory_space<vmem>>, vector<8x1000xbf16>
    tpu.vector_store %arg7[%c88, %c0_18], %26 {strides = array<i32>} : memref<216x1000xbf16, #tpu.memory_space<vmem>>, vector<8x1000xbf16>,
    %28 = vector.extract_strided_slice %1 {offsets = [0, 199], sizes = [8, 1000], strides = [1, 1]} : vector<8x1400xbf16> to vector<8x1000xbf16>
    %c96 = arith.constant 96 : index
    %c0_19 = arith.constant 0 : index
    %29 = vector.load %arg7[%c96, %c0_19] : memref<216x1000xbf16, #tpu.memory_space<vmem>>, vector<8x1000xbf16>
    tpu.vector_store %arg7[%c96, %c0_19], %28 {strides = array<i32>} : memref<216x1000xbf16, #tpu.memory_space<vmem>>, vector<8x1000xbf16>,
    %30 = vector.extract_strided_slice %1 {offsets = [0, 200], sizes = [8, 1000], strides = [1, 1]} : vector<8x1400xbf16> to vector<8x1000xbf16>
    %c104 = arith.constant 104 : index
    %c0_20 = arith.constant 0 : index
    %31 = vector.load %arg7[%c104, %c0_20] : memref<216x1000xbf16, #tpu.memory_space<vmem>>, vector<8x1000xbf16>
    tpu.vector_store %arg7[%c104, %c0_20], %30 {strides = array<i32>} : memref<216x1000xbf16, #tpu.memory_space<vmem>>, vector<8x1000xbf16>,
    %32 = vector.extract_strided_slice %1 {offsets = [0, 201], sizes = [8, 1000], strides = [1, 1]} : vector<8x1400xbf16> to vector<8x1000xbf16>
    %c112 = arith.constant 112 : index
    %c0_21 = arith.constant 0 : index
    %33 = vector.load %arg7[%c112, %c0_21] : memref<216x1000xbf16, #tpu.memory_space<vmem>>, vector<8x1000xbf16>
    tpu.vector_store %arg7[%c112, %c0_21], %32 {strides = array<i32>} : memref<216x1000xbf16, #tpu.memory_space<vmem>>, vector<8x1000xbf16>,
    %34 = vector.extract_strided_slice %1 {offsets = [0, 209], sizes = [8, 1000], strides = [1, 1]} : vector<8x1400xbf16> to vector<8x1000xbf16>
    %c120 = arith.constant 120 : index
    %c0_22 = arith.constant 0 : index
    %35 = vector.load %arg7[%c120, %c0_22] : memref<216x1000xbf16, #tpu.memory_space<vmem>>, vector<8x1000xbf16>
    tpu.vector_store %arg7[%c120, %c0_22], %34 {strides = array<i32>} : memref<216x1000xbf16, #tpu.memory_space<vmem>>, vector<8x1000xbf16>,
    %36 = vector.extract_strided_slice %1 {offsets = [0, 210], sizes = [8, 1000], strides = [1, 1]} : vector<8x1400xbf16> to vector<8x1000xbf16>
    %c128 = arith.constant 128 : index
    %c0_23 = arith.constant 0 : index
    %37 = vector.load %arg7[%c128, %c0_23] : memref<216x1000xbf16, #tpu.memory_space<vmem>>, vector<8x1000xbf16>
    tpu.vector_store %arg7[%c128, %c0_23], %36 {strides = array<i32>} : memref<216x1000xbf16, #tpu.memory_space<vmem>>, vector<8x1000xbf16>,
    %38 = vector.extract_strided_slice %1 {offsets = [0, 211], sizes = [8, 1000], strides = [1, 1]} : vector<8x1400xbf16> to vector<8x1000xbf16>
    %c136 = arith.constant 136 : index
    %c0_24 = arith.constant 0 : index
    %39 = vector.load %arg7[%c136, %c0_24] : memref<216x1000xbf16, #tpu.memory_space<vmem>>, vector<8x1000xbf16>
    tpu.vector_store %arg7[%c136, %c0_24], %38 {strides = array<i32>} : memref<216x1000xbf16, #tpu.memory_space<vmem>>, vector<8x1000xbf16>,
    %40 = vector.extract_strided_slice %1 {offsets = [0, 289], sizes = [8, 1000], strides = [1, 1]} : vector<8x1400xbf16> to vector<8x1000xbf16>
    %c144 = arith.constant 144 : index
    %c0_25 = arith.constant 0 : index
    %41 = vector.load %arg7[%c144, %c0_25] : memref<216x1000xbf16, #tpu.memory_space<vmem>>, vector<8x1000xbf16>
    tpu.vector_store %arg7[%c144, %c0_25], %40 {strides = array<i32>} : memref<216x1000xbf16, #tpu.memory_space<vmem>>, vector<8x1000xbf16>,
    %42 = vector.extract_strided_slice %1 {offsets = [0, 290], sizes = [8, 1000], strides = [1, 1]} : vector<8x1400xbf16> to vector<8x1000xbf16>
    %c152 = arith.constant 152 : index
    %c0_26 = arith.constant 0 : index
    %43 = vector.load %arg7[%c152, %c0_26] : memref<216x1000xbf16, #tpu.memory_space<vmem>>, vector<8x1000xbf16>
    tpu.vector_store %arg7[%c152, %c0_26], %42 {strides = array<i32>} : memref<216x1000xbf16, #tpu.memory_space<vmem>>, vector<8x1000xbf16>,
    %44 = vector.extract_strided_slice %1 {offsets = [0, 291], sizes = [8, 1000], strides = [1, 1]} : vector<8x1400xbf16> to vector<8x1000xbf16>
    %c160 = arith.constant 160 : index
    %c0_27 = arith.constant 0 : index
    %45 = vector.load %arg7[%c160, %c0_27] : memref<216x1000xbf16, #tpu.memory_space<vmem>>, vector<8x1000xbf16>
    tpu.vector_store %arg7[%c160, %c0_27], %44 {strides = array<i32>} : memref<216x1000xbf16, #tpu.memory_space<vmem>>, vector<8x1000xbf16>,
    %46 = vector.extract_strided_slice %1 {offsets = [0, 299], sizes = [8, 1000], strides = [1, 1]} : vector<8x1400xbf16> to vector<8x1000xbf16>
    %c168 = arith.constant 168 : index
    %c0_28 = arith.constant 0 : index
    %47 = vector.load %arg7[%c168, %c0_28] : memref<216x1000xbf16, #tpu.memory_space<vmem>>, vector<8x1000xbf16>
    tpu.vector_store %arg7[%c168, %c0_28], %46 {strides = array<i32>} : memref<216x1000xbf16, #tpu.memory_space<vmem>>, vector<8x1000xbf16>,
    %48 = vector.extract_strided_slice %1 {offsets = [0, 300], sizes = [8, 1000], strides = [1, 1]} : vector<8x1400xbf16> to vector<8x1000xbf16>
    %c176 = arith.constant 176 : index
    %c0_29 = arith.constant 0 : index
    %49 = vector.load %arg7[%c176, %c0_29] : memref<216x1000xbf16, #tpu.memory_space<vmem>>, vector<8x1000xbf16>
    tpu.vector_store %arg7[%c176, %c0_29], %48 {strides = array<i32>} : memref<216x1000xbf16, #tpu.memory_space<vmem>>, vector<8x1000xbf16>,
    %50 = vector.extract_strided_slice %1 {offsets = [0, 301], sizes = [8, 1000], strides = [1, 1]} : vector<8x1400xbf16> to vector<8x1000xbf16>
    %c184 = arith.constant 184 : index
    %c0_30 = arith.constant 0 : index
    %51 = vector.load %arg7[%c184, %c0_30] : memref<216x1000xbf16, #tpu.memory_space<vmem>>, vector<8x1000xbf16>
    tpu.vector_store %arg7[%c184, %c0_30], %50 {strides = array<i32>} : memref<216x1000xbf16, #tpu.memory_space<vmem>>, vector<8x1000xbf16>,
    %52 = vector.extract_strided_slice %1 {offsets = [0, 309], sizes = [8, 1000], strides = [1, 1]} : vector<8x1400xbf16> to vector<8x1000xbf16>
    %c192 = arith.constant 192 : index
    %c0_31 = arith.constant 0 : index
    %53 = vector.load %arg7[%c192, %c0_31] : memref<216x1000xbf16, #tpu.memory_space<vmem>>, vector<8x1000xbf16>
    tpu.vector_store %arg7[%c192, %c0_31], %52 {strides = array<i32>} : memref<216x1000xbf16, #tpu.memory_space<vmem>>, vector<8x1000xbf16>,
    %54 = vector.extract_strided_slice %1 {offsets = [0, 310], sizes = [8, 1000], strides = [1, 1]} : vector<8x1400xbf16> to vector<8x1000xbf16>
    %c200 = arith.constant 200 : index
    %c0_32 = arith.constant 0 : index
    %55 = vector.load %arg7[%c200, %c0_32] : memref<216x1000xbf16, #tpu.memory_space<vmem>>, vector<8x1000xbf16>
    tpu.vector_store %arg7[%c200, %c0_32], %54 {strides = array<i32>} : memref<216x1000xbf16, #tpu.memory_space<vmem>>, vector<8x1000xbf16>,
    %56 = vector.extract_strided_slice %1 {offsets = [0, 311], sizes = [8, 1000], strides = [1, 1]} : vector<8x1400xbf16> to vector<8x1000xbf16>
    %c208 = arith.constant 208 : index
    %c0_33 = arith.constant 0 : index
    %57 = vector.load %arg7[%c208, %c0_33] : memref<216x1000xbf16, #tpu.memory_space<vmem>>, vector<8x1000xbf16>
    tpu.vector_store %arg7[%c208, %c0_33], %56 {strides = array<i32>} : memref<216x1000xbf16, #tpu.memory_space<vmem>>, vector<8x1000xbf16>,
    %c0_34 = arith.constant 0 : index
    %c0_35 = arith.constant 0 : index
    %58 = vector.load %arg4[%c0_34, %c0_35] : memref<8x216xbf16, #tpu.memory_space<vmem>>, vector<8x216xbf16>
    %c0_36 = arith.constant 0 : index
    %c0_37 = arith.constant 0 : index
    %59 = vector.load %arg7[%c0_36, %c0_37] : memref<216x1000xbf16, #tpu.memory_space<vmem>>, vector<216x1000xbf16>
    %cst = arith.constant dense<0.000000e+00> : vector<8x1000xf32>
    %60 = tpu.matmul %58, %59, %cst {dimension_numbers = #tpu.dot_dimension_numbers<[1], [0], [0], [1], [0, 0, 1, 1], [], []>} : vector<8x216xbf16>, vector<216x1000xbf16>, vector<8x1000xf32> -> vector<8x1000xf32>
    %cst_38 = arith.constant dense<0.000000e+00> : vector<8x128xf32>
    %61 = tpu.matmul %60, %3, %cst_38 {dimension_numbers = #tpu.dot_dimension_numbers<[1], [0], [0], [1], [0, 0, 1, 1], [], []>} : vector<8x1000xf32>, vector<1000x128xf32>, vector<8x128xf32> -> vector<8x128xf32>
    %62 = vector.extract_strided_slice %61 {offsets = [0, 0], sizes = [8, 1], strides = [1, 1]} : vector<8x128xf32> to vector<8x1xf32>
    %63 = arith.mulf %60, %60 : vector<8x1000xf32>
    %cst_39 = arith.constant dense<0.000000e+00> : vector<8x128xf32>
    %64 = tpu.matmul %63, %3, %cst_39 {dimension_numbers = #tpu.dot_dimension_numbers<[1], [0], [0], [1], [0, 0, 1, 1], [], []>} : vector<8x1000xf32>, vector<1000x128xf32>, vector<8x128xf32> -> vector<8x128xf32>
    %65 = vector.extract_strided_slice %64 {offsets = [0, 0], sizes = [8, 1], strides = [1, 1]} : vector<8x128xf32> to vector<8x1xf32>
    %cst_40 = arith.constant 0.001953125 : f32
    %66 = vector.broadcast %cst_40 : f32 to vector<8x1xf32>
    %67 = arith.mulf %62, %66 : vector<8x1xf32>
    %cst_41 = arith.constant 0.001953125 : f32
    %68 = vector.broadcast %cst_41 : f32 to vector<8x1xf32>
    %69 = arith.mulf %65, %68 : vector<8x1xf32>
    %70 = arith.mulf %67, %67 : vector<8x1xf32>
    %71 = arith.subf %69, %70 : vector<8x1xf32>
    %cst_42 = arith.constant 0.000000e+00 : f32
    %72 = vector.broadcast %cst_42 : f32 to vector<8x1xf32>
    %73 = arith.maximumf %71, %72 : vector<8x1xf32>
    %74 = vector.broadcast %67 : vector<8x1xf32> to vector<8x1000xf32>
    %75 = arith.subf %60, %74 : vector<8x1000xf32>
    %cst_43 = arith.constant 9.99999974E-6 : f32
    %76 = vector.broadcast %cst_43 : f32 to vector<8x1xf32>
    %77 = arith.addf %73, %76 : vector<8x1xf32>
    %78 = math.rsqrt %77 : vector<8x1xf32>
    %79 = vector.broadcast %78 : vector<8x1xf32> to vector<8x1000xf32>
    %80 = arith.mulf %75, %79 : vector<8x1000xf32>
    %cst_44 = arith.constant 0.000000e+00 : f32
    %81 = vector.broadcast %cst_44 : f32 to vector<8x1000xf32>
    %82 = arith.cmpf oge, %80, %81 : vector<8x1000xf32>
    %cst_45 = arith.constant 2.000000e-01 : f32
    %83 = vector.broadcast %cst_45 : f32 to vector<8x1000xf32>
    %84 = arith.mulf %83, %80 : vector<8x1000xf32>
    %85 = arith.select %82, %80, %84 : vector<8x1000xi1>, vector<8x1000xf32>
    %86 = vector.broadcast %2 : vector<1x1000xf32> to vector<8x1000xf32>
    %87 = arith.mulf %85, %86 : vector<8x1000xf32>
    %cst_46 = arith.constant 0.000000e+00 : bf16
    %88 = vector.broadcast %cst_46 : bf16 to vector<8x128xbf16>
    %c0_47 = arith.constant 0 : index
    %c0_48 = arith.constant 0 : index
    %89 = vector.load %arg8[%c0_47, %c0_48] : memref<8x1256xbf16, #tpu.memory_space<vmem>>, vector<8x128xbf16>
    tpu.vector_store %arg8[%c0_47, %c0_48], %88 {strides = array<i32>} : memref<8x1256xbf16, #tpu.memory_space<vmem>>, vector<8x128xbf16>,
    %cst_49 = arith.constant 0.000000e+00 : bf16
    %90 = vector.broadcast %cst_49 : bf16 to vector<8x128xbf16>
    %c0_50 = arith.constant 0 : index
    %c1128 = arith.constant 1128 : index
    %91 = vector.load %arg8[%c0_50, %c1128] : memref<8x1256xbf16, #tpu.memory_space<vmem>>, vector<8x128xbf16>
    tpu.vector_store %arg8[%c0_50, %c1128], %90 {strides = array<i32>} : memref<8x1256xbf16, #tpu.memory_space<vmem>>, vector<8x128xbf16>,
    %92 = arith.truncf %87 : vector<8x1000xf32> to vector<8x1000xbf16>
    %c0_51 = arith.constant 0 : index
    %c128_52 = arith.constant 128 : index
    %93 = vector.load %arg8[%c0_51, %c128_52] : memref<8x1256xbf16, #tpu.memory_space<vmem>>, vector<8x1000xbf16>
    tpu.vector_store %arg8[%c0_51, %c128_52], %92 {strides = array<i32>} : memref<8x1256xbf16, #tpu.memory_space<vmem>>, vector<8x1000xbf16>,
    %c0_53 = arith.constant 0 : index
    %c0_54 = arith.constant 0 : index
    %94 = vector.load %arg8[%c0_53, %c0_54] : memref<8x1256xbf16, #tpu.memory_space<vmem>>, vector<8x1256xbf16>
    %95 = vector.extract_strided_slice %94 {offsets = [0, 17], sizes = [8, 1000], strides = [1, 1]} : vector<8x1256xbf16> to vector<8x1000xbf16>
    %c0_55 = arith.constant 0 : index
    %c0_56 = arith.constant 0 : index
    %96 = vector.load %arg9[%c0_55, %c0_56] : memref<216x1000xbf16, #tpu.memory_space<vmem>>, vector<8x1000xbf16>
    tpu.vector_store %arg9[%c0_55, %c0_56], %95 {strides = array<i32>} : memref<216x1000xbf16, #tpu.memory_space<vmem>>, vector<8x1000xbf16>,
    %97 = vector.extract_strided_slice %94 {offsets = [0, 18], sizes = [8, 1000], strides = [1, 1]} : vector<8x1256xbf16> to vector<8x1000xbf16>
    %c8_57 = arith.constant 8 : index
    %c0_58 = arith.constant 0 : index
    %98 = vector.load %arg9[%c8_57, %c0_58] : memref<216x1000xbf16, #tpu.memory_space<vmem>>, vector<8x1000xbf16>
    tpu.vector_store %arg9[%c8_57, %c0_58], %97 {strides = array<i32>} : memref<216x1000xbf16, #tpu.memory_space<vmem>>, vector<8x1000xbf16>,
    %99 = vector.extract_strided_slice %94 {offsets = [0, 19], sizes = [8, 1000], strides = [1, 1]} : vector<8x1256xbf16> to vector<8x1000xbf16>
    %c16_59 = arith.constant 16 : index
    %c0_60 = arith.constant 0 : index
    %100 = vector.load %arg9[%c16_59, %c0_60] : memref<216x1000xbf16, #tpu.memory_space<vmem>>, vector<8x1000xbf16>
    tpu.vector_store %arg9[%c16_59, %c0_60], %99 {strides = array<i32>} : memref<216x1000xbf16, #tpu.memory_space<vmem>>, vector<8x1000xbf16>,
    %101 = vector.extract_strided_slice %94 {offsets = [0, 27], sizes = [8, 1000], strides = [1, 1]} : vector<8x1256xbf16> to vector<8x1000xbf16>
    %c24_61 = arith.constant 24 : index
    %c0_62 = arith.constant 0 : index
    %102 = vector.load %arg9[%c24_61, %c0_62] : memref<216x1000xbf16, #tpu.memory_space<vmem>>, vector<8x1000xbf16>
    tpu.vector_store %arg9[%c24_61, %c0_62], %101 {strides = array<i32>} : memref<216x1000xbf16, #tpu.memory_space<vmem>>, vector<8x1000xbf16>,
    %103 = vector.extract_strided_slice %94 {offsets = [0, 28], sizes = [8, 1000], strides = [1, 1]} : vector<8x1256xbf16> to vector<8x1000xbf16>
    %c32_63 = arith.constant 32 : index
    %c0_64 = arith.constant 0 : index
    %104 = vector.load %arg9[%c32_63, %c0_64] : memref<216x1000xbf16, #tpu.memory_space<vmem>>, vector<8x1000xbf16>
    tpu.vector_store %arg9[%c32_63, %c0_64], %103 {strides = array<i32>} : memref<216x1000xbf16, #tpu.memory_space<vmem>>, vector<8x1000xbf16>,
    %105 = vector.extract_strided_slice %94 {offsets = [0, 29], sizes = [8, 1000], strides = [1, 1]} : vector<8x1256xbf16> to vector<8x1000xbf16>
    %c40_65 = arith.constant 40 : index
    %c0_66 = arith.constant 0 : index
    %106 = vector.load %arg9[%c40_65, %c0_66] : memref<216x1000xbf16, #tpu.memory_space<vmem>>, vector<8x1000xbf16>
    tpu.vector_store %arg9[%c40_65, %c0_66], %105 {strides = array<i32>} : memref<216x1000xbf16, #tpu.memory_space<vmem>>, vector<8x1000xbf16>,
    %107 = vector.extract_strided_slice %94 {offsets = [0, 37], sizes = [8, 1000], strides = [1, 1]} : vector<8x1256xbf16> to vector<8x1000xbf16>
    %c48_67 = arith.constant 48 : index
    %c0_68 = arith.constant 0 : index
    %108 = vector.load %arg9[%c48_67, %c0_68] : memref<216x1000xbf16, #tpu.memory_space<vmem>>, vector<8x1000xbf16>
    tpu.vector_store %arg9[%c48_67, %c0_68], %107 {strides = array<i32>} : memref<216x1000xbf16, #tpu.memory_space<vmem>>, vector<8x1000xbf16>,
    %109 = vector.extract_strided_slice %94 {offsets = [0, 38], sizes = [8, 1000], strides = [1, 1]} : vector<8x1256xbf16> to vector<8x1000xbf16>
    %c56_69 = arith.constant 56 : index
    %c0_70 = arith.constant 0 : index
    %110 = vector.load %arg9[%c56_69, %c0_70] : memref<216x1000xbf16, #tpu.memory_space<vmem>>, vector<8x1000xbf16>
    tpu.vector_store %arg9[%c56_69, %c0_70], %109 {strides = array<i32>} : memref<216x1000xbf16, #tpu.memory_space<vmem>>, vector<8x1000xbf16>,
    %111 = vector.extract_strided_slice %94 {offsets = [0, 39], sizes = [8, 1000], strides = [1, 1]} : vector<8x1256xbf16> to vector<8x1000xbf16>
    %c64_71 = arith.constant 64 : index
    %c0_72 = arith.constant 0 : index
    %112 = vector.load %arg9[%c64_71, %c0_72] : memref<216x1000xbf16, #tpu.memory_space<vmem>>, vector<8x1000xbf16>
    tpu.vector_store %arg9[%c64_71, %c0_72], %111 {strides = array<i32>} : memref<216x1000xbf16, #tpu.memory_space<vmem>>, vector<8x1000xbf16>,
    %113 = vector.extract_strided_slice %94 {offsets = [0, 117], sizes = [8, 1000], strides = [1, 1]} : vector<8x1256xbf16> to vector<8x1000xbf16>
    %c72_73 = arith.constant 72 : index
    %c0_74 = arith.constant 0 : index
    %114 = vector.load %arg9[%c72_73, %c0_74] : memref<216x1000xbf16, #tpu.memory_space<vmem>>, vector<8x1000xbf16>
    tpu.vector_store %arg9[%c72_73, %c0_74], %113 {strides = array<i32>} : memref<216x1000xbf16, #tpu.memory_space<vmem>>, vector<8x1000xbf16>,
    %115 = vector.extract_strided_slice %94 {offsets = [0, 118], sizes = [8, 1000], strides = [1, 1]} : vector<8x1256xbf16> to vector<8x1000xbf16>
    %c80_75 = arith.constant 80 : index
    %c0_76 = arith.constant 0 : index
    %116 = vector.load %arg9[%c80_75, %c0_76] : memref<216x1000xbf16, #tpu.memory_space<vmem>>, vector<8x1000xbf16>
    tpu.vector_store %arg9[%c80_75, %c0_76], %115 {strides = array<i32>} : memref<216x1000xbf16, #tpu.memory_space<vmem>>, vector<8x1000xbf16>,
    %117 = vector.extract_strided_slice %94 {offsets = [0, 119], sizes = [8, 1000], strides = [1, 1]} : vector<8x1256xbf16> to vector<8x1000xbf16>
    %c88_77 = arith.constant 88 : index
    %c0_78 = arith.constant 0 : index
    %118 = vector.load %arg9[%c88_77, %c0_78] : memref<216x1000xbf16, #tpu.memory_space<vmem>>, vector<8x1000xbf16>
    tpu.vector_store %arg9[%c88_77, %c0_78], %117 {strides = array<i32>} : memref<216x1000xbf16, #tpu.memory_space<vmem>>, vector<8x1000xbf16>,
    %119 = vector.extract_strided_slice %94 {offsets = [0, 127], sizes = [8, 1000], strides = [1, 1]} : vector<8x1256xbf16> to vector<8x1000xbf16>
    %c96_79 = arith.constant 96 : index
    %c0_80 = arith.constant 0 : index
    %120 = vector.load %arg9[%c96_79, %c0_80] : memref<216x1000xbf16, #tpu.memory_space<vmem>>, vector<8x1000xbf16>
    tpu.vector_store %arg9[%c96_79, %c0_80], %119 {strides = array<i32>} : memref<216x1000xbf16, #tpu.memory_space<vmem>>, vector<8x1000xbf16>,
    %121 = vector.extract_strided_slice %94 {offsets = [0, 128], sizes = [8, 1000], strides = [1, 1]} : vector<8x1256xbf16> to vector<8x1000xbf16>
    %c104_81 = arith.constant 104 : index
    %c0_82 = arith.constant 0 : index
    %122 = vector.load %arg9[%c104_81, %c0_82] : memref<216x1000xbf16, #tpu.memory_space<vmem>>, vector<8x1000xbf16>
    tpu.vector_store %arg9[%c104_81, %c0_82], %121 {strides = array<i32>} : memref<216x1000xbf16, #tpu.memory_space<vmem>>, vector<8x1000xbf16>,
    %123 = vector.extract_strided_slice %94 {offsets = [0, 129], sizes = [8, 1000], strides = [1, 1]} : vector<8x1256xbf16> to vector<8x1000xbf16>
    %c112_83 = arith.constant 112 : index
    %c0_84 = arith.constant 0 : index
    %124 = vector.load %arg9[%c112_83, %c0_84] : memref<216x1000xbf16, #tpu.memory_space<vmem>>, vector<8x1000xbf16>
    tpu.vector_store %arg9[%c112_83, %c0_84], %123 {strides = array<i32>} : memref<216x1000xbf16, #tpu.memory_space<vmem>>, vector<8x1000xbf16>,
    %125 = vector.extract_strided_slice %94 {offsets = [0, 137], sizes = [8, 1000], strides = [1, 1]} : vector<8x1256xbf16> to vector<8x1000xbf16>
    %c120_85 = arith.constant 120 : index
    %c0_86 = arith.constant 0 : index
    %126 = vector.load %arg9[%c120_85, %c0_86] : memref<216x1000xbf16, #tpu.memory_space<vmem>>, vector<8x1000xbf16>
    tpu.vector_store %arg9[%c120_85, %c0_86], %125 {strides = array<i32>} : memref<216x1000xbf16, #tpu.memory_space<vmem>>, vector<8x1000xbf16>,
    %127 = vector.extract_strided_slice %94 {offsets = [0, 138], sizes = [8, 1000], strides = [1, 1]} : vector<8x1256xbf16> to vector<8x1000xbf16>
    %c128_87 = arith.constant 128 : index
    %c0_88 = arith.constant 0 : index
    %128 = vector.load %arg9[%c128_87, %c0_88] : memref<216x1000xbf16, #tpu.memory_space<vmem>>, vector<8x1000xbf16>
    tpu.vector_store %arg9[%c128_87, %c0_88], %127 {strides = array<i32>} : memref<216x1000xbf16, #tpu.memory_space<vmem>>, vector<8x1000xbf16>,
    %129 = vector.extract_strided_slice %94 {offsets = [0, 139], sizes = [8, 1000], strides = [1, 1]} : vector<8x1256xbf16> to vector<8x1000xbf16>
    %c136_89 = arith.constant 136 : index
    %c0_90 = arith.constant 0 : index
    %130 = vector.load %arg9[%c136_89, %c0_90] : memref<216x1000xbf16, #tpu.memory_space<vmem>>, vector<8x1000xbf16>
    tpu.vector_store %arg9[%c136_89, %c0_90], %129 {strides = array<i32>} : memref<216x1000xbf16, #tpu.memory_space<vmem>>, vector<8x1000xbf16>,
    %131 = vector.extract_strided_slice %94 {offsets = [0, 217], sizes = [8, 1000], strides = [1, 1]} : vector<8x1256xbf16> to vector<8x1000xbf16>
    %c144_91 = arith.constant 144 : index
    %c0_92 = arith.constant 0 : index
    %132 = vector.load %arg9[%c144_91, %c0_92] : memref<216x1000xbf16, #tpu.memory_space<vmem>>, vector<8x1000xbf16>
    tpu.vector_store %arg9[%c144_91, %c0_92], %131 {strides = array<i32>} : memref<216x1000xbf16, #tpu.memory_space<vmem>>, vector<8x1000xbf16>,
    %133 = vector.extract_strided_slice %94 {offsets = [0, 218], sizes = [8, 1000], strides = [1, 1]} : vector<8x1256xbf16> to vector<8x1000xbf16>
    %c152_93 = arith.constant 152 : index
    %c0_94 = arith.constant 0 : index
    %134 = vector.load %arg9[%c152_93, %c0_94] : memref<216x1000xbf16, #tpu.memory_space<vmem>>, vector<8x1000xbf16>
    tpu.vector_store %arg9[%c152_93, %c0_94], %133 {strides = array<i32>} : memref<216x1000xbf16, #tpu.memory_space<vmem>>, vector<8x1000xbf16>,
    %135 = vector.extract_strided_slice %94 {offsets = [0, 219], sizes = [8, 1000], strides = [1, 1]} : vector<8x1256xbf16> to vector<8x1000xbf16>
    %c160_95 = arith.constant 160 : index
    %c0_96 = arith.constant 0 : index
    %136 = vector.load %arg9[%c160_95, %c0_96] : memref<216x1000xbf16, #tpu.memory_space<vmem>>, vector<8x1000xbf16>
    tpu.vector_store %arg9[%c160_95, %c0_96], %135 {strides = array<i32>} : memref<216x1000xbf16, #tpu.memory_space<vmem>>, vector<8x1000xbf16>,
    %137 = vector.extract_strided_slice %94 {offsets = [0, 227], sizes = [8, 1000], strides = [1, 1]} : vector<8x1256xbf16> to vector<8x1000xbf16>
    %c168_97 = arith.constant 168 : index
    %c0_98 = arith.constant 0 : index
    %138 = vector.load %arg9[%c168_97, %c0_98] : memref<216x1000xbf16, #tpu.memory_space<vmem>>, vector<8x1000xbf16>
    tpu.vector_store %arg9[%c168_97, %c0_98], %137 {strides = array<i32>} : memref<216x1000xbf16, #tpu.memory_space<vmem>>, vector<8x1000xbf16>,
    %139 = vector.extract_strided_slice %94 {offsets = [0, 228], sizes = [8, 1000], strides = [1, 1]} : vector<8x1256xbf16> to vector<8x1000xbf16>
    %c176_99 = arith.constant 176 : index
    %c0_100 = arith.constant 0 : index
    %140 = vector.load %arg9[%c176_99, %c0_100] : memref<216x1000xbf16, #tpu.memory_space<vmem>>, vector<8x1000xbf16>
    tpu.vector_store %arg9[%c176_99, %c0_100], %139 {strides = array<i32>} : memref<216x1000xbf16, #tpu.memory_space<vmem>>, vector<8x1000xbf16>,
    %141 = vector.extract_strided_slice %94 {offsets = [0, 229], sizes = [8, 1000], strides = [1, 1]} : vector<8x1256xbf16> to vector<8x1000xbf16>
    %c184_101 = arith.constant 184 : index
    %c0_102 = arith.constant 0 : index
    %142 = vector.load %arg9[%c184_101, %c0_102] : memref<216x1000xbf16, #tpu.memory_space<vmem>>, vector<8x1000xbf16>
    tpu.vector_store %arg9[%c184_101, %c0_102], %141 {strides = array<i32>} : memref<216x1000xbf16, #tpu.memory_space<vmem>>, vector<8x1000xbf16>,
    %143 = vector.extract_strided_slice %94 {offsets = [0, 237], sizes = [8, 1000], strides = [1, 1]} : vector<8x1256xbf16> to vector<8x1000xbf16>
    %c192_103 = arith.constant 192 : index
    %c0_104 = arith.constant 0 : index
    %144 = vector.load %arg9[%c192_103, %c0_104] : memref<216x1000xbf16, #tpu.memory_space<vmem>>, vector<8x1000xbf16>
    tpu.vector_store %arg9[%c192_103, %c0_104], %143 {strides = array<i32>} : memref<216x1000xbf16, #tpu.memory_space<vmem>>, vector<8x1000xbf16>,
    %145 = vector.extract_strided_slice %94 {offsets = [0, 238], sizes = [8, 1000], strides = [1, 1]} : vector<8x1256xbf16> to vector<8x1000xbf16>
    %c200_105 = arith.constant 200 : index
    %c0_106 = arith.constant 0 : index
    %146 = vector.load %arg9[%c200_105, %c0_106] : memref<216x1000xbf16, #tpu.memory_space<vmem>>, vector<8x1000xbf16>
    tpu.vector_store %arg9[%c200_105, %c0_106], %145 {strides = array<i32>} : memref<216x1000xbf16, #tpu.memory_space<vmem>>, vector<8x1000xbf16>,
    %147 = vector.extract_strided_slice %94 {offsets = [0, 239], sizes = [8, 1000], strides = [1, 1]} : vector<8x1256xbf16> to vector<8x1000xbf16>
    %c208_107 = arith.constant 208 : index
    %c0_108 = arith.constant 0 : index
    %148 = vector.load %arg9[%c208_107, %c0_108] : memref<216x1000xbf16, #tpu.memory_space<vmem>>, vector<8x1000xbf16>
    tpu.vector_store %arg9[%c208_107, %c0_108], %147 {strides = array<i32>} : memref<216x1000xbf16, #tpu.memory_space<vmem>>, vector<8x1000xbf16>,
    %c0_109 = arith.constant 0 : index
    %c0_110 = arith.constant 0 : index
    %149 = vector.load %arg5[%c0_109, %c0_110] : memref<8x216xbf16, #tpu.memory_space<vmem>>, vector<8x216xbf16>
    %c0_111 = arith.constant 0 : index
    %c0_112 = arith.constant 0 : index
    %150 = vector.load %arg9[%c0_111, %c0_112] : memref<216x1000xbf16, #tpu.memory_space<vmem>>, vector<216x1000xbf16>
    %cst_113 = arith.constant dense<0.000000e+00> : vector<8x1000xf32>
    %151 = tpu.matmul %149, %150, %cst_113 {dimension_numbers = #tpu.dot_dimension_numbers<[1], [0], [0], [1], [0, 0, 1, 1], [], []>} : vector<8x216xbf16>, vector<216x1000xbf16>, vector<8x1000xf32> -> vector<8x1000xf32>
    %cst_114 = arith.constant dense<0.000000e+00> : vector<8x128xf32>
    %152 = tpu.matmul %151, %3, %cst_114 {dimension_numbers = #tpu.dot_dimension_numbers<[1], [0], [0], [1], [0, 0, 1, 1], [], []>} : vector<8x1000xf32>, vector<1000x128xf32>, vector<8x128xf32> -> vector<8x128xf32>
    %153 = vector.extract_strided_slice %152 {offsets = [0, 0], sizes = [8, 1], strides = [1, 1]} : vector<8x128xf32> to vector<8x1xf32>
    %154 = arith.mulf %151, %151 : vector<8x1000xf32>
    %cst_115 = arith.constant dense<0.000000e+00> : vector<8x128xf32>
    %155 = tpu.matmul %154, %3, %cst_115 {dimension_numbers = #tpu.dot_dimension_numbers<[1], [0], [0], [1], [0, 0, 1, 1], [], []>} : vector<8x1000xf32>, vector<1000x128xf32>, vector<8x128xf32> -> vector<8x128xf32>
    %156 = vector.extract_strided_slice %155 {offsets = [0, 0], sizes = [8, 1], strides = [1, 1]} : vector<8x128xf32> to vector<8x1xf32>
    %cst_116 = arith.constant 0.001953125 : f32
    %157 = vector.broadcast %cst_116 : f32 to vector<8x1xf32>
    %158 = arith.mulf %153, %157 : vector<8x1xf32>
    %cst_117 = arith.constant 0.001953125 : f32
    %159 = vector.broadcast %cst_117 : f32 to vector<8x1xf32>
    %160 = arith.mulf %156, %159 : vector<8x1xf32>
    %161 = arith.mulf %158, %158 : vector<8x1xf32>
    %162 = arith.subf %160, %161 : vector<8x1xf32>
    %cst_118 = arith.constant 0.000000e+00 : f32
    %163 = vector.broadcast %cst_118 : f32 to vector<8x1xf32>
    %164 = arith.maximumf %162, %163 : vector<8x1xf32>
    %165 = vector.broadcast %158 : vector<8x1xf32> to vector<8x1000xf32>
    %166 = arith.subf %151, %165 : vector<8x1000xf32>
    %cst_119 = arith.constant 9.99999974E-6 : f32
    %167 = vector.broadcast %cst_119 : f32 to vector<8x1xf32>
    %168 = arith.addf %164, %167 : vector<8x1xf32>
    %169 = math.rsqrt %168 : vector<8x1xf32>
    %170 = vector.broadcast %169 : vector<8x1xf32> to vector<8x1000xf32>
    %171 = arith.mulf %166, %170 : vector<8x1000xf32>
    %cst_120 = arith.constant 0.000000e+00 : f32
    %172 = vector.broadcast %cst_120 : f32 to vector<8x1000xf32>
    %173 = arith.cmpf oge, %171, %172 : vector<8x1000xf32>
    %cst_121 = arith.constant 2.000000e-01 : f32
    %174 = vector.broadcast %cst_121 : f32 to vector<8x1000xf32>
    %175 = arith.mulf %174, %171 : vector<8x1000xf32>
    %176 = arith.select %173, %171, %175 : vector<8x1000xi1>, vector<8x1000xf32>
    %177 = arith.addf %176, %87 : vector<8x1000xf32>
    %c0_122 = arith.constant 0 : index
    %c0_123 = arith.constant 0 : index
    %c0_124 = arith.constant 0 : index
    %178 = vector.load %arg6[%c0_122, %c0_123, %c0_124] : memref<1x8x1000xf32, #tpu.memory_space<vmem>>, vector<1x8x1000xf32>
    %179 = vector.shape_cast %178 : vector<1x8x1000xf32> to vector<8x1000xf32>
    %180 = vector.shape_cast %177 : vector<8x1000xf32> to vector<1x8x1000xf32>
    tpu.vector_store %arg6[%c0_122, %c0_123, %c0_124], %180 {strides = array<i32>} : memref<1x8x1000xf32, #tpu.memory_space<vmem>>, vector<1x8x1000xf32>,
    return
  }
  func.func @transform_0(%arg0: i32) -> (i32, i32, i32) {
    %c0_i32 = arith.constant 0 : i32
    %c0_i32_0 = arith.constant 0 : i32
    %c0_i32_1 = arith.constant 0 : i32
    return %arg0, %c0_i32, %c0_i32_0 : i32, i32, i32
  }
  func.func @transform_1(%arg0: i32) -> (i32, i32) {
    %c0_i32 = arith.constant 0 : i32
    %c0_i32_0 = arith.constant 0 : i32
    %c0_i32_1 = arith.constant 0 : i32
    return %c0_i32, %c0_i32_0 : i32, i32
  }
  func.func @transform_2(%arg0: i32) -> (i32, i32) {
    %c0_i32 = arith.constant 0 : i32
    %c0_i32_0 = arith.constant 0 : i32
    %c0_i32_1 = arith.constant 0 : i32
    return %c0_i32, %c0_i32_0 : i32, i32
  }
  func.func @transform_3(%arg0: i32) -> (i32, i32) {
    %c0_i32 = arith.constant 0 : i32
    %c0_i32_0 = arith.constant 0 : i32
    %c0_i32_1 = arith.constant 0 : i32
    return %c0_i32, %c0_i32_0 : i32, i32
  }
  func.func @transform_4(%arg0: i32) -> (i32, i32) {
    %c0_i32 = arith.constant 0 : i32
    %c0_i32_0 = arith.constant 0 : i32
    %c0_i32_1 = arith.constant 0 : i32
    return %c0_i32, %c0_i32_0 : i32, i32
  }
  func.func @transform_5(%arg0: i32) -> (i32, i32, i32) {
    %c0_i32 = arith.constant 0 : i32
    %c0_i32_0 = arith.constant 0 : i32
    %c0_i32_1 = arith.constant 0 : i32
    return %arg0, %c0_i32, %c0_i32_0 : i32, i32, i32
  }
}

</mosaic_0001>

<bundles_post_ra>
// kernel: evaluation_forward.1
= control target key start
LH: loop header
LB: loop body
LE: loop exit
PB: predicated region body
PF: predicated region fallthrough
CT: control target
= control target key end

     0   :  { %s6584_s18 = smov 0   ;;  %s9603_s0 = inlined_call_operand.vmem [shape: bf16[2,8,1400], index: 0, kind: input, shape index: {}]   ;;  %s9604_s1 = inlined_call_operand.vmem [shape: f32[1,1000], index: 1, kind: input, shape index: {}]   ;;  %s9605_s2 = inlined_call_operand.vmem [shape: f32[1000,128], index: 2, kind: input, shape index: {}]   ;;  %s9606_s3 = inlined_call_operand.vmem [shape: bf16[8,216], index: 3, kind: input, shape index: {}]   ;;  %s9607_s4 = inlined_call_operand.vmem [shape: bf16[8,216], index: 4, kind: input, shape index: {}]   ;;  %s9608_s5 = inlined_call_operand.vmem [shape: f32[2,8,1000], index: 5, kind: output, shape index: {}]  }
   0x1 LB: > { %s5186_s19 = sadd.s32 4294967295, %s6505_s18   ;;  %p5190_p0 = scmp.ge.s32.totalorder %s6505_s18, 1  ;;  %s6505_s18 = sphi %s6584_s18, %s15_s18  }
   0x2   : > { %p187_p1 = scmp.lt.s32.totalorder %s6505_s18, 3 }
   0x4   : > { %p188_p2 = pnand %p5190_p0, %p187_p1 }
   0x6   : > { %191 = sbr.rel (%p188_p2) target bundleno = 2153 (0x869), region = 40 }
   0xd   : > { %p215_p3 = scmp.lt.s32.totalorder %s5186_s19, 1  ;;  %s6507_s24 = smov 38   ;;  %vm378_vm0 = vcmask 1043456   ;;  %vm9788_vm1 = vcmask 310272   ;;  %vm380_vm2 = vcmask 318464   ;;  %vm9793_vm3 = vcmask 302080  }
   0xe   : > { %s6508_s25 = smov 39   ;;  %s6509_s26 = smov 37   ;;  %vm9660_vm4 = vcmask 236544   ;;  %vm9659_vm5 = vcmask 228352   ;;  %vm9623_vm6 = vcmask 220160   ;;  %vm9625_vm7 = vcmask 154624  }
   0xf   : > { %s10111_s19 = smov (!%p215_p3, %s5186_s19), 1  ;;  %s6510_s27 = smov 29   ;;  %vm9624_vm8 = vcmask 146432   ;;  %vm9629_vm9 = vcmask 138240   ;;  %vm9626_vm10 = vcmask 547840   ;;  %vm1887_vm11 = vcmask 719872  }
  0x10   : > { %s6425_s20 = smul.u32 44, %s10111_s19  ;;  %s9741_s28 = smov 28   ;;  %vm9635_vm12 = vcmask 539648   ;;  %vm9632_vm13 = vcmask 531456   ;;  %vm9641_vm14 = vcmask 465920   ;;  %vm9638_vm15 = vcmask 457728  }
  0x11   : > { %s9743_s29 = smov 27   ;;  %s6513_s30 = smov 19  }
  0x12   : > { %s6598_s23 = scalar_lea.vmem %s9603_s0, %s6425_s20  ;;  %s6514_s6 = smov 18  }
  0x13   : > { %v6601_v0 = vld [vmem:[%s6598_s23 + $0x8] sm:$0xff]  ;;  %v6608_v1 = vld [vmem:[%s6598_s23 + $0x10] sm:$0xff]  ;;  %v6639_v2 = vld [vmem:[%s6598_s23] sm:$0xff]  ;;  %s6515_s7 = smov 17   ;;  %s6516_s8 = smov 67  }
  0x14   : > { %401 = vrot.lane.b32.xlu1 %v6601_v0, %s6507_s24  ;;  %365 = vrot.lane.b32.xlu0 %v6601_v0, %s6508_s25  ;;  %s6517_s9 = smov 66   ;;  %s6518_s10 = smov 65   ;;  %v6706_v3 = vld [vmem:[%s6598_s23 + $0x18] sm:$0xff] }
  0x15   : > { %s6519_s11 = smov 57   ;;  %s9609_s12 = smov 56  }
  0x16   : > { %s6521_s13 = smov 55   ;;  %s9611_s14 = smov 47  }
  0x17   : > { %s9615_s15 = smov 46   ;;  %s9613_s16 = smov 45  }
  0x18   : > { %403 = vrot.lane.b32.xlu1 %v6608_v1, %s6507_s24  ;;  %367 = vrot.lane.b32.xlu0 %v6608_v1, %s6508_s25  ;;  %s6525_s17 = smov 95   ;;  %s9617_s20 = smov 94  }
  0x19   : > { %s9621_s21 = smov 93   ;;  %s9619_s22 = smov 85  }
  0x1c   : > { %435 = vrot.lane.b32.xlu1 %v6608_v1, %s6509_s26  ;;  %433 = vrot.lane.b32.xlu0 %v6601_v0, %s6509_s26 }
  0x20   : > { %467 = vrot.lane.b32.xlu1 %v6608_v1, %s6510_s27  ;;  %465 = vrot.lane.b32.xlu0 %v6601_v0, %s6510_s27 }
  0x24   : > { %499 = vrot.lane.b32.xlu1 %v6608_v1, %s9741_s28  ;;  %497 = vrot.lane.b32.xlu0 %v6601_v0, %s9741_s28 }
  0x28   : > { %531 = vrot.lane.b32.xlu1 %v6608_v1, %s9743_s29  ;;  %529 = vrot.lane.b32.xlu0 %v6601_v0, %s9743_s29 }
  0x2c   : > { %563 = vrot.lane.b32.xlu1 %v6608_v1, %s6513_s30  ;;  %561 = vrot.lane.b32.xlu0 %v6601_v0, %s6513_s30 }
  0x30   : > { %595 = vrot.lane.b32.xlu1 %v6608_v1, %s6514_s6  ;;  %593 = vrot.lane.b32.xlu0 %v6601_v0, %s6514_s6 }
  0x34   : > { %399 = vrot.lane.b32.xlu1 %v6639_v2, %s6507_s24  ;;  %363 = vrot.lane.b32.xlu0 %v6639_v2, %s6508_s25 }
  0x38   : > { %627 = vrot.lane.b32.xlu1 %v6608_v1, %s6515_s7  ;;  %625 = vrot.lane.b32.xlu0 %v6601_v0, %s6515_s7 }
  0x3c   : > { %659 = vrot.lane.b32.xlu1 %v6608_v1, %s6516_s8  ;;  %657 = vrot.lane.b32.xlu0 %v6601_v0, %s6516_s8 }
  0x40   : > { %463 = vrot.lane.b32.xlu1 %v6639_v2, %s6510_s27  ;;  %431 = vrot.lane.b32.xlu0 %v6639_v2, %s6509_s26 }
  0x44   : > { %691 = vrot.lane.b32.xlu1 %v6608_v1, %s6517_s9  ;;  %689 = vrot.lane.b32.xlu0 %v6601_v0, %s6517_s9 }
  0x48   : > { %723 = vrot.lane.b32.xlu1 %v6608_v1, %s6518_s10  ;;  %721 = vrot.lane.b32.xlu0 %v6601_v0, %s6518_s10 }
  0x4c   : > { %527 = vrot.lane.b32.xlu1 %v6639_v2, %s9743_s29  ;;  %495 = vrot.lane.b32.xlu0 %v6639_v2, %s9741_s28 }
  0x50   : > { %755 = vrot.lane.b32.xlu1 %v6608_v1, %s6519_s11  ;;  %753 = vrot.lane.b32.xlu0 %v6601_v0, %s6519_s11 }
  0x54   : > { %787 = vrot.lane.b32.xlu1 %v6608_v1, %s9609_s12  ;;  %785 = vrot.lane.b32.xlu0 %v6601_v0, %s9609_s12 }
  0x58   : > { %591 = vrot.lane.b32.xlu1 %v6639_v2, %s6514_s6  ;;  %559 = vrot.lane.b32.xlu0 %v6639_v2, %s6513_s30 }
  0x5c   : > { %819 = vrot.lane.b32.xlu1 %v6608_v1, %s6521_s13  ;;  %817 = vrot.lane.b32.xlu0 %v6601_v0, %s6521_s13 }
  0x60   : > { %851 = vrot.lane.b32.xlu1 %v6608_v1, %s9611_s14  ;;  %849 = vrot.lane.b32.xlu0 %v6601_v0, %s9611_s14 }
  0x64   : > { %655 = vrot.lane.b32.xlu1 %v6639_v2, %s6516_s8  ;;  %623 = vrot.lane.b32.xlu0 %v6639_v2, %s6515_s7 }
  0x68   : > { %883 = vrot.lane.b32.xlu1 %v6608_v1, %s9615_s15  ;;  %881 = vrot.lane.b32.xlu0 %v6601_v0, %s9615_s15 }
  0x6c   : > { %915 = vrot.lane.b32.xlu1 %v6608_v1, %s9613_s16  ;;  %913 = vrot.lane.b32.xlu0 %v6601_v0, %s9613_s16 }
  0x70   : > { %719 = vrot.lane.b32.xlu1 %v6639_v2, %s6518_s10  ;;  %687 = vrot.lane.b32.xlu0 %v6639_v2, %s6517_s9 }
  0x74   : > { %948 = vrot.lane.b32.xlu1 %v6706_v3, %s6525_s17  ;;  %946 = vrot.lane.b32.xlu0 %v6608_v1, %s6525_s17 }
  0x78   : > { %980 = vrot.lane.b32.xlu1 %v6706_v3, %s9617_s20  ;;  %978 = vrot.lane.b32.xlu0 %v6608_v1, %s9617_s20 }
  0x7c   : > { %783 = vrot.lane.b32.xlu1 %v6639_v2, %s9609_s12  ;;  %751 = vrot.lane.b32.xlu0 %v6639_v2, %s6519_s11  ;;  %s6529_s12 = smov 84  }
  0x80   : > { %1012 = vrot.lane.b32.xlu1 %v6706_v3, %s9621_s21  ;;  %1010 = vrot.lane.b32.xlu0 %v6608_v1, %s9621_s21 }
  0x84   : > { %1044 = vrot.lane.b32.xlu1 %v6706_v3, %s9619_s22  ;;  %1042 = vrot.lane.b32.xlu0 %v6608_v1, %s9619_s22 }
  0x86   : > { %v6728_v4 = vpop.permute.xlu1 %401  ;;  %v6730_v5 = vpop.permute.xlu0 %365 }
  0x87   : > { %v410_v6 = vrot.slane %v6728_v4, 4  ;;  %v374_v9 = vrot.slane %v6730_v5, 4 }
  0x88   : > { %847 = vrot.lane.b32.xlu1 %v6639_v2, %s9611_s14  ;;  %815 = vrot.lane.b32.xlu0 %v6639_v2, %s6521_s13  ;;  %s6530_s14 = smov 83  }
  0x8a   : > { %v6737_v7 = vpop.permute.xlu1 %403  ;;  %v6739_v8 = vpop.permute.xlu0 %367 }
  0x8b   : > { %v411_v10 = vrot.slane %v6737_v7, 4  ;;  %v375_v11 = vrot.slane %v6739_v8, 4 }
  0x8c   : > { %1076 = vrot.lane.b32.xlu1 %v6706_v3, %s6529_s12  ;;  %1074 = vrot.lane.b32.xlu0 %v6608_v1, %s6529_s12 }
  0x8d   : > { %v417_v12 = vsel %vm378_vm0, %v410_v6, %v411_v10  ;;  %v382_v13 = vsel %vm378_vm0, %v374_v9, %v375_v11 }
  0x8e   : > { %v418_v14 = vsel %vm9788_vm1, %v6728_v4, %v417_v12  ;;  %v383_v15 = vsel %vm380_vm2, %v6730_v5, %v382_v13  ;;  %v6762_v16 = vpop.permute.xlu1 %435  ;;  %v6764_v17 = vpop.permute.xlu0 %433  ;;  %v6875_v12 = vld [vmem:[%s6598_s23 + $0x20] sm:$0xff] }
  0x8f   : > { %v443_v18 = vrot.slane %v6762_v16, 4  ;;  %v442_v19 = vrot.slane %v6764_v17, 4  ;;  %v5199_v20 = vcombine.high %v383_v15, %v418_v14  ;;  %v5198_v21 = vcombine.low %v383_v15, %v418_v14 }
  0x90   : > { %1108 = vrot.lane.b32.xlu1 %v6706_v3, %s6530_s14  ;;  %1106 = vrot.lane.b32.xlu0 %v6608_v1, %s6530_s14 }
  0x91   : > { %v449_v22 = vsel %vm378_vm0, %v442_v19, %v443_v18  ;;  %1956 = vmatprep.subr.bf16.mxu1 %v5199_v20 }
  0x92   : > { %v450_v23 = vsel %vm9793_vm3, %v6764_v17, %v449_v22  ;;  %v6779_v24 = vpop.permute.xlu1 %467  ;;  %v6781_v25 = vpop.permute.xlu0 %465  ;;  %1957 = vmatpush1.bf16.msra.mxu1 %v5198_v21 }
  0x93   : > { %v475_v26 = vrot.slane %v6779_v24, 4  ;;  %v474_v27 = vrot.slane %v6781_v25, 4 }
  0x94   : > { %911 = vrot.lane.b32.xlu1 %v6639_v2, %s9613_s16  ;;  %879 = vrot.lane.b32.xlu0 %v6639_v2, %s9615_s15  ;;  %s6531_s16 = smov 75   ;;  %s6532_s15 = smov 74  }
  0x95   : > { %v481_v28 = vsel %vm378_vm0, %v474_v27, %v475_v26 }
  0x96   : > { %v482_v29 = vsel %vm9660_vm4, %v6781_v25, %v481_v28  ;;  %v6796_v30 = vpop.permute.xlu1 %499  ;;  %v6798_v31 = vpop.permute.xlu0 %497 }
  0x97   : > { %v507_v32 = vrot.slane %v6796_v30, 4  ;;  %v506_v33 = vrot.slane %v6798_v31, 4  ;;  %v5207_v34 = vcombine.high %v450_v23, %v482_v29  ;;  %v5206_v35 = vcombine.low %v450_v23, %v482_v29  ;;  %v6903_v29 = vld [vmem:[%s9606_s3] sm:$0xff] }
  0x98   : > { %1140 = vrot.lane.b32.xlu1 %v6706_v3, %s6531_s16  ;;  %1138 = vrot.lane.b32.xlu0 %v6608_v1, %s6531_s16 }
  0x99   : > { %v513_v36 = vsel %vm378_vm0, %v506_v33, %v507_v32  ;;  %1958 = vmatprep.subr.bf16.mxu1 %v5207_v34 }
  0x9a   : > { %v514_v37 = vsel %vm9659_vm5, %v6798_v31, %v513_v36  ;;  %v6813_v38 = vpop.permute.xlu1 %531  ;;  %v6815_v39 = vpop.permute.xlu0 %529  ;;  %1959 = vmatpush1.bf16.msra.mxu1 %v5206_v35  ;;  %v6909_v36 = vcombine.high %v6903_v29, %v6903_v29 }
  0x9b   : > { %v9656_v40 = vrot.slane %v6813_v38, 4  ;;  %v538_v41 = vrot.slane %v6815_v39, 4 }
  0x9c   : > { %1172 = vrot.lane.b32.xlu1 %v6706_v3, %s6532_s15  ;;  %1170 = vrot.lane.b32.xlu0 %v6608_v1, %s6532_s15 }
  0x9d   : > { %v545_v42 = vsel %vm378_vm0, %v538_v41, %v9656_v40  ;;  %5311 = vmatprep.mubr.msk.bf16.mxu1 %vm1887_vm11, %v6909_v36  ;;  %5309 = vmatprep.mubr.msk.bf16.mxu0 %vm1887_vm11, %v6909_v36 }
  0x9e   : > { %v546_v43 = vsel %vm9623_vm6, %v6815_v39, %v545_v42  ;;  %v6830_v44 = vpop.permute.xlu1 %563  ;;  %v6832_v45 = vpop.permute.xlu0 %561 }
  0x9f   : > { %v9654_v46 = vrot.slane %v6830_v44, 4  ;;  %v570_v47 = vrot.slane %v6832_v45, 4  ;;  %v5215_v48 = vcombine.high %v514_v37, %v546_v43  ;;  %v5214_v49 = vcombine.low %v514_v37, %v546_v43 }
  0xa0   : > { %976 = vrot.lane.b32.xlu1 %v6601_v0, %s9617_s20  ;;  %944 = vrot.lane.b32.xlu0 %v6601_v0, %s6525_s17  ;;  %s6533_s20 = smov 73  }
  0xa1   : > { %v577_v50 = vsel %vm378_vm0, %v570_v47, %v9654_v46  ;;  %1960 = vmatprep.subr.bf16.mxu1 %v5215_v48 }
  0xa2   : > { %v578_v51 = vsel %vm9625_vm7, %v6832_v45, %v577_v50  ;;  %v6847_v52 = vpop.permute.xlu1 %595  ;;  %v6849_v53 = vpop.permute.xlu0 %593  ;;  %1961 = vmatpush1.bf16.msra.mxu1 %v5214_v49 }
  0xa3   : > { %v9652_v54 = vrot.slane %v6847_v52, 4  ;;  %v602_v55 = vrot.slane %v6849_v53, 4 }
  0xa4   : > { %1204 = vrot.lane.b32.xlu1 %v6706_v3, %s6533_s20  ;;  %1202 = vrot.lane.b32.xlu0 %v6608_v1, %s6533_s20 }
  0xa5   : > { %v609_v56 = vsel %vm378_vm0, %v602_v55, %v9652_v54 }
  0xa6   : > { %v610_v57 = vsel %vm9624_vm8, %v6849_v53, %v609_v56  ;;  %v400_v58 = vpop.permute.xlu1 %399  ;;  %v364_v59 = vpop.permute.xlu0 %363 }
  0xa7   : > { %v409_v60 = vrot.slane %v400_v58, 4  ;;  %v373_v61 = vrot.slane %v364_v59, 4  ;;  %v5223_v62 = vcombine.high %v578_v51, %v610_v57  ;;  %v5222_v63 = vcombine.low %v578_v51, %v610_v57 }
  0xa8   : > { %1040 = vrot.lane.b32.xlu1 %v6601_v0, %s9619_s22  ;;  %1008 = vrot.lane.b32.xlu0 %v6601_v0, %s9621_s21  ;;  %s6542_s21 = smov 99   ;;  %s6543_s22 = smov 91  }
  0xa9   : > { %v414_v1 = vsel %vm378_vm0, %v409_v60, %v410_v6  ;;  %v379_v2 = vsel %vm378_vm0, %v373_v61, %v374_v9  ;;  %1962 = vmatprep.subr.bf16.mxu1 %v5223_v62 }
  0xaa   : > { %v416_v13 = vsel %vm9788_vm1, %v400_v58, %v414_v1  ;;  %v381_v14 = vsel %vm380_vm2, %v364_v59, %v379_v2  ;;  %v6879_v15 = vpop.permute.xlu1 %627  ;;  %v6881_v20 = vpop.permute.xlu0 %625  ;;  %1963 = vmatpush1.bf16.msra.mxu1 %v5222_v63 }
  0xab   : > { %v9649_v4 = vrot.slane %v6879_v15, 4  ;;  %v634_v6 = vrot.slane %v6881_v20, 4  ;;  %v5197_v5 = vcombine.high %v381_v14, %v416_v13  ;;  %v5196_v21 = vcombine.low %v381_v14, %v416_v13 }
  0xac   : > { %371 = vrot.lane.b32.xlu1 %v6875_v12, %s6508_s25  ;;  %369 = vrot.lane.b32.xlu0 %v6706_v3, %s6508_s25 }
  0xad   : > { %v641_v9 = vsel %vm378_vm0, %v634_v6, %v9649_v4  ;;  %1915 = vmatprep.subr.bf16.mxu0 %v5197_v5 }
  0xae   : > { %v642_v22 = vsel %vm9629_vm9, %v6881_v20, %v641_v9  ;;  %v6896_v23 = vpop.permute.xlu1 %659  ;;  %v6898_v28 = vpop.permute.xlu0 %657  ;;  %1916 = vmatpush1.bf16.msra.mxu0 %v5196_v21 }
  0xaf   : > { %v9646_v34 = vrot.slane %v6896_v23, 4  ;;  %v666_v35 = vrot.slane %v6898_v28, 4 }
  0xb0   : > { %407 = vrot.lane.b32.xlu1 %v6875_v12, %s6507_s24  ;;  %405 = vrot.lane.b32.xlu0 %v6706_v3, %s6507_s24 }
  0xb1   : > { %v673_v37 = vsel %vm378_vm0, %v666_v35, %v9646_v34 }
  0xb2   : > { %v674_v42 = vsel %vm9626_vm10, %v673_v37, %v6896_v23  ;;  %v464_v43 = vpop.permute.xlu1 %463  ;;  %v432_v48 = vpop.permute.xlu0 %431 }
  0xb3   : > { %v473_v49 = vrot.slane %v464_v43, 4  ;;  %v441_v50 = vrot.slane %v432_v48, 4  ;;  %v5231_v51 = vcombine.high %v642_v22, %v674_v42  ;;  %v5230_v56 = vcombine.low %v642_v22, %v674_v42 }
  0xb4   : > { %1104 = vrot.lane.b32.xlu1 %v6601_v0, %s6530_s14  ;;  %1072 = vrot.lane.b32.xlu0 %v6601_v0, %s6529_s12 }
  0xb5   : > { %v478_v57 = vsel %vm378_vm0, %v473_v49, %v474_v27  ;;  %v446_v58 = vsel %vm378_vm0, %v441_v50, %v442_v19  ;;  %1964 = vmatprep.subr.bf16.mxu1 %v5231_v51 }
  0xb6   : > { %v480_v59 = vsel %vm9660_vm4, %v464_v43, %v478_v57  ;;  %v448_v60 = vsel %vm9793_vm3, %v432_v48, %v446_v58  ;;  %v6938_v61 = vpop.permute.xlu1 %691  ;;  %v6940_v62 = vpop.permute.xlu0 %689  ;;  %1965 = vmatpush1.bf16.msra.mxu1 %v5230_v56 }
  0xb7   : > { %v9645_v63 = vrot.slane %v6938_v61, 4  ;;  %v698_v25 = vrot.slane %v6940_v62, 4  ;;  %v5205_v27 = vcombine.high %v448_v60, %v480_v59  ;;  %v5204_v1 = vcombine.low %v448_v60, %v480_v59 }
  0xb8   : > { %439 = vrot.lane.b32.xlu1 %v6875_v12, %s6509_s26  ;;  %437 = vrot.lane.b32.xlu0 %v6706_v3, %s6509_s26 }
  0xb9   : > { %v705_v17 = vsel %vm378_vm0, %v698_v25, %v9645_v63  ;;  %1917 = vmatprep.subr.bf16.mxu0 %v5205_v27 }
  0xba   : > { %v706_v19 = vsel %vm9635_vm12, %v705_v17, %v6938_v61  ;;  %v6955_v2 = vpop.permute.xlu1 %723  ;;  %v6957_v13 = vpop.permute.xlu0 %721  ;;  %1918 = vmatpush1.bf16.msra.mxu0 %v5204_v1 }
  0xbb   : > { %v9644_v14 = vrot.slane %v6955_v2, 4  ;;  %v730_v5 = vrot.slane %v6957_v13, 4 }
  0xbc   : > { %471 = vrot.lane.b32.xlu1 %v6875_v12, %s6510_s27  ;;  %469 = vrot.lane.b32.xlu0 %v6706_v3, %s6510_s27 }
  0xbd   : > { %v737_v21 = vsel %vm378_vm0, %v730_v5, %v9644_v14 }
  0xbe   : > { %v738_v9 = vsel %vm9632_vm13, %v737_v21, %v6955_v2  ;;  %v528_v22 = vpop.permute.xlu1 %527  ;;  %v496_v37 = vpop.permute.xlu0 %495 }
  0xbf   : > { %v537_v42 = vrot.slane %v528_v22, 4  ;;  %v505_v43 = vrot.slane %v496_v37, 4  ;;  %v5239_v48 = vcombine.high %v706_v19, %v738_v9  ;;  %v5238_v49 = vcombine.low %v706_v19, %v738_v9 }
  0xc0   : > { %1168 = vrot.lane.b32.xlu1 %v6601_v0, %s6532_s15  ;;  %1136 = vrot.lane.b32.xlu0 %v6601_v0, %s6531_s16 }
  0xc1   : > { %v542_v50 = vsel %vm378_vm0, %v537_v42, %v538_v41  ;;  %v510_v51 = vsel %vm378_vm0, %v505_v43, %v506_v33  ;;  %1966 = vmatprep.subr.bf16.mxu1 %v5239_v48 }
  0xc2   : > { %v544_v56 = vsel %vm9623_vm6, %v528_v22, %v542_v50  ;;  %v512_v57 = vsel %vm9659_vm5, %v496_v37, %v510_v51  ;;  %v6984_v58 = vpop.permute.xlu1 %755  ;;  %v6986_v59 = vpop.permute.xlu0 %753  ;;  %1967 = vmatpush1.bf16.msra.mxu1 %v5238_v49  ;;  %vm9647_vm6 = vcmask 449536  }
  0xc3   : > { %v9637_v60 = vrot.slane %v6984_v58, 4  ;;  %v762_v39 = vrot.slane %v6986_v59, 4  ;;  %v5213_v41 = vcombine.high %v512_v57, %v544_v56  ;;  %v5212_v27 = vcombine.low %v512_v57, %v544_v56 }
  0xc4   : > { %503 = vrot.lane.b32.xlu1 %v6875_v12, %s9741_s28  ;;  %501 = vrot.lane.b32.xlu0 %v6706_v3, %s9741_s28 }
  0xc5   : > { %v769_v31 = vsel %vm378_vm0, %v762_v39, %v9637_v60  ;;  %1919 = vmatprep.subr.bf16.mxu0 %v5213_v41 }
  0xc6   : > { %v770_v33 = vsel %vm9641_vm14, %v769_v31, %v6984_v58  ;;  %v7001_v1 = vpop.permute.xlu1 %787  ;;  %v7003_v17 = vpop.permute.xlu0 %785  ;;  %1920 = vmatpush1.bf16.msra.mxu0 %v5212_v27 }
  0xc7   : > { %v9634_v19 = vrot.slane %v7001_v1, 4  ;;  %v794_v21 = vrot.slane %v7003_v17, 4 }
  0xc8   : > { %535 = vrot.lane.b32.xlu1 %v6875_v12, %s9743_s29  ;;  %533 = vrot.lane.b32.xlu0 %v6706_v3, %s9743_s29 }
  0xc9   : > { %v801_v9 = vsel %vm378_vm0, %v794_v21, %v9634_v19 }
  0xca   : > { %v802_v22 = vsel %vm9638_vm15, %v801_v9, %v7001_v1  ;;  %v592_v37 = vpop.permute.xlu1 %591  ;;  %v560_v42 = vpop.permute.xlu0 %559 }
  0xcb   : > { %v601_v43 = vrot.slane %v592_v37, 4  ;;  %v569_v48 = vrot.slane %v560_v42, 4  ;;  %v5247_v49 = vcombine.high %v770_v33, %v802_v22  ;;  %v5246_v50 = vcombine.low %v770_v33, %v802_v22 }
  0xcc   : > { %565 = vrot.lane.b32.xlu1 %v6706_v3, %s6513_s30  ;;  %1200 = vrot.lane.b32.xlu0 %v6601_v0, %s6533_s20 }
  0xcd   : > { %v606_v51 = vsel %vm378_vm0, %v601_v43, %v602_v55  ;;  %v574_v56 = vsel %vm378_vm0, %v569_v48, %v570_v47  ;;  %1968 = vmatprep.subr.bf16.mxu1 %v5247_v49 }
  0xce   : > { %v608_v57 = vsel %vm9624_vm8, %v592_v37, %v606_v51  ;;  %v576_v41 = vsel %vm9625_vm7, %v560_v42, %v574_v56  ;;  %v7030_v27 = vpop.permute.xlu1 %819  ;;  %v7032_v31 = vpop.permute.xlu0 %817  ;;  %1969 = vmatpush1.bf16.msra.mxu1 %v5246_v50  ;;  %vm9642_vm8 = vcmask 384000   ;;  %vm9655_vm7 = vcmask 375808  }
  0xcf   : > { %v9631_v0 = vrot.slane %v7030_v27, 4  ;;  %v826_v53 = vrot.slane %v7032_v31, 4  ;;  %v5221_v55 = vcombine.high %v576_v41, %v608_v57  ;;  %v5220_v33 = vcombine.low %v576_v41, %v608_v57 }
  0xd0   : > { %597 = vrot.lane.b32.xlu1 %v6706_v3, %s6514_s6  ;;  %567 = vrot.lane.b32.xlu0 %v6875_v12, %s6513_s30 }
  0xd1   : > { %v833_v45 = vsel %vm378_vm0, %v826_v53, %v9631_v0  ;;  %1921 = vmatprep.subr.bf16.mxu0 %v5221_v55 }
  0xd2   : > { %v834_v47 = vsel %vm9647_vm6, %v833_v45, %v7030_v27  ;;  %v7047_v9 = vpop.permute.xlu1 %851  ;;  %v7049_v22 = vpop.permute.xlu0 %849  ;;  %1922 = vmatpush1.bf16.msra.mxu0 %v5220_v33 }
  0xd3   : > { %v9628_v37 = vrot.slane %v7047_v9, 4  ;;  %v858_v42 = vrot.slane %v7049_v22, 4 }
  0xd4   : > { %629 = vrot.lane.b32.xlu1 %v6706_v3, %s6515_s7  ;;  %599 = vrot.lane.b32.xlu0 %v6875_v12, %s6514_s6 }
  0xd5   : > { %v865_v43 = vsel %vm378_vm0, %v858_v42, %v9628_v37 }
  0xd6   : > { %v866_v48 = vsel %vm9642_vm8, %v865_v43, %v7047_v9  ;;  %v656_v49 = vpop.permute.xlu1 %655  ;;  %v624_v50 = vpop.permute.xlu0 %623 }
  0xd7   : > { %v665_v51 = vrot.slane %v656_v49, 4  ;;  %v633_v56 = vrot.slane %v624_v50, 4  ;;  %v5255_v57 = vcombine.high %v834_v47, %v866_v48  ;;  %v5254_v41 = vcombine.low %v834_v47, %v866_v48 }
  0xd8   : > { %661 = vrot.lane.b32.xlu1 %v6706_v3, %s6516_s8  ;;  %631 = vrot.lane.b32.xlu0 %v6875_v12, %s6515_s7 }
  0xd9   : > { %v670_v55 = vsel %vm378_vm0, %v665_v51, %v666_v35  ;;  %v638_v33 = vsel %vm378_vm0, %v633_v56, %v634_v6  ;;  %1970 = vmatprep.subr.bf16.mxu1 %v5255_v57 }
  0xda   : > { %v672_v45 = vsel %vm9626_vm10, %v670_v55, %v6898_v28  ;;  %v640_v47 = vsel %vm9629_vm9, %v624_v50, %v638_v33  ;;  %v7077_v43 = vpop.permute.xlu1 %883  ;;  %v7079_v48 = vpop.permute.xlu0 %881  ;;  %1971 = vmatpush1.bf16.msra.mxu1 %v5254_v41  ;;  %vm9650_vm10 = vcmask 367616   ;;  %vm9658_vm9 = vcmask 777216  }
  0xdb   : > { %v9627_v49 = vrot.slane %v7077_v43, 4  ;;  %v890_v35 = vrot.slane %v7079_v48, 4  ;;  %v5229_v51 = vcombine.high %v640_v47, %v672_v45  ;;  %v5228_v20 = vcombine.low %v640_v47, %v672_v45 }
  0xdc   : > { %693 = vrot.lane.b32.xlu1 %v6706_v3, %s6517_s9  ;;  %663 = vrot.lane.b32.xlu0 %v6875_v12, %s6516_s8  ;;  %s9833_s8 = smov 56  }
  0xdd   : > { %v897_v6 = vsel %vm378_vm0, %v890_v35, %v9627_v49  ;;  %1923 = vmatprep.subr.bf16.mxu0 %v5229_v51 }
  0xde   : > { %v898_v28 = vsel %vm9655_vm7, %v897_v6, %v7077_v43  ;;  %v7094_v50 = vpop.permute.xlu1 %915  ;;  %v7096_v56 = vpop.permute.xlu0 %913  ;;  %1924 = vmatpush1.bf16.msra.mxu0 %v5228_v20 }
  0xdf   : > { %v9630_v57 = vrot.slane %v7094_v50, 4  ;;  %v922_v41 = vrot.slane %v7096_v56, 4 }
  0xe0   : > { %725 = vrot.lane.b32.xlu1 %v6706_v3, %s6518_s10  ;;  %695 = vrot.lane.b32.xlu0 %v6875_v12, %s6517_s9  ;;  %s9834_s9 = smov 47  }
  0xe1   : > { %v929_v55 = vsel %vm378_vm0, %v922_v41, %v9630_v57 }
  0xe2   : > { %v930_v33 = vsel %vm9650_vm10, %v929_v55, %v7094_v50  ;;  %v720_v45 = vpop.permute.xlu1 %719  ;;  %v688_v47 = vpop.permute.xlu0 %687 }
  0xe3   : > { %v729_v51 = vrot.slane %v720_v45, 4  ;;  %v697_v20 = vrot.slane %v688_v47, 4  ;;  %v5263_v6 = vcombine.high %v898_v28, %v930_v33  ;;  %v5262_v49 = vcombine.low %v898_v28, %v930_v33 }
  0xe4   : > { %757 = vrot.lane.b32.xlu1 %v6706_v3, %s6519_s11  ;;  %727 = vrot.lane.b32.xlu0 %v6875_v12, %s6518_s10  ;;  %s9835_s10 = smov 46  }
  0xe5   : > { %v734_v37 = vsel %vm378_vm0, %v729_v51, %v730_v5  ;;  %v702_v55 = vsel %vm378_vm0, %v697_v20, %v698_v25  ;;  %1972 = vmatprep.subr.bf16.mxu1 %v5263_v6 }
  0xe6   : > { %v736_v45 = vsel %vm9632_vm13, %v734_v37, %v6957_v13  ;;  %v704_v28 = vsel %vm9635_vm12, %v702_v55, %v6940_v62  ;;  %v7125_v33 = vpop.permute.xlu1 %948  ;;  %v7127_v47 = vpop.permute.xlu0 %946  ;;  %1973 = vmatpush1.bf16.msra.mxu1 %v5262_v49  ;;  %vm9657_vm13 = vcmask 769024   ;;  %vm1024_vm12 = vcmask 760832  }
  0xe7   : > { %v9633_v57 = vrot.slane %v7125_v33, 4  ;;  %v955_v5 = vrot.slane %v7127_v47, 4  ;;  %v5237_v51 = vcombine.high %v704_v28, %v736_v45  ;;  %v5236_v0 = vcombine.low %v704_v28, %v736_v45 }
  0xe8   : > { %789 = vrot.lane.b32.xlu1 %v6706_v3, %s9833_s8  ;;  %759 = vrot.lane.b32.xlu0 %v6875_v12, %s6519_s11  ;;  %s9836_s11 = smov 45  }
  0xe9   : > { %v962_v62 = vsel %vm378_vm0, %v955_v5, %v9633_v57  ;;  %1925 = vmatprep.subr.bf16.mxu0 %v5237_v51 }
  0xea   : > { %v963_v25 = vsel %vm9658_vm9, %v7127_v47, %v962_v62  ;;  %v7142_v13 = vpop.permute.xlu1 %980  ;;  %v7144_v37 = vpop.permute.xlu0 %978  ;;  %1926 = vmatpush1.bf16.msra.mxu0 %v5236_v0 }
  0xeb   : > { %v9636_v49 = vrot.slane %v7142_v13, 4  ;;  %v987_v20 = vrot.slane %v7144_v37, 4 }
  0xec   : > { %821 = vrot.lane.b32.xlu1 %v6706_v3, %s6521_s13  ;;  %791 = vrot.lane.b32.xlu0 %v6875_v12, %s9833_s8  ;;  %s6544_s8 = smov 90  }
  0xed   : > { %v994_v6 = vsel %vm378_vm0, %v987_v20, %v9636_v49 }
  0xee   : > { %v995_v0 = vsel %vm9657_vm13, %v7144_v37, %v994_v6  ;;  %v784_v55 = vpop.permute.xlu1 %783  ;;  %v752_v45 = vpop.permute.xlu0 %751 }
  0xef   : > { %v793_v28 = vrot.slane %v784_v55, 4  ;;  %v761_v51 = vrot.slane %v752_v45, 4  ;;  %v5271_v62 = vcombine.high %v963_v25, %v995_v0  ;;  %v5270_v57 = vcombine.low %v963_v25, %v995_v0 }
  0xf0   : > { %853 = vrot.lane.b32.xlu1 %v6706_v3, %s9834_s9  ;;  %823 = vrot.lane.b32.xlu0 %v6875_v12, %s6521_s13  ;;  %s9838_s13 = smov 93  }
  0xf1   : > { %v798_v19 = vsel %vm378_vm0, %v793_v28, %v794_v21  ;;  %v766_v6 = vsel %vm378_vm0, %v761_v51, %v762_v39  ;;  %1974 = vmatprep.subr.bf16.mxu1 %v5271_v62 }
  0xf2   : > { %v800_v55 = vsel %vm9638_vm15, %v798_v19, %v7003_v17  ;;  %v768_v25 = vsel %vm9641_vm14, %v766_v6, %v6986_v59  ;;  %v7173_v0 = vpop.permute.xlu1 %1012  ;;  %v7175_v45 = vpop.permute.xlu0 %1010  ;;  %1975 = vmatpush1.bf16.msra.mxu1 %v5270_v57  ;;  %vm1056_vm15 = vcmask 695296   ;;  %vm1088_vm14 = vcmask 687104  }
  0xf3   : > { %v9639_v49 = vrot.slane %v7173_v0, 4  ;;  %v1019_v21 = vrot.slane %v7175_v45, 4  ;;  %v5245_v28 = vcombine.high %v768_v25, %v800_v55  ;;  %v5244_v60 = vcombine.low %v768_v25, %v800_v55 }
  0xf4   : > { %885 = vrot.lane.b32.xlu1 %v6706_v3, %s9835_s10  ;;  %855 = vrot.lane.b32.xlu0 %v6875_v12, %s9834_s9  ;;  %s9735_s9 = smov 89  }
  0xf5   : > { %v1026_v59 = vsel %vm378_vm0, %v1019_v21, %v9639_v49  ;;  %1927 = vmatprep.subr.bf16.mxu0 %v5245_v28 }
  0xf6   : > { %v1027_v39 = vsel %vm1024_vm12, %v7175_v45, %v1026_v59  ;;  %v7190_v17 = vpop.permute.xlu1 %1044  ;;  %v7192_v19 = vpop.permute.xlu0 %1042  ;;  %1928 = vmatpush1.bf16.msra.mxu0 %v5244_v60 }
  0xf7   : > { %v9640_v57 = vrot.slane %v7190_v17, 4  ;;  %v1051_v51 = vrot.slane %v7192_v19, 4 }
  0xf8   : > { %917 = vrot.lane.b32.xlu1 %v6706_v3, %s9836_s11  ;;  %887 = vrot.lane.b32.xlu0 %v6875_v12, %s9835_s10  ;;  %s9737_s10 = smov 11  }
  0xf9   : > { %v1058_v62 = vsel %vm378_vm0, %v1051_v51, %v9640_v57  ;;  %v7218_v57 = vld [vmem:[%s6598_s23 + $0x28] sm:$0xf]  ;;  %s9837_s23 = smov 94  }
  0xfa   : > { %v1059_v60 = vsel %vm1056_vm15, %v7192_v19, %v1058_v62  ;;  %v848_v6 = vpop.permute.xlu1 %847  ;;  %v816_v55 = vpop.permute.xlu0 %815 }
  0xfb   : > { %v857_v25 = vrot.slane %v848_v6, 4  ;;  %v825_v28 = vrot.slane %v816_v55, 4  ;;  %v5279_v59 = vcombine.high %v1027_v39, %v1059_v60  ;;  %v5278_v49 = vcombine.low %v1027_v39, %v1059_v60 }
  0xfc   : > { %950 = vrot.lane.b32.xlu1 %v6875_v12, %s6525_s17  ;;  %919 = vrot.lane.b32.xlu0 %v6875_v12, %s9836_s11  ;;  %s9739_s11 = smov 10  }
  0xfd   : > { %v862_v3 = vsel %vm378_vm0, %v857_v25, %v858_v42  ;;  %v830_v62 = vsel %vm378_vm0, %v825_v28, %v826_v53  ;;  %1976 = vmatprep.subr.bf16.mxu1 %v5279_v59 }
  0xfe   : > { %v864_v39 = vsel %vm9642_vm8, %v862_v3, %v7049_v22  ;;  %v832_v60 = vsel %vm9647_vm6, %v830_v62, %v7032_v31  ;;  %v7224_v6 = vpop.permute.xlu1 %1076  ;;  %v7226_v55 = vpop.permute.xlu0 %1074  ;;  %1977 = vmatpush1.bf16.msra.mxu1 %v5278_v49  ;;  %vm1120_vm8 = vcmask 678912   ;;  %vm1152_vm6 = vcmask 613376  }
  0xff   : > { %v9643_v42 = vrot.slane %v7224_v6, 4  ;;  %v1083_v25 = vrot.slane %v7226_v55, 4  ;;  %v5253_v53 = vcombine.high %v832_v60, %v864_v39  ;;  %v5252_v28 = vcombine.low %v832_v60, %v864_v39 }
 0x100   : > { %982 = vrot.lane.b32.xlu1 %v6875_v12, %s9837_s23  ;;  %952 = vrot.lane.b32.xlu0 %v7218_v57, %s6525_s17  ;;  %s9839_s17 = smov 85  }
 0x101   : > { %v1090_v31 = vsel %vm378_vm0, %v1083_v25, %v9643_v42  ;;  %1929 = vmatprep.subr.bf16.mxu0 %v5253_v53 }
 0x102   : > { %v1091_v22 = vsel %vm1088_vm14, %v7226_v55, %v1090_v31  ;;  %v7241_v49 = vpop.permute.xlu1 %1108  ;;  %v7243_v59 = vpop.permute.xlu0 %1106  ;;  %1930 = vmatpush1.bf16.msra.mxu0 %v5252_v28 }
 0x103   : > { %v9648_v3 = vrot.slane %v7241_v49, 4  ;;  %v1115_v62 = vrot.slane %v7243_v59, 4 }
 0x104   : > { %1014 = vrot.lane.b32.xlu1 %v6875_v12, %s9838_s13  ;;  %984 = vrot.lane.b32.xlu0 %v7218_v57, %s9837_s23  ;;  %s6548_s23 = smov 9  }
 0x105   : > { %v1122_v39 = vsel %vm378_vm0, %v1115_v62, %v9648_v3 }
 0x106   : > { %v1123_v60 = vsel %vm1120_vm8, %v7243_v59, %v1122_v39  ;;  %v912_v53 = vpop.permute.xlu1 %911  ;;  %v880_v28 = vpop.permute.xlu0 %879 }
 0x107   : > { %v921_v31 = vrot.slane %v912_v53, 4  ;;  %v889_v42 = vrot.slane %v880_v28, 4  ;;  %v5287_v14 = vcombine.high %v1091_v22, %v1123_v60  ;;  %v5286_v63 = vcombine.low %v1091_v22, %v1123_v60 }
 0x108   : > { %1046 = vrot.lane.b32.xlu1 %v6875_v12, %s9839_s17  ;;  %1016 = vrot.lane.b32.xlu0 %v7218_v57, %s9838_s13  ;;  %s6549_s13 = smov 1  }
 0x109   : > { %v926_v34 = vsel %vm378_vm0, %v921_v31, %v922_v41  ;;  %v894_v39 = vsel %vm378_vm0, %v889_v42, %v890_v35  ;;  %1978 = vmatprep.subr.bf16.mxu1 %v5287_v14 }
 0x10a   : > { %v928_v53 = vsel %vm9650_vm10, %v926_v34, %v7096_v56  ;;  %v896_v22 = vsel %vm9655_vm7, %v894_v39, %v7079_v48  ;;  %v7272_v60 = vpop.permute.xlu1 %1140  ;;  %v7274_v28 = vpop.permute.xlu0 %1138  ;;  %1979 = vmatpush1.bf16.msra.mxu1 %v5286_v63  ;;  %vm1184_vm10 = vcmask 605184   ;;  %vm1216_vm7 = vcmask 596992  }
 0x10b   : > { %v9651_v3 = vrot.slane %v7272_v60, 4  ;;  %v1147_v41 = vrot.slane %v7274_v28, 4  ;;  %v5261_v31 = vcombine.high %v896_v22, %v928_v53  ;;  %v5260_v4 = vcombine.low %v896_v22, %v928_v53 }
 0x10c   : > { %1078 = vrot.lane.b32.xlu1 %v6875_v12, %s6529_s12  ;;  %1048 = vrot.lane.b32.xlu0 %v7218_v57, %s9839_s17  ;;  %s6550_s17 = smov 127  }
 0x10d   : > { %v1154_v34 = vsel %vm378_vm0, %v1147_v41, %v9651_v3  ;;  %1931 = vmatprep.subr.bf16.mxu0 %v5261_v31 }
 0x10e   : > { %v1155_v63 = vsel %vm1152_vm6, %v7274_v28, %v1154_v34  ;;  %v7289_v14 = vpop.permute.xlu1 %1172  ;;  %v7291_v48 = vpop.permute.xlu0 %1170  ;;  %1932 = vmatpush1.bf16.msra.mxu0 %v5260_v4 }
 0x10f   : > { %v9653_v35 = vrot.slane %v7289_v14, 4  ;;  %v1179_v56 = vrot.slane %v7291_v48, 4 }
 0x110   : > { %1110 = vrot.lane.b32.xlu1 %v6875_v12, %s6530_s14  ;;  %1080 = vrot.lane.b32.xlu0 %v7218_v57, %s6529_s12  ;;  %s6537_s12 = smov 110  }
 0x111   : > { %v1186_v42 = vsel %vm378_vm0, %v1179_v56, %v9653_v35 }
 0x112   : > { %v1187_v4 = vsel %vm1184_vm10, %v7291_v48, %v1186_v42  ;;  %v977_v39 = vpop.permute.xlu1 %976  ;;  %v945_v53 = vpop.permute.xlu0 %944 }
 0x113   : > { %v986_v22 = vrot.slane %v977_v39, 4  ;;  %v954_v31 = vrot.slane %v945_v53, 4  ;;  %v5295_v34 = vcombine.high %v1155_v63, %v1187_v4  ;;  %v5294_v3 = vcombine.low %v1155_v63, %v1187_v4 }
 0x114   : > { %1142 = vrot.lane.b32.xlu1 %v6875_v12, %s6531_s16  ;;  %1112 = vrot.lane.b32.xlu0 %v7218_v57, %s6530_s14  ;;  %s6538_s14 = smov 111  }
 0x115   : > { %v991_v54 = vsel %vm378_vm0, %v986_v22, %v987_v20  ;;  %v959_v42 = vsel %vm378_vm0, %v954_v31, %v955_v5  ;;  %1980 = vmatprep.subr.bf16.mxu1 %v5295_v34 }
 0x116   : > { %v993_v35 = vsel %vm9657_vm13, %v977_v39, %v991_v54  ;;  %v961_v46 = vsel %vm9658_vm9, %v945_v53, %v959_v42  ;;  %v7318_v63 = vpop.permute.xlu1 %1204  ;;  %v7320_v4 = vpop.permute.xlu0 %1202  ;;  %1981 = vmatpush1.bf16.msra.mxu1 %v5294_v3  ;;  %vm396_vm13 = vcmask 850948  }
 0x117   : > { %v1212_v40 = vrot.slane %v7318_v63, 4  ;;  %v1211_v37 = vrot.slane %v7320_v4, 4  ;;  %v5269_v20 = vcombine.high %v961_v46, %v993_v35  ;;  %v5268_v22 = vcombine.low %v961_v46, %v993_v35  ;;  %vm7355_vm9 = vmor %vm396_vm13, %vm378_vm0 }
 0x118   : > { %1174 = vrot.lane.b32.xlu1 %v6875_v12, %s6532_s15  ;;  %1144 = vrot.lane.b32.xlu0 %v7218_v57, %s6531_s16  ;;  %s6540_s16 = smov 101  }
 0x119   : > { %v1218_v54 = vsel %vm378_vm0, %v1211_v37, %v1212_v40  ;;  %1933 = vmatprep.subr.bf16.mxu0 %v5269_v20  ;;  %v7349_v20 = vcombine.low %v6903_v29, %v6903_v29 }
 0x11a   : > { %v1219_v47 = vsel %vm1216_vm7, %v7320_v4, %v1218_v54  ;;  %v1041_v5 = vpop.permute.xlu1 %1040  ;;  %v1009_v3 = vpop.permute.xlu0 %1008  ;;  %1934 = vmatpush1.bf16.msra.mxu0 %v5268_v22 }
 0x11b   : > { %v1050_v46 = vrot.slane %v1041_v5, 4  ;;  %v1018_v35 = vrot.slane %v1009_v3, 4  ;;  %v5303_v39 = vcombine.high %v1219_v47, %v1219_v47  ;;  %v5302_v53 = vcombine.low %v1219_v47, %v1219_v47 }
 0x11c   : > { %1206 = vrot.lane.b32.xlu1 %v6875_v12, %s6533_s20  ;;  %1176 = vrot.lane.b32.xlu0 %v7218_v57, %s6532_s15  ;;  %s6539_s15 = smov 109  }
 0x11d   : > { %v1055_v31 = vsel %vm378_vm0, %v1050_v46, %v1051_v51  ;;  %v1023_v34 = vsel %vm378_vm0, %v1018_v35, %v1019_v21  ;;  %5310 = vmatprep.subr.msk.bf16.mxu1 %vm378_vm0, %v5303_v39  ;;  %v1898_v42 = vsel %vm378_vm0, %v5302_v53, 0  ;;  %v9840_v21 = vmov 0 }
 0x11e   : > { %v1057_v12 = vsel %vm1056_vm15, %v1041_v5, %v1055_v31  ;;  %v1025_v22 = vsel %vm1024_vm12, %v1009_v3, %v1023_v34  ;;  %v372_v54 = vpop.permute.xlu1 %371  ;;  %v370_v19 = vpop.permute.xlu0 %369  ;;  %1983 = vmatpush1.bf16.msra.mxu1 %v1898_v42  ;;  %v9841_v21 = vsel %vm7355_vm9, 4294967295, %v9840_v21 }
 0x11f   : > { %v377_v51 = vrot.slane %v372_v54, 4  ;;  %v376_v47 = vrot.slane %v370_v19, 4  ;;  %v5277_v45 = vcombine.high %v1025_v22, %v1057_v12  ;;  %v5276_v46 = vcombine.low %v1025_v22, %v1057_v12  ;;  %9842 = vst [vmem:[#allocation5_spill] sm:$0xff] %v9841_v21  ;;  %v321_v21 = vld [vmem:[%s9605_s2 + $0x2c0] sm:$0xff] }
 0x120   : > { %1208 = vrot.lane.b32.xlu0 %v7218_v57, %s6533_s20  ;;  %s6541_s20 = smov 100  }
 0x121   : > { %v384_v29 = vsel %vm378_vm0, %v375_v11, %v376_v47  ;;  %v386_v5 = vsel %vm378_vm0, %v376_v47, %v377_v51  ;;  %1935 = vmatprep.subr.bf16.mxu0 %v5277_v45  ;;  %1989 = vmatmul.mubr.bf16.vlgmr.msra.gmra.mrb[0].mxu1 %v7349_v20 }
 0x122   : > { %v7368_v3 = vsel %vm380_vm2, %v6739_v8, %v384_v29  ;;  %v387_v35 = vsel %vm380_vm2, %v370_v19, %v386_v5  ;;  %v408_v39 = vpop.permute.xlu1 %407  ;;  %v406_v53 = vpop.permute.xlu0 %405  ;;  %1936 = vmatpush1.bf16.msra.mxu0 %v5276_v46  ;;  %5315 = vmatprep.mubr.msk.bf16.mxu1 %vm1887_vm11, %v6909_v36 }
 0x123   : > { %398 = vst.msk [vmem:[#allocation2 + $0x18] sm:$0xff] %vm7355_vm9, %v387_v35  ;;  %v413_v11 = vrot.slane %v408_v39, 4  ;;  %v412_v57 = vrot.slane %v406_v53, 4 }
 0x125   : > { %v419_v31 = vsel %vm378_vm0, %v411_v10, %v412_v57  ;;  %v421_v8 = vsel %vm378_vm0, %v412_v57, %v413_v11 }
 0x126   : > { %v7381_v34 = vsel %vm9788_vm1, %v6737_v7, %v419_v31  ;;  %v422_v42 = vsel %vm9788_vm1, %v406_v53, %v421_v8  ;;  %v1105_v12 = vpop.permute.xlu1 %1104  ;;  %v1073_v22 = vpop.permute.xlu0 %1072 }
 0x127   : > { %430 = vst.msk [vmem:[#allocation2 + $0x38] sm:$0xff] %vm7355_vm9, %v422_v42  ;;  %v1114_v54 = vrot.slane %v1105_v12, 4  ;;  %v1082_v19 = vrot.slane %v1073_v22, 4 }
 0x129   : > { %v1119_v51 = vsel %vm378_vm0, %v1114_v54, %v1115_v62  ;;  %v1087_v10 = vsel %vm378_vm0, %v1082_v19, %v1083_v25 }
 0x12a   : > { %v1121_v7 = vsel %vm1120_vm8, %v1105_v12, %v1119_v51  ;;  %v1089_v47 = vsel %vm1088_vm14, %v1073_v22, %v1087_v10  ;;  %v440_v45 = vpop.permute.xlu1 %439  ;;  %v438_v46 = vpop.permute.xlu0 %437  ;;  %v1236_v57 = vld [vmem:[#allocation2 + $0x18] sm:$0xff] }
 0x12b   : > { %v445_v29 = vrot.slane %v440_v45, 4  ;;  %v444_v5 = vrot.slane %v438_v46, 4  ;;  %v5285_v35 = vcombine.high %v1089_v47, %v1121_v7  ;;  %v5284_v39 = vcombine.low %v1089_v47, %v1121_v7 }
 0x12d   : > { %v451_v59 = vsel %vm378_vm0, %v443_v18, %v444_v5  ;;  %v453_v62 = vsel %vm378_vm0, %v444_v5, %v445_v29  ;;  %1937 = vmatprep.subr.bf16.mxu0 %v5285_v35 }
 0x12e   : > { %v7400_v55 = vsel %vm9793_vm3, %v6762_v16, %v451_v59  ;;  %v454_v25 = vsel %vm9793_vm3, %v438_v46, %v453_v62  ;;  %v472_v53 = vpop.permute.xlu1 %471  ;;  %v470_v11 = vpop.permute.xlu0 %469  ;;  %v1240_v31 = vld [vmem:[#allocation2 + $0x38] sm:$0xff]  ;;  %1938 = vmatpush1.bf16.msra.mxu0 %v5284_v39 }
 0x12f   : > { %462 = vst.msk [vmem:[#allocation2 + $0x58] sm:$0xff] %vm7355_vm9, %v454_v25  ;;  %v477_v8 = vrot.slane %v472_v53, 4  ;;  %v476_v42 = vrot.slane %v470_v11, 4  ;;  %v5202_v18 = vcombine.low %v1236_v57, %v1240_v31  ;;  %v5203_v12 = vcombine.high %v1236_v57, %v1240_v31 }
 0x131   : > { %v483_v22 = vsel %vm378_vm0, %v475_v26, %v476_v42  ;;  %v485_v16 = vsel %vm378_vm0, %v476_v42, %v477_v8  ;;  %2038 = vmatprep.subr.bf16.mxu1 %v5203_v12 }
 0x132   : > { %v7411_v54 = vsel %vm9660_vm4, %v6779_v24, %v483_v22  ;;  %v486_v19 = vsel %vm9660_vm4, %v470_v11, %v485_v16  ;;  %v1169_v51 = vpop.permute.xlu1 %1168  ;;  %2039 = vmatpush1.bf16.msra.mxu1 %v5202_v18  ;;  %v1137_v10 = vpop.permute.xlu0 %1136  ;;  %v9843_v18 = vrot.slane %v6813_v38, 4 }
 0x133   : > { %494 = vst.msk [vmem:[#allocation2 + $0x78] sm:$0xff] %vm7355_vm9, %v486_v19  ;;  %v1178_v7 = vrot.slane %v1169_v51, 4  ;;  %v1146_v47 = vrot.slane %v1137_v10, 4 }
 0x135   : > { %v1183_v26 = vsel %vm378_vm0, %v1178_v7, %v1179_v56  ;;  %v1151_v45 = vsel %vm378_vm0, %v1146_v47, %v1147_v41  ;;  %v9846_v47 = vrot.slane %v6830_v44, 4 }
 0x136   : > { %v1185_v24 = vsel %vm1184_vm10, %v1169_v51, %v1183_v26  ;;  %v1153_v46 = vsel %vm1152_vm6, %v1137_v10, %v1151_v45  ;;  %v504_v29 = vpop.permute.xlu1 %503  ;;  %v502_v5 = vpop.permute.xlu0 %501  ;;  %v1244_v11 = vld [vmem:[#allocation2 + $0x58] sm:$0xff] }
 0x137   : > { %v509_v35 = vrot.slane %v504_v29, 4  ;;  %v508_v39 = vrot.slane %v502_v5, 4  ;;  %v5293_v59 = vcombine.high %v1153_v46, %v1185_v24  ;;  %v5292_v62 = vcombine.low %v1153_v46, %v1185_v24 }
 0x139   : > { %v515_v48 = vsel %vm378_vm0, %v507_v32, %v508_v39  ;;  %v517_v56 = vsel %vm378_vm0, %v508_v39, %v509_v35  ;;  %1939 = vmatprep.subr.bf16.mxu0 %v5293_v59 }
 0x13a   : > { %v7430_v28 = vsel %vm9659_vm5, %v6796_v30, %v515_v48  ;;  %v518_v41 = vsel %vm9659_vm5, %v502_v5, %v517_v56  ;;  %v536_v25 = vpop.permute.xlu1 %535  ;;  %v534_v53 = vpop.permute.xlu0 %533  ;;  %v1248_v57 = vld [vmem:[#allocation2 + $0x78] sm:$0xff]  ;;  %1940 = vmatpush1.bf16.msra.mxu0 %v5292_v62  ;;  %vm9844_vm5 = vcmask 220160   ;;  %v9848_v62 = vrot.slane %v6847_v52, 4 }
 0x13b   : > { %526 = vst.msk [vmem:[#allocation2 + $0x98] sm:$0xff] %vm7355_vm9, %v518_v41  ;;  %v541_v31 = vrot.slane %v536_v25, 4  ;;  %v540_v8 = vrot.slane %v534_v53, 4  ;;  %v5210_v32 = vcombine.low %v1244_v11, %v1248_v57  ;;  %v5211_v42 = vcombine.high %v1244_v11, %v1248_v57  ;;  %vm9845_vm4 = vmmov %vm9844_vm5 }
 0x13d   : > { %v547_v12 = vsel %vm378_vm0, %v9843_v18, %v540_v8  ;;  %v549_v30 = vsel %vm378_vm0, %v540_v8, %v541_v31  ;;  %2040 = vmatprep.subr.bf16.mxu1 %v5211_v42  ;;  %v5200_v18 = vcombine.low %v7368_v3, %v7381_v34 }
 0x13e   : > { %v7441_v22 = vsel %vm9844_vm5, %v6813_v38, %v547_v12  ;;  %v550_v16 = vsel %vm9845_vm4, %v534_v53, %v549_v30  ;;  %v566_v19 = vpop.permute.xlu1 %565  ;;  %2041 = vmatpush1.bf16.msra.mxu1 %v5210_v32  ;;  %v1201_v51 = vpop.permute.xlu0 %1200  ;;  %vm9847_vm5 = vcmask 154624   ;;  %vm9849_vm4 = vcmask 146432  }
 0x13f   : > { %558 = vst.msk [vmem:[#allocation2 + $0xb8] sm:$0xff] %vm7355_vm9, %v550_v16  ;;  %v572_v10 = vrot.slane %v566_v19, 4  ;;  %v1210_v7 = vrot.slane %v1201_v51, 4  ;;  %v5209_v16 = vcombine.high %v7400_v55, %v7411_v54 }
 0x141   : > { %v579_v26 = vsel %vm378_vm0, %v9846_v47, %v572_v10  ;;  %v1215_v45 = vsel %vm378_vm0, %v1210_v7, %v1211_v37  ;;  %v5208_v47 = vcombine.low %v7400_v55, %v7411_v54  ;;  %v9856_v54 = vrot.slane %v6938_v61, 4 }
 0x142   : > { %v7454_v38 = vsel %vm9847_vm5, %v6830_v44, %v579_v26  ;;  %v1217_v24 = vsel %vm1216_vm7, %v1201_v51, %v1215_v45  ;;  %v598_v46 = vpop.permute.xlu1 %597  ;;  %v568_v29 = vpop.permute.xlu0 %567  ;;  %v5201_v44 = vcombine.high %v7368_v3, %v7381_v34  ;;  %v1252_v11 = vld [vmem:[#allocation2 + $0x98] sm:$0xff] }
 0x143   : > { %v604_v5 = vrot.slane %v598_v46, 4  ;;  %v573_v35 = vrot.slane %v568_v29, 4  ;;  %v5301_v39 = vcombine.high %v1217_v24, %v1217_v24  ;;  %v5300_v59 = vcombine.low %v1217_v24, %v1217_v24 }
 0x144   : > { %v5217_v24 = vcombine.high %v7430_v28, %v7441_v22 }
 0x145   : > { %v611_v48 = vsel %vm378_vm0, %v9848_v62, %v604_v5  ;;  %v581_v4 = vsel %vm378_vm0, %v572_v10, %v573_v35  ;;  %5308 = vmatprep.subr.msk.bf16.mxu0 %vm378_vm0, %v5301_v39  ;;  %v1892_v37 = vsel %vm378_vm0, %v5300_v59, 0 }
 0x146   : > { %v7467_v56 = vsel %vm9849_vm4, %v6847_v52, %v611_v48  ;;  %v582_v41 = vsel %vm9847_vm5, %v566_v19, %v581_v4  ;;  %v630_v25 = vpop.permute.xlu1 %629  ;;  %v600_v53 = vpop.permute.xlu0 %599  ;;  %v1256_v57 = vld [vmem:[#allocation2 + $0xb8] sm:$0xff]  ;;  %1942 = vmatpush1.bf16.msra.mxu0 %v1892_v37  ;;  %v9850_v52 = vrot.slane %v6879_v15, 4  ;;  %vm9851_vm4 = vcmask 138240  }
 0x147   : > { %590 = vst.msk [vmem:[#allocation2 + $0xd8] sm:$0xff] %vm7355_vm9, %v582_v41  ;;  %v636_v31 = vrot.slane %v630_v25, 4  ;;  %v605_v8 = vrot.slane %v600_v53, 4  ;;  %v5218_v32 = vcombine.low %v1252_v11, %v1256_v57  ;;  %v5219_v42 = vcombine.high %v1252_v11, %v1256_v57  ;;  %1997 = vmatprep.subr.bf16.mxu0 %v5201_v44 }
 0x148   : > { %vm9852_vm5 = vcmask 146432   ;;  %v5225_v62 = vcombine.high %v7454_v38, %v7467_v56  ;;  %v5224_v11 = vcombine.low %v7454_v38, %v7467_v56  ;;  %v9859_v57 = vrot.slane %v6955_v2, 4 }
 0x149   : > { %v643_v12 = vsel %vm378_vm0, %v9850_v52, %v636_v31  ;;  %v613_v30 = vsel %vm378_vm0, %v604_v5, %v605_v8  ;;  %2042 = vmatprep.subr.bf16.mxu1 %v5219_v42  ;;  %1948 = vmatmul.mubr.bf16.vlgmr.msra.gmra.mrb[0].mxu0 %v7349_v20 }
 0x14a   : > { %v7483_v19 = vsel %vm9851_vm4, %v6879_v15, %v643_v12  ;;  %v614_v51 = vsel %vm9852_vm5, %v598_v46, %v613_v30  ;;  %v662_v10 = vpop.permute.xlu1 %661  ;;  %2043 = vmatpush1.bf16.msra.mxu1 %v5218_v32  ;;  %v632_v3 = vpop.permute.xlu0 %631  ;;  %1998 = vmatpush1.bf16.msra.mxu0 %v5200_v18  ;;  %v9853_v15 = vrot.slane %v6896_v23, 4  ;;  %vm9854_vm4 = vcmask 547840  }
 0x14b   : > { %622 = vst.msk [vmem:[#allocation2 + $0xf8] sm:$0xff] %vm7355_vm9, %v614_v51  ;;  %v668_v34 = vrot.slane %v662_v10, 4  ;;  %v637_v7 = vrot.slane %v632_v3, 4  ;;  %1999 = vmatprep.subr.bf16.mxu0 %v5209_v16  ;;  %5313 = vmatprep.mubr.msk.bf16.mxu0 %vm1887_vm11, %v6909_v36  ;;  %vm9855_vm5 = vcmask 138240   ;;  %v5216_v23 = vcombine.low %v7430_v28, %v7441_v22 }
 0x14c   : > { %v9862_v30 = vrot.slane %v6984_v58, 4 }
 0x14d   : > { %v675_v26 = vsel %vm378_vm0, %v9853_v15, %v668_v34  ;;  %v645_v45 = vsel %vm378_vm0, %v636_v31, %v637_v7 }
 0x14e   : > { %v676_v46 = vsel %vm9854_vm4, %v675_v26, %v662_v10  ;;  %v646_v29 = vsel %vm9855_vm5, %v630_v25, %v645_v45  ;;  %v694_v5 = vpop.permute.xlu1 %693  ;;  %v664_v35 = vpop.permute.xlu0 %663  ;;  %2000 = vmatpush1.bf16.msra.mxu0 %v5208_v47  ;;  %vm9857_vm4 = vcmask 539648   ;;  %vm9858_vm5 = vcmask 547840   ;;  %v1260_v41 = vld [vmem:[#allocation2 + $0xd8] sm:$0xff] }
 0x14f   : > { %654 = vst.msk [vmem:[#allocation2 + $0x118] sm:$0xff] %vm7355_vm9, %v646_v29  ;;  %v700_v36 = vrot.slane %v694_v5, 4  ;;  %v669_v55 = vrot.slane %v664_v35, 4  ;;  %2001 = vmatprep.subr.bf16.mxu0 %v5217_v24  ;;  %v5233_v32 = vcombine.high %v7483_v19, %v676_v46  ;;  %v5232_v56 = vcombine.low %v7483_v19, %v676_v46 }
 0x150   : > { %v9865_v29 = vrot.slane %v7001_v1, 4 }
 0x151   : > { %v707_v39 = vsel %vm378_vm0, %v9856_v54, %v700_v36  ;;  %v677_v59 = vsel %vm378_vm0, %v668_v34, %v669_v55 }
 0x152   : > { %v708_v48 = vsel %vm9857_vm4, %v707_v39, %v694_v5  ;;  %v678_v4 = vsel %vm9858_vm5, %v677_v59, %v664_v35  ;;  %v726_v37 = vpop.permute.xlu1 %725  ;;  %v696_v44 = vpop.permute.xlu0 %695  ;;  %v1264_v25 = vld [vmem:[#allocation2 + $0xf8] sm:$0xff]  ;;  %2002 = vmatpush1.bf16.msra.mxu0 %v5216_v23  ;;  %vm9860_vm4 = vcmask 531456   ;;  %vm9861_vm5 = vcmask 539648  }
 0x153   : > { %686 = vst.msk [vmem:[#allocation2 + $0x138] sm:$0xff] %vm7355_vm9, %v678_v4  ;;  %v732_v61 = vrot.slane %v726_v37, 4  ;;  %v701_v28 = vrot.slane %v696_v44, 4  ;;  %v5226_v22 = vcombine.low %v1260_v41, %v1264_v25  ;;  %v5227_v53 = vcombine.high %v1260_v41, %v1264_v25  ;;  %2003 = vmatprep.subr.bf16.mxu0 %v5225_v62 }
 0x155   : > { %v739_v31 = vsel %vm378_vm0, %v9859_v57, %v732_v61  ;;  %v709_v8 = vsel %vm378_vm0, %v700_v36, %v701_v28  ;;  %2044 = vmatprep.subr.bf16.mxu1 %v5227_v53 }
 0x156   : > { %v740_v42 = vsel %vm9860_vm4, %v739_v31, %v726_v37  ;;  %v710_v18 = vsel %vm9861_vm5, %v709_v8, %v696_v44  ;;  %v758_v52 = vpop.permute.xlu1 %757  ;;  %2045 = vmatpush1.bf16.msra.mxu1 %v5226_v22  ;;  %v728_v12 = vpop.permute.xlu0 %727  ;;  %2004 = vmatpush1.bf16.msra.mxu0 %v5224_v11  ;;  %vm9863_vm4 = vcmask 465920   ;;  %vm9864_vm5 = vcmask 531456   ;;  %v1268_v15 = vld [vmem:[#allocation2 + $0x118] sm:$0xff] }
 0x157   : > { %718 = vst.msk [vmem:[#allocation2 + $0x158] sm:$0xff] %vm7355_vm9, %v710_v18  ;;  %v764_v38 = vrot.slane %v758_v52, 4  ;;  %v733_v2 = vrot.slane %v728_v12, 4  ;;  %2005 = vmatprep.subr.bf16.mxu0 %v5233_v32  ;;  %v5241_v10 = vcombine.high %v708_v48, %v740_v42  ;;  %v5240_v46 = vcombine.low %v708_v48, %v740_v42 }
 0x158   : > { %v9868_v48 = vrot.slane %v7030_v27, 4  ;;  %v9871_v31 = vrot.slane %v7047_v9, 4  ;;  %v9874_v9 = vrot.slane %v7077_v43, 4 }
 0x159   : > { %v771_v16 = vsel %vm378_vm0, %v9862_v30, %v764_v38  ;;  %v741_v51 = vsel %vm378_vm0, %v732_v61, %v733_v2 }
 0x15a   : > { %v772_v3 = vsel %vm9863_vm4, %v771_v16, %v758_v52  ;;  %v742_v34 = vsel %vm9864_vm5, %v741_v51, %v728_v12  ;;  %v790_v7 = vpop.permute.xlu1 %789  ;;  %v760_v47 = vpop.permute.xlu0 %759  ;;  %v1272_v26 = vld [vmem:[#allocation2 + $0x138] sm:$0xff]  ;;  %2006 = vmatpush1.bf16.msra.mxu0 %v5232_v56  ;;  %vm9866_vm4 = vcmask 457728   ;;  %vm9867_vm5 = vcmask 465920  }
 0x15b   : > { %750 = vst.msk [vmem:[#allocation2 + $0x178] sm:$0xff] %vm7355_vm9, %v742_v34  ;;  %v796_v19 = vrot.slane %v790_v7, 4  ;;  %v765_v45 = vrot.slane %v760_v47, 4  ;;  %v5234_v58 = vcombine.low %v1268_v15, %v1272_v26  ;;  %v5235_v24 = vcombine.high %v1268_v15, %v1272_v26  ;;  %2007 = vmatprep.subr.bf16.mxu0 %v5241_v10 }
 0x15d   : > { %v803_v5 = vsel %vm378_vm0, %v9865_v29, %v796_v19  ;;  %v773_v35 = vsel %vm378_vm0, %v764_v38, %v765_v45  ;;  %2046 = vmatprep.subr.bf16.mxu1 %v5235_v24 }
 0x15e   : > { %v804_v36 = vsel %vm9866_vm4, %v803_v5, %v790_v7  ;;  %v774_v55 = vsel %vm9867_vm5, %v773_v35, %v760_v47  ;;  %v822_v23 = vpop.permute.xlu1 %821  ;;  %2047 = vmatpush1.bf16.msra.mxu1 %v5234_v58  ;;  %v792_v54 = vpop.permute.xlu0 %791  ;;  %2008 = vmatpush1.bf16.msra.mxu0 %v5240_v46  ;;  %vm9869_vm4 = vcmask 449536   ;;  %vm9870_vm5 = vcmask 457728   ;;  %v1276_v28 = vld [vmem:[#allocation2 + $0x158] sm:$0xff] }
 0x15f   : > { %782 = vst.msk [vmem:[#allocation2 + $0x198] sm:$0xff] %vm7355_vm9, %v774_v55  ;;  %v828_v39 = vrot.slane %v822_v23, 4  ;;  %v797_v59 = vrot.slane %v792_v54, 4  ;;  %v5248_v62 = vcombine.low %v772_v3, %v804_v36  ;;  %v5249_v1 = vcombine.high %v772_v3, %v804_v36 }
 0x160   : > { %v9877_v58 = vrot.slane %v7094_v50, 4  ;;  %v9880_v50 = vrot.slane %v7125_v33, 4 }
 0x161   : > { %v835_v4 = vsel %vm378_vm0, %v9868_v48, %v828_v39  ;;  %v805_v37 = vsel %vm378_vm0, %v796_v19, %v797_v59  ;;  %2009 = vmatprep.subr.bf16.mxu0 %v5249_v1 }
 0x162   : > { %v836_v44 = vsel %vm9869_vm4, %v835_v4, %v822_v23  ;;  %v806_v41 = vsel %vm9870_vm5, %v805_v37, %v792_v54  ;;  %v854_v25 = vpop.permute.xlu1 %853  ;;  %v824_v61 = vpop.permute.xlu0 %823  ;;  %v1280_v22 = vld [vmem:[#allocation2 + $0x178] sm:$0xff]  ;;  %2010 = vmatpush1.bf16.msra.mxu0 %v5248_v62  ;;  %vm9872_vm4 = vcmask 384000   ;;  %vm9873_vm5 = vcmask 449536  }
 0x163   : > { %814 = vst.msk [vmem:[#allocation2 + $0x1b8] sm:$0xff] %vm7355_vm9, %v806_v41  ;;  %v860_v53 = vrot.slane %v854_v25, 4  ;;  %v829_v11 = vrot.slane %v824_v61, 4  ;;  %v5242_v27 = vcombine.low %v1276_v28, %v1280_v22  ;;  %v5243_v57 = vcombine.high %v1276_v28, %v1280_v22 }
 0x165   : > { %v867_v8 = vsel %vm378_vm0, %v9871_v31, %v860_v53  ;;  %v837_v32 = vsel %vm378_vm0, %v828_v39, %v829_v11  ;;  %2048 = vmatprep.subr.bf16.mxu1 %v5243_v57 }
 0x166   : > { %v868_v42 = vsel %vm9872_vm4, %v867_v8, %v854_v25  ;;  %v838_v18 = vsel %vm9873_vm5, %v837_v32, %v824_v61  ;;  %v886_v52 = vpop.permute.xlu1 %885  ;;  %2049 = vmatpush1.bf16.msra.mxu1 %v5242_v27  ;;  %v856_v12 = vpop.permute.xlu0 %855  ;;  %vm9875_vm4 = vcmask 375808   ;;  %vm9876_vm5 = vcmask 384000   ;;  %v1284_v47 = vld [vmem:[#allocation2 + $0x198] sm:$0xff] }
 0x167   : > { %846 = vst.msk [vmem:[#allocation2 + $0x1d8] sm:$0xff] %vm7355_vm9, %v838_v18  ;;  %v892_v38 = vrot.slane %v886_v52, 4  ;;  %v861_v2 = vrot.slane %v856_v12, 4  ;;  %v5256_v56 = vcombine.low %v836_v44, %v868_v42  ;;  %v5257_v30 = vcombine.high %v836_v44, %v868_v42 }
 0x169   : > { %v899_v16 = vsel %vm378_vm0, %v9874_v9, %v892_v38  ;;  %v869_v51 = vsel %vm378_vm0, %v860_v53, %v861_v2  ;;  %2011 = vmatprep.subr.bf16.mxu0 %v5257_v30  ;;  %v9883_v53 = vrot.slane %v7142_v13, 4 }
 0x16a   : > { %v900_v10 = vsel %vm9875_vm4, %v899_v16, %v886_v52  ;;  %v870_v3 = vsel %vm9876_vm5, %v869_v51, %v856_v12  ;;  %v918_v34 = vpop.permute.xlu1 %917  ;;  %v888_v7 = vpop.permute.xlu0 %887  ;;  %v1288_v15 = vld [vmem:[#allocation2 + $0x1b8] sm:$0xff]  ;;  %2012 = vmatpush1.bf16.msra.mxu0 %v5256_v56  ;;  %vm9878_vm4 = vcmask 367616   ;;  %vm9879_vm5 = vcmask 375808  }
 0x16b   : > { %878 = vst.msk [vmem:[#allocation2 + $0x1f8] sm:$0xff] %vm7355_vm9, %v870_v3  ;;  %v924_v26 = vrot.slane %v918_v34, 4  ;;  %v893_v19 = vrot.slane %v888_v7, 4  ;;  %v5250_v43 = vcombine.low %v1284_v47, %v1288_v15  ;;  %v5251_v45 = vcombine.high %v1284_v47, %v1288_v15 }
 0x16c   : > { %v9886_v12 = vrot.slane %v7173_v0, 4  ;;  %v9887_v47 = vrot.slane %v7190_v17, 4 }
 0x16d   : > { %v931_v24 = vsel %vm378_vm0, %v9877_v58, %v924_v26  ;;  %v901_v46 = vsel %vm378_vm0, %v892_v38, %v893_v19  ;;  %2050 = vmatprep.subr.bf16.mxu1 %v5251_v45 }
 0x16e   : > { %v932_v29 = vsel %vm9878_vm4, %v931_v24, %v918_v34  ;;  %v902_v5 = vsel %vm9879_vm5, %v901_v46, %v888_v7  ;;  %v951_v35 = vpop.permute.xlu1 %950  ;;  %2051 = vmatpush1.bf16.msra.mxu1 %v5250_v43  ;;  %v920_v36 = vpop.permute.xlu0 %919  ;;  %vm9881_vm4 = vcmask 777216   ;;  %vm9882_vm5 = vcmask 367616   ;;  %v1292_v44 = vld [vmem:[#allocation2 + $0x1d8] sm:$0xff] }
 0x16f   : > { %910 = vst.msk [vmem:[#allocation2 + $0x218] sm:$0xff] %vm7355_vm9, %v902_v5  ;;  %v957_v55 = vrot.slane %v951_v35, 4  ;;  %v925_v23 = vrot.slane %v920_v36, 4  ;;  %v5264_v54 = vcombine.low %v900_v10, %v932_v29  ;;  %v5265_v39 = vcombine.high %v900_v10, %v932_v29 }
 0x170   : > { %v9888_v5 = vrot.slane %v7224_v6, 4 }
 0x171   : > { %v964_v59 = vsel %vm378_vm0, %v9880_v50, %v957_v55  ;;  %v933_v62 = vsel %vm378_vm0, %v924_v26, %v925_v23  ;;  %2013 = vmatprep.subr.bf16.mxu0 %v5265_v39 }
 0x172   : > { %v965_v1 = vsel %vm9881_vm4, %v7125_v33, %v964_v59  ;;  %v934_v48 = vsel %vm9882_vm5, %v933_v62, %v920_v36  ;;  %v983_v4 = vpop.permute.xlu1 %982  ;;  %v953_v37 = vpop.permute.xlu0 %952  ;;  %v1296_v41 = vld [vmem:[#allocation2 + $0x1f8] sm:$0xff]  ;;  %2014 = vmatpush1.bf16.msra.mxu0 %v5264_v54  ;;  %vm9884_vm4 = vcmask 769024   ;;  %vm9885_vm5 = vcmask 777216  }
 0x173   : > { %942 = vst.msk [vmem:[#allocation2 + $0x238] sm:$0xff] %vm7355_vm9, %v934_v48  ;;  %v989_v25 = vrot.slane %v983_v4, 4  ;;  %v958_v61 = vrot.slane %v953_v37, 4  ;;  %v5258_v28 = vcombine.low %v1292_v44, %v1296_v41  ;;  %v5259_v22 = vcombine.high %v1292_v44, %v1296_v41 }
 0x175   : > { %v996_v11 = vsel %vm378_vm0, %v9883_v53, %v989_v25  ;;  %v966_v33 = vsel %vm378_vm0, %v957_v55, %v958_v61  ;;  %2052 = vmatprep.subr.bf16.mxu1 %v5259_v22 }
 0x176   : > { %v997_v27 = vsel %vm9884_vm4, %v7142_v13, %v996_v11  ;;  %v967_v57 = vsel %vm9885_vm5, %v951_v35, %v966_v33  ;;  %v1015_v31 = vpop.permute.xlu1 %1014  ;;  %2053 = vmatpush1.bf16.msra.mxu1 %v5258_v28  ;;  %v985_v8 = vpop.permute.xlu0 %984  ;;  %v1300_v16 = vld [vmem:[#allocation2 + $0x218] sm:$0xff]  ;;  %v9890_v33 = vrot.slane %v7272_v60, 4 }
 0x177   : > { %975 = vst.msk [vmem:[#allocation2 + $0x258] sm:$0xff] %vm7355_vm9, %v967_v57  ;;  %v1021_v32 = vrot.slane %v1015_v31, 4  ;;  %v990_v42 = vrot.slane %v985_v8, 4  ;;  %v5272_v18 = vcombine.low %v965_v1, %v997_v27  ;;  %v5273_v52 = vcombine.high %v965_v1, %v997_v27 }
 0x179   : > { %v1028_v38 = vsel %vm378_vm0, %v9886_v12, %v1021_v32  ;;  %v998_v2 = vsel %vm378_vm0, %v989_v25, %v990_v42  ;;  %2015 = vmatprep.subr.bf16.mxu0 %v5273_v52 }
 0x17a   : > { %v1029_v13 = vsel %vm1024_vm12, %v7173_v0, %v1028_v38  ;;  %v999_v56 = vsel %vm9884_vm4, %v983_v4, %v998_v2  ;;  %v1047_v30 = vpop.permute.xlu1 %1046  ;;  %v1017_v9 = vpop.permute.xlu0 %1016  ;;  %v1304_v51 = vld [vmem:[#allocation2 + $0x238] sm:$0xff]  ;;  %2016 = vmatpush1.bf16.msra.mxu0 %v5272_v18  ;;  %v9889_v4 = vrot.slane %v7241_v49, 4 }
 0x17b   : > { %1007 = vst.msk [vmem:[#allocation2 + $0x278] sm:$0xff] %vm7355_vm9, %v999_v56  ;;  %v1053_v10 = vrot.slane %v1047_v30, 4  ;;  %v1022_v3 = vrot.slane %v1017_v9, 4  ;;  %v5266_v34 = vcombine.low %v1300_v16, %v1304_v51  ;;  %v5267_v7 = vcombine.high %v1300_v16, %v1304_v51 }
 0x17d   : > { %v1060_v15 = vsel %vm378_vm0, %v9887_v47, %v1053_v10  ;;  %v1030_v0 = vsel %vm378_vm0, %v1021_v32, %v1022_v3  ;;  %2054 = vmatprep.subr.bf16.mxu1 %v5267_v7 }
 0x17e   : > { %v1061_v26 = vsel %vm1056_vm15, %v7190_v17, %v1060_v15  ;;  %v1031_v19 = vsel %vm1024_vm12, %v1015_v31, %v1030_v0  ;;  %v1079_v43 = vpop.permute.xlu1 %1078  ;;  %2055 = vmatpush1.bf16.msra.mxu1 %v5266_v34  ;;  %v1049_v45 = vpop.permute.xlu0 %1048  ;;  %v1308_v39 = vld [vmem:[#allocation2 + $0x258] sm:$0xff]  ;;  %v250_v0 = vld [vmem:[%s9605_s2 + $0x88] sm:$0xff] }
 0x17f   : > { %1039 = vst.msk [vmem:[#allocation2 + $0x298] sm:$0xff] %vm7355_vm9, %v1031_v19  ;;  %v1085_v58 = vrot.slane %v1079_v43, 4  ;;  %v1054_v24 = vrot.slane %v1049_v45, 4  ;;  %v5280_v46 = vcombine.low %v1029_v13, %v1061_v26  ;;  %v5281_v29 = vcombine.high %v1029_v13, %v1061_v26 }
 0x180   : > { %v9891_v13 = vrot.slane %v7289_v14, 4 }
 0x181   : > { %v1092_v35 = vsel %vm378_vm0, %v9888_v5, %v1085_v58  ;;  %v1062_v36 = vsel %vm378_vm0, %v1053_v10, %v1054_v24  ;;  %2017 = vmatprep.subr.bf16.mxu0 %v5281_v29 }
 0x182   : > { %v1093_v17 = vsel %vm1088_vm14, %v7224_v6, %v1092_v35  ;;  %v1063_v55 = vsel %vm1056_vm15, %v1047_v30, %v1062_v36  ;;  %v1111_v23 = vpop.permute.xlu1 %1110  ;;  %v1081_v54 = vpop.permute.xlu0 %1080  ;;  %v1312_v50 = vld [vmem:[#allocation2 + $0x278] sm:$0xff]  ;;  %2018 = vmatpush1.bf16.msra.mxu0 %v5280_v46  ;;  %v234_v36 = vld [vmem:[%s9605_s2 + $0x8] sm:$0xff] }
 0x183   : > { %1071 = vst.msk [vmem:[#allocation2 + $0x2b8] sm:$0xff] %vm7355_vm9, %v1063_v55  ;;  %v1117_v59 = vrot.slane %v1111_v23, 4  ;;  %v1086_v62 = vrot.slane %v1081_v54, 4  ;;  %v5274_v1 = vcombine.low %v1308_v39, %v1312_v50  ;;  %v5275_v48 = vcombine.high %v1308_v39, %v1312_v50  ;;  %v251_v55 = vld [vmem:[%s9605_s2 + $0x90] sm:$0xff] }
 0x185   : > { %v1124_v37 = vsel %vm378_vm0, %v9889_v4, %v1117_v59  ;;  %v1094_v6 = vsel %vm378_vm0, %v1085_v58, %v1086_v62  ;;  %2056 = vmatprep.subr.bf16.mxu1 %v5275_v48  ;;  %v235_v62 = vld [vmem:[%s9605_s2 + $0x10] sm:$0xff]  ;;  %v253_v48 = vld [vmem:[%s9605_s2 + $0xa0] sm:$0xff]  ;;  %v254_v4 = vld [vmem:[%s9605_s2 + $0xa8] sm:$0xff] }
 0x186   : > { %v1125_v44 = vsel %vm1120_vm8, %v7241_v49, %v1124_v37  ;;  %v1095_v41 = vsel %vm1088_vm14, %v1079_v43, %v1094_v6  ;;  %v1143_v25 = vpop.permute.xlu1 %1142  ;;  %2057 = vmatpush1.bf16.msra.mxu1 %v5274_v1  ;;  %v1113_v61 = vpop.permute.xlu0 %1112  ;;  %v1316_v42 = vld [vmem:[#allocation2 + $0x298] sm:$0xff] }
 0x187   : > { %1103 = vst.msk [vmem:[#allocation2 + $0x2d8] sm:$0xff] %vm7355_vm9, %v1095_v41  ;;  %v1149_v28 = vrot.slane %v1143_v25, 4  ;;  %v1118_v22 = vrot.slane %v1113_v61, 4  ;;  %v5288_v53 = vcombine.low %v1093_v17, %v1125_v44  ;;  %v5289_v11 = vcombine.high %v1093_v17, %v1125_v44  ;;  %v236_v1 = vld [vmem:[%s9605_s2 + $0x18] sm:$0xff] }
 0x188   : > { %v7703_v61 = vpack.c.bf16 %v254_v4, %v253_v48  ;;  %v337_v4 = vld [vmem:[%s9605_s2 + $0x340] sm:$0xff] }
 0x189   : > { %v1156_v27 = vsel %vm378_vm0, %v9890_v33, %v1149_v28  ;;  %v1126_v57 = vsel %vm378_vm0, %v1117_v59, %v1118_v22  ;;  %2019 = vmatprep.subr.bf16.mxu0 %v5289_v11  ;;  %v238_v22 = vld [vmem:[%s9605_s2 + $0x28] sm:$0xff]  ;;  %v256_v11 = vld [vmem:[%s9605_s2 + $0xb8] sm:$0xff] }
 0x18a   : > { %v1157_v49 = vsel %vm1152_vm6, %v7272_v60, %v1156_v27  ;;  %v1127_v31 = vsel %vm1120_vm8, %v1111_v23, %v1126_v57  ;;  %v1175_v8 = vpop.permute.xlu1 %1174  ;;  %v1145_v32 = vpop.permute.xlu0 %1144  ;;  %v1320_v18 = vld [vmem:[#allocation2 + $0x2b8] sm:$0xff]  ;;  %2020 = vmatpush1.bf16.msra.mxu0 %v5288_v53  ;;  %v255_v53 = vld [vmem:[%s9605_s2 + $0xb0] sm:$0xff] }
 0x18b   : > { %1135 = vst.msk [vmem:[#allocation2 + $0x2f8] sm:$0xff] %vm7355_vm9, %v1127_v31  ;;  %v1181_v52 = vrot.slane %v1175_v8, 4  ;;  %v1150_v12 = vrot.slane %v1145_v32, 4  ;;  %v5282_v38 = vcombine.low %v1316_v42, %v1320_v18  ;;  %v5283_v2 = vcombine.high %v1316_v42, %v1320_v18  ;;  %v252_v23 = vld [vmem:[%s9605_s2 + $0x98] sm:$0xff]  ;;  %v257_v18 = vld [vmem:[%s9605_s2 + $0xc0] sm:$0xff] }
 0x18c   : > { %v7684_v59 = vpack.c.bf16 %v252_v23, %v251_v55  ;;  %v7721_v31 = vpack.c.bf16 %v256_v11, %v255_v53  ;;  %v240_v32 = vld [vmem:[%s9605_s2 + $0x38] sm:$0xff]  ;;  %v333_v23 = vld [vmem:[%s9605_s2 + $0x320] sm:$0xff]  ;;  %v342_v53 = vld [vmem:[%s9605_s2 + $0x368] sm:$0xff] }
 0x18d   : > { %v1188_v56 = vsel %vm378_vm0, %v9891_v13, %v1181_v52  ;;  %v1158_v60 = vsel %vm378_vm0, %v1149_v28, %v1150_v12  ;;  %2058 = vmatprep.subr.bf16.mxu1 %v5283_v2  ;;  %v237_v28 = vld [vmem:[%s9605_s2 + $0x20] sm:$0xff]  ;;  %v242_v13 = vld [vmem:[%s9605_s2 + $0x48] sm:$0xff] }
 0x18e   : > { %v1189_v30 = vsel %vm1184_vm10, %v7289_v14, %v1188_v56  ;;  %v1159_v9 = vsel %vm1152_vm6, %v1143_v25, %v1158_v60  ;;  %v1207_v16 = vpop.permute.xlu1 %1206  ;;  %2059 = vmatpush1.bf16.msra.mxu1 %v5282_v38  ;;  %v1177_v51 = vpop.permute.xlu0 %1176  ;;  %v249_v14 = vld [vmem:[%s9605_s2 + $0x80] sm:$0xff]  ;;  %v1324_v45 = vld [vmem:[#allocation2 + $0x2d8] sm:$0xff]  ;;  %v7700_v25 = vpack.c.bf16 %v236_v1, %v235_v62  ;;  %v259_v56 = vld [vmem:[%s9605_s2 + $0xd0] sm:$0xff]  ;;  %vm9756_vm6 = vcmask 850944  }
 0x18f   : > { %1167 = vst.msk [vmem:[#allocation2 + $0x318] sm:$0xff] %vm7355_vm9, %v1159_v9  ;;  %v1213_v10 = vrot.slane %v1207_v16, 4  ;;  %v1182_v3 = vrot.slane %v1177_v51, 4  ;;  %v5296_v34 = vcombine.low %v1157_v49, %v1189_v30  ;;  %v5297_v7 = vcombine.high %v1157_v49, %v1189_v30  ;;  %v241_v2 = vld [vmem:[%s9605_s2 + $0x40] sm:$0xff]  ;;  %v260_v60 = vld [vmem:[%s9605_s2 + $0xd8] sm:$0xff]  ;;  %v335_v62 = vld [vmem:[%s9605_s2 + $0x330] sm:$0xff] }
 0x190   : > { %v7661_v35 = vpack.c.bf16 %v250_v0, %v249_v14  ;;  %v7718_v49 = vpack.c.bf16 %v238_v22, %v237_v28  ;;  %v7757_v30 = vpack.c.bf16 %v242_v13, %v241_v2  ;;  %v7760_v9 = vpack.c.bf16 %v260_v60, %v259_v56  ;;  %v261_v51 = vld [vmem:[%s9605_s2 + $0xe0] sm:$0xff]  ;;  %v264_v14 = vld [vmem:[%s9605_s2 + $0xf8] sm:$0xff]  ;;  %v350_v56 = vld [vmem:[%s9605_s2 + $0x3a8] sm:$0xff] }
 0x191   : > { %v1220_v47 = vsel %vm378_vm0, %v1212_v40, %v1213_v10  ;;  %v1190_v15 = vsel %vm378_vm0, %v1181_v52, %v1182_v3  ;;  %2021 = vmatprep.subr.bf16.mxu0 %v5297_v7  ;;  %v258_v52 = vld [vmem:[%s9605_s2 + $0xc8] sm:$0xff]  ;;  %v245_v7 = vld [vmem:[%s9605_s2 + $0x60] sm:$0xff]  ;;  %v336_v1 = vld [vmem:[%s9605_s2 + $0x338] sm:$0xff] }
 0x192   : > { %v1221_v26 = vsel %vm1216_vm7, %v7318_v63, %v1220_v47  ;;  %v1191_v19 = vsel %vm1184_vm10, %v1175_v8, %v1190_v15  ;;  %v1209_v43 = vpop.permute.xlu0 %1208  ;;  %v1328_v58 = vld [vmem:[#allocation2 + $0x2f8] sm:$0xff]  ;;  %2022 = vmatpush1.bf16.msra.mxu0 %v5296_v34  ;;  %9892 = vst [vmem:[#allocation6_spill] sm:$0xff] %v7661_v35  ;;  %v233_v63 = vld [vmem:[%s9605_s2] sm:$0xff]  ;;  %v239_v8 = vld [vmem:[%s9605_s2 + $0x30] sm:$0xff]  ;;  %v7741_v38 = vpack.c.bf16 %v258_v52, %v257_v18 }
 0x193   : > { %1199 = vst.msk [vmem:[#allocation2 + $0x338] sm:$0xff] %vm7355_vm9, %v1191_v19  ;;  %v1214_v40 = vrot.slane %v1209_v43, 4  ;;  %v5290_v24 = vcombine.low %v1324_v45, %v1328_v58  ;;  %v5291_v46 = vcombine.high %v1324_v45, %v1328_v58  ;;  %v5305_v29 = vcombine.high %v1221_v26, %v1221_v26  ;;  %v246_v47 = vld [vmem:[%s9605_s2 + $0x68] sm:$0xff]  ;;  %v263_v15 = vld [vmem:[%s9605_s2 + $0xf0] sm:$0xff]  ;;  %v248_v43 = vld [vmem:[%s9605_s2 + $0x78] sm:$0xff] }
 0x194   : > { %v5304_v5 = vcombine.low %v1221_v26, %v1221_v26  ;;  %v7681_v50 = vpack.c.bf16 %v234_v36, %v233_v63  ;;  %v7738_v12 = vpack.c.bf16 %v240_v32, %v239_v8  ;;  %v7793_v0 = vpack.c.bf16 %v246_v47, %v245_v7  ;;  %v247_v19 = vld [vmem:[%s9605_s2 + $0x70] sm:$0xff]  ;;  %v281_v45 = vld [vmem:[%s9605_s2 + $0x180] sm:$0xff]  ;;  %v282_v58 = vld [vmem:[%s9605_s2 + $0x188] sm:$0xff] }
 0x195   : > { %v1222_v17 = vsel %vm378_vm0, %v1213_v10, %v1214_v40  ;;  %2060 = vmatprep.subr.bf16.mxu1 %v5291_v46  ;;  %5312 = vmatprep.subr.msk.bf16.mxu0 %vm378_vm0, %v5305_v29  ;;  %v262_v10 = vld [vmem:[%s9605_s2 + $0xe8] sm:$0xff]  ;;  %v7796_v26 = vpack.c.bf16 %v264_v14, %v263_v15  ;;  %v7811_v40 = vpack.c.bf16 %v248_v43, %v247_v19  ;;  %v329_v46 = vld [vmem:[%s9605_s2 + $0x300] sm:$0xff]  ;;  %v331_v36 = vld [vmem:[%s9605_s2 + $0x310] sm:$0xff] }
 0x196   : > { %v1223_v54 = vsel %vm1216_vm7, %v1207_v16, %v1222_v17  ;;  %2061 = vmatpush1.bf16.msra.mxu1 %v5290_v24  ;;  %v1904_v39 = vsel %vm378_vm0, %v5304_v5, 0  ;;  %v1332_v37 = vld [vmem:[#allocation2 + $0x318] sm:$0xff]  ;;  %v7778_v34 = vpack.c.bf16 %v262_v10, %v261_v51  ;;  %v7814_v24 = vpack.c.bf16 %v282_v58, %v281_v45  ;;  %v330_v29 = vld [vmem:[%s9605_s2 + $0x308] sm:$0xff]  ;;  %v341_v22 = vld [vmem:[%s9605_s2 + $0x360] sm:$0xff] }
 0x197   : > { %1231 = vst.msk [vmem:[#allocation2 + $0x358] sm:$0xff] %vm7355_vm9, %v1223_v54  ;;  %2024 = vmatpush1.bf16.msra.mxu0 %v1904_v39  ;;  %v244_v16 = vld [vmem:[%s9605_s2 + $0x58] sm:$0xff]  ;;  %v9663_v5 = vmov 0.0|0.0   ;;  %v7825_v63 = vpack.c.bf16 %v330_v29, %v329_v46  ;;  %v334_v54 = vld [vmem:[%s9605_s2 + $0x328] sm:$0xff]  ;;  %v7854_v48 = vpack.c.bf16 %v336_v1, %v335_v62  ;;  %v7884_v11 = vpack.c.bf16 %v342_v53, %v341_v22  ;;  %v345_v8 = vld [vmem:[%s9605_s2 + $0x380] sm:$0xff] }
 0x198   : > { %5874 = vmatprep.subr.bf16.mxu0 %v7661_v35  ;;  %9893 = vst [vmem:[#allocation7_spill] sm:$0xff] %v7814_v24  ;;  %v332_v17 = vld [vmem:[%s9605_s2 + $0x318] sm:$0xff]  ;;  %v7845_v39 = vpack.c.bf16 %v334_v54, %v333_v23  ;;  %v346_v32 = vld [vmem:[%s9605_s2 + $0x388] sm:$0xff]  ;;  %v347_v18 = vld [vmem:[%s9605_s2 + $0x390] sm:$0xff]  ;;  %v9661_v29 = vmov 0.0   ;;  %vm2761_vm7 = vcmask 1044288  }
 0x199   : > { %9894 = vst [vmem:[#allocation8_spill] sm:$0xff] %v7825_v63  ;;  %v7835_v55 = vpack.c.bf16 %v332_v17, %v331_v36  ;;  %9897 = vst [vmem:[#allocation11_spill] sm:$0xff] %v7854_v48  ;;  %v348_v52 = vld [vmem:[%s9605_s2 + $0x398] sm:$0xff]  ;;  %v349_v13 = vld [vmem:[%s9605_s2 + $0x3a0] sm:$0xff] }
 0x19a   : > { %v1336_v6 = vld [vmem:[#allocation2 + $0x338] sm:$0xff]  ;;  %2030 = vmatmul.mubr.bf16.vlgmr.msra.gmra.mrb[4].mxu0 %v7349_v20  ;;  %9896 = vst [vmem:[#allocation10_spill] sm:$0xff] %v7845_v39  ;;  %9900 = vst [vmem:[#allocation14_spill] sm:$0xff] %v7884_v11  ;;  %v7914_v2 = vpack.c.bf16 %v348_v52, %v347_v18  ;;  %v7924_v60 = vpack.c.bf16 %v350_v56, %v349_v13  ;;  %v353_v10 = vld [vmem:[%s9605_s2 + $0x3c0] sm:$0xff] }
 0x19b   : > { %v5298_v44 = vcombine.low %v1332_v37, %v1336_v6  ;;  %v5299_v41 = vcombine.high %v1332_v37, %v1336_v6  ;;  %5876 = vmatpush3.bf16.msra.mxu0 %v7681_v50  ;;  %9895 = vst [vmem:[#allocation9_spill] sm:$0xff] %v7835_v55  ;;  %v338_v37 = vld [vmem:[%s9605_s2 + $0x348] sm:$0xff]  ;;  %v355_v15 = vld [vmem:[%s9605_s2 + $0x3d0] sm:$0xff]  ;;  %v356_v14 = vld [vmem:[%s9605_s2 + $0x3d8] sm:$0xff] }
 0x19c   : > { %5878 = vmatprep.subr.bf16.mxu0 %v7684_v59  ;;  %v7864_v6 = vpack.c.bf16 %v338_v37, %v337_v4  ;;  %9903 = vst [vmem:[#allocation17_spill] sm:$0xff] %v7914_v2  ;;  %9904 = vst [vmem:[#allocation18_spill] sm:$0xff] %v7924_v60  ;;  %v354_v7 = vld [vmem:[%s9605_s2 + $0x3c8] sm:$0xff]  ;;  %v7955_v19 = vpack.c.bf16 %v356_v14, %v355_v15  ;;  %v7966_v36 = vld [vmem:[%s9605_s2 + $0x3e0] sm:$0xff] }
 0x19d   : > { %2062 = vmatprep.subr.bf16.mxu1 %v5299_v41  ;;  %v340_v41 = vld [vmem:[%s9605_s2 + $0x358] sm:$0xff]  ;;  %v7944_v47 = vpack.c.bf16 %v354_v7, %v353_v10  ;;  %9908 = vst [vmem:[#allocation22_spill] sm:$0xff] %v7966_v36  ;;  %v265_v17 = vld [vmem:[%s9605_s2 + $0x100] sm:$0xff]  ;;  %v266_v23 = vld [vmem:[%s9605_s2 + $0x108] sm:$0xff] }
 0x19e   : > { %2063 = vmatpush1.bf16.msra.mxu1 %v5298_v44  ;;  %v1340_v33 = vld [vmem:[#allocation2 + $0x358] sm:$0xff]  ;;  %9898 = vst [vmem:[#allocation12_spill] sm:$0xff] %v7864_v6  ;;  %v339_v44 = vld [vmem:[%s9605_s2 + $0x350] sm:$0xff]  ;;  %9907 = vst [vmem:[#allocation21_spill] sm:$0xff] %v7955_v19  ;;  %v7984_v4 = vpack.c.bf16 %v266_v23, %v265_v17 }
 0x19f   : > { %v5307_v27 = vcombine.high %v1340_v33, %v1340_v33  ;;  %v5306_v57 = vcombine.low %v1340_v33, %v1340_v33  ;;  %5880 = vmatpush3.bf16.msra.mxu0 %v7700_v25  ;;  %v7874_v28 = vpack.c.bf16 %v340_v41, %v339_v44  ;;  %v343_v33 = vld [vmem:[%s9605_s2 + $0x370] sm:$0xff]  ;;  %9906 = vst [vmem:[#allocation20_spill] sm:$0xff] %v7944_v47  ;;  %v284_v62 = vld [vmem:[%s9605_s2 + $0x198] sm:$0xff]  ;;  %v285_v53 = vld [vmem:[%s9605_s2 + $0x1a0] sm:$0xff] }
 0x1a0   : > { %5882 = vmatprep.subr.bf16.mxu0 %v7703_v61  ;;  %v283_v54 = vld [vmem:[%s9605_s2 + $0x190] sm:$0xff]  ;;  %9909 = vst [vmem:[#allocation23_spill] sm:$0xff] %v7984_v4  ;;  %v268_v22 = vld [vmem:[%s9605_s2 + $0x118] sm:$0xff]  ;;  %v269_v52 = vld [vmem:[%s9605_s2 + $0x120] sm:$0xff] }
 0x1a1   : > { %5314 = vmatprep.subr.msk.bf16.mxu1 %vm378_vm0, %v5307_v27  ;;  %v1910_v42 = vsel %vm378_vm0, %v5306_v57, 0  ;;  %9899 = vst [vmem:[#allocation13_spill] sm:$0xff] %v7874_v28  ;;  %v344_v27 = vld [vmem:[%s9605_s2 + $0x378] sm:$0xff]  ;;  %v7988_v44 = vpack.c.bf16 %v284_v62, %v283_v54  ;;  %v267_v41 = vld [vmem:[%s9605_s2 + $0x110] sm:$0xff]  ;;  %v270_v13 = vld [vmem:[%s9605_s2 + $0x128] sm:$0xff] }
 0x1a2   : > { %2065 = vmatpush1.bf16.msra.mxu1 %v1910_v42  ;;  %v7894_v57 = vpack.c.bf16 %v344_v27, %v343_v33  ;;  %v7904_v42 = vpack.c.bf16 %v346_v32, %v345_v8  ;;  %v286_v33 = vld [vmem:[%s9605_s2 + $0x1a8] sm:$0xff]  ;;  %v8005_v32 = vpack.c.bf16 %v268_v22, %v267_v41  ;;  %v287_v56 = vld [vmem:[%s9605_s2 + $0x1b0] sm:$0xff]  ;;  %v272_v15 = vld [vmem:[%s9605_s2 + $0x138] sm:$0xff] }
 0x1a3   : > { %5884 = vmatpush3.bf16.msra.mxu0 %v7718_v49  ;;  %5969 = vmatprep.subr.bf16.mxu1 %v9663_v5  ;;  %9910 = vst [vmem:[#allocation24_spill] sm:$0xff] %v7988_v44  ;;  %v8009_v18 = vpack.c.bf16 %v286_v33, %v285_v53  ;;  %v271_v7 = vld [vmem:[%s9605_s2 + $0x130] sm:$0xff]  ;;  %v289_v14 = vld [vmem:[%s9605_s2 + $0x1c0] sm:$0xff]  ;;  %v274_v54 = vld [vmem:[%s9605_s2 + $0x148] sm:$0xff] }
 0x1a4   : > { %5886 = vmatprep.subr.bf16.mxu0 %v7721_v31  ;;  %9901 = vst [vmem:[#allocation15_spill] sm:$0xff] %v7894_v57  ;;  %9902 = vst [vmem:[#allocation16_spill] sm:$0xff] %v7904_v42  ;;  %v273_v23 = vld [vmem:[%s9605_s2 + $0x140] sm:$0xff]  ;;  %v291_v62 = vld [vmem:[%s9605_s2 + $0x1d0] sm:$0xff] }
 0x1a5   : > { %2071 = vmatmul.mubr.bf16.vlgmr.msra.gmra.mrb[4].mxu1 %v7349_v20  ;;  %v243_v20 = vld [vmem:[%s9605_s2 + $0x50] sm:$0xff]  ;;  %9911 = vst [vmem:[#allocation25_spill] sm:$0xff] %v8005_v32  ;;  %9912 = vst [vmem:[#allocation26_spill] sm:$0xff] %v8009_v18  ;;  %v292_v41 = vld [vmem:[%s9605_s2 + $0x1d8] sm:$0xff]  ;;  %v8060_v22 = vpack.c.bf16 %v274_v54, %v273_v23 }
 0x1a6   : > { %v7775_v3 = vpack.c.bf16 %v244_v16, %v243_v20  ;;  %5971 = vmatpush1.bf16.msra.mxu1 %v7825_v63  ;;  %v351_v20 = vld [vmem:[%s9605_s2 + $0x3b0] sm:$0xff]  ;;  %v352_v16 = vld [vmem:[%s9605_s2 + $0x3b8] sm:$0xff]  ;;  %v8063_v53 = vpack.c.bf16 %v292_v41, %v291_v62  ;;  %v313_v41 = vld [vmem:[%s9605_s2 + $0x280] sm:$0xff] }
 0x1a7   : > { %5888 = vmatpush3.bf16.msra.mxu0 %v7738_v12  ;;  %5972 = vmatprep.subr.bf16.mxu1 %v9663_v5  ;;  %v7934_v51 = vpack.c.bf16 %v352_v16, %v351_v20  ;;  %v288_v20 = vld [vmem:[%s9605_s2 + $0x1b8] sm:$0xff]  ;;  %v8024_v16 = vpack.c.bf16 %v270_v13, %v269_v52  ;;  %9917 = vst [vmem:[#allocation31_spill] sm:$0xff] %v8060_v22  ;;  %v275_v33 = vld [vmem:[%s9605_s2 + $0x150] sm:$0xff]  ;;  %v294_v52 = vld [vmem:[%s9605_s2 + $0x1e8] sm:$0xff] }
 0x1a8   : > { %5890 = vmatprep.subr.bf16.mxu0 %v7741_v38  ;;  %v8027_v10 = vpack.c.bf16 %v288_v20, %v287_v56  ;;  %9918 = vst [vmem:[#allocation32_spill] sm:$0xff] %v8063_v53  ;;  %v277_v20 = vld [vmem:[%s9605_s2 + $0x160] sm:$0xff]  ;;  %v279_v54 = vld [vmem:[%s9605_s2 + $0x170] sm:$0xff]  ;;  %v280_v62 = vld [vmem:[%s9605_s2 + $0x178] sm:$0xff] }
 0x1a9   : > { %9905 = vst [vmem:[#allocation19_spill] sm:$0xff] %v7934_v51  ;;  %9913 = vst [vmem:[#allocation27_spill] sm:$0xff] %v8024_v16 }
 0x1aa   : > { %5974 = vmatpush1.bf16.msra.mxu1 %v7835_v55  ;;  %9914 = vst [vmem:[#allocation28_spill] sm:$0xff] %v8027_v10  ;;  %vm2762_vm8 = vmor %vm396_vm13, %vm2761_vm7 }
 0x1ab   : > { %5892 = vmatpush3.bf16.msra.mxu0 %v7757_v30  ;;  %5975 = vmatprep.subr.bf16.mxu1 %v9663_v5 }
 0x1ac   : > { %5894 = vmatprep.subr.bf16.mxu0 %v7760_v9 }
 0x1ae   : > { %5977 = vmatpush1.bf16.msra.mxu1 %v7845_v39 }
 0x1af   : > { %5896 = vmatpush3.bf16.msra.mxu0 %v7775_v3  ;;  %5978 = vmatprep.subr.bf16.mxu1 %v9663_v5 }
 0x1b0   : > { %5898 = vmatprep.subr.bf16.mxu0 %v7778_v34 }
 0x1b2   : > { %5980 = vmatpush1.bf16.msra.mxu1 %v7854_v48 }
 0x1b3   : > { %5900 = vmatpush3.bf16.msra.mxu0 %v7793_v0  ;;  %5981 = vmatprep.subr.bf16.mxu1 %v9663_v5 }
 0x1b4   : > { %5902 = vmatprep.subr.bf16.mxu0 %v7796_v26 }
 0x1b6   : > { %5983 = vmatpush1.bf16.msra.mxu1 %v7864_v6 }
 0x1b7   : > { %5904 = vmatpush3.bf16.msra.mxu0 %v7811_v40  ;;  %5984 = vmatprep.subr.bf16.mxu1 %v9663_v5 }
 0x1b8   : > { %5906 = vmatprep.subr.bf16.mxu0 %v7814_v24 }
 0x1ba   : > { %5986 = vmatpush1.bf16.msra.mxu1 %v7874_v28 }
 0x1bb   : > { %5987 = vmatprep.subr.bf16.mxu1 %v9663_v5 }
 0x1be   : > { %5989 = vmatpush1.bf16.msra.mxu1 %v7884_v11 }
 0x1bf   : > { %5990 = vmatprep.subr.bf16.mxu1 %v9663_v5 }
 0x1c2   : > { %5992 = vmatpush1.bf16.msra.mxu1 %v7894_v57 }
 0x1c3   : > { %5993 = vmatprep.subr.bf16.mxu1 %v9663_v5 }
 0x1c6   : > { %5995 = vmatpush1.bf16.msra.mxu1 %v7904_v42  ;;  %v312_v42 = vld [vmem:[%s9605_s2 + $0x278] sm:$0xff] }
 0x1c7   : > { %5996 = vmatprep.subr.bf16.mxu1 %v9663_v5 }
 0x1ca   : > { %5998 = vmatpush1.bf16.msra.mxu1 %v7914_v2  ;;  %v327_v2 = vld [vmem:[%s9605_s2 + $0x2f0] sm:$0xff] }
 0x1cb   : > { %5999 = vmatprep.subr.bf16.mxu1 %v9663_v5 }
 0x1ce   : > { %6001 = vmatpush1.bf16.msra.mxu1 %v7924_v60  ;;  %v310_v60 = vld [vmem:[%s9605_s2 + $0x268] sm:$0xff] }
 0x1cf   : > { %6002 = vmatprep.subr.bf16.mxu1 %v9663_v5 }
 0x1d2   : > { %6004 = vmatpush1.bf16.msra.mxu1 %v7934_v51  ;;  %v325_v51 = vld [vmem:[%s9605_s2 + $0x2e0] sm:$0xff] }
 0x1d3   : > { %6005 = vmatprep.subr.bf16.mxu1 %v9663_v5 }
 0x1d6   : > { %6007 = vmatpush1.bf16.msra.mxu1 %v7944_v47  ;;  %v308_v47 = vld [vmem:[%s9605_s2 + $0x258] sm:$0xff] }
 0x1d7   : > { %6008 = vmatprep.subr.bf16.mxu1 %v9663_v5  ;;  %v319_v5 = vld [vmem:[%s9605_s2 + $0x2b0] sm:$0xff] }
 0x1da   : > { %6010 = vmatpush1.bf16.msra.mxu1 %v7955_v19  ;;  %v323_v19 = vld [vmem:[%s9605_s2 + $0x2d0] sm:$0xff] }
 0x1db   : > { %2349 = vmatprep.subr.mxu1 %v9661_v29  ;;  %v302_v29 = vld [vmem:[%s9605_s2 + $0x228] sm:$0xff] }
 0x1de   : > { %2350 = vmatpush1.msra.mxu1 %v7966_v36  ;;  %v306_v36 = vld [vmem:[%s9605_s2 + $0x248] sm:$0xff] }
 0x1df   : > { %6044 = vmatprep.subr.bf16.mxu1 %v7814_v24  ;;  %v304_v24 = vld [vmem:[%s9605_s2 + $0x238] sm:$0xff] }
 0x1f4   : > { %v7958_v43 = vpop.f32.mrb[0].mxu1 }
 0x1f5   : > { %v7960_v45 = vpop.f32.mrb[1].mxu1 }
 0x1f6   : > { %v1994_v58 = vpop.f32.mrb[2].mxu1 }
 0x1f7   : > { %v1995_v46 = vpop.f32.mrb[3].mxu1  ;;  %v290_v58 = vld [vmem:[%s9605_s2 + $0x1c8] sm:$0xff] }
 0x1f8   : > { %v8042_v46 = vpack.c.bf16 %v272_v15, %v271_v7  ;;  %v8045_v17 = vpack.c.bf16 %v290_v58, %v289_v14  ;;  %v278_v7 = vld [vmem:[%s9605_s2 + $0x168] sm:$0xff]  ;;  %v295_v15 = vld [vmem:[%s9605_s2 + $0x1f0] sm:$0xff]  ;;  %v296_v14 = vld [vmem:[%s9605_s2 + $0x1f8] sm:$0xff] }
 0x1f9   : > { %v8096_v58 = vpack.c.bf16 %v278_v7, %v277_v20  ;;  %v8099_v23 = vpack.c.bf16 %v296_v14, %v295_v15  ;;  %v298_v20 = vld [vmem:[%s9605_s2 + $0x208] sm:$0xff]  ;;  %v315_v7 = vld [vmem:[%s9605_s2 + $0x290] sm:$0xff]  ;;  %v316_v15 = vld [vmem:[%s9605_s2 + $0x298] sm:$0xff] }
 0x1fa   : > { %9915 = vst [vmem:[#allocation29_spill] sm:$0xff] %v8042_v46  ;;  %9916 = vst [vmem:[#allocation30_spill] sm:$0xff] %v8045_v17 }
 0x1fb   : > { %9921 = vst [vmem:[#allocation35_spill] sm:$0xff] %v8096_v58  ;;  %9922 = vst [vmem:[#allocation36_spill] sm:$0xff] %v8099_v23 }
 0x21c   : > { %v7982_v1 = vpop.f32.mrb[0].mxu0 }
 0x21d   : > { %v7986_v37 = vpop.f32.mrb[1].mxu0 }
 0x21e   : > { %2147 = vmatprep.mubr.f32.mxu0 %v7986_v37  ;;  %v1953_v27 = vpop.f32.mrb[2].mxu0 }
 0x21f   : > { %2148 = vmatmul.mubr.f32.vlgmr.msra.gmra.mrb[8].mxu0 %v7982_v1  ;;  %v1954_v8 = vpop.f32.mrb[3].mxu0  ;;  %v276_v27 = vld [vmem:[%s9605_s2 + $0x158] sm:$0xff] }
 0x220   : > { %5908 = vmatpush3.bf16.msra.mxu0 %v7984_v4  ;;  %2217 = vmatprep.mubr.f32.mxu0 %v7960_v45  ;;  %v293_v8 = vld [vmem:[%s9605_s2 + $0x1e0] sm:$0xff]  ;;  %v8078_v13 = vpack.c.bf16 %v276_v27, %v275_v33  ;;  %v314_v33 = vld [vmem:[%s9605_s2 + $0x288] sm:$0xff]  ;;  %v8114_v27 = vpack.c.bf16 %v280_v62, %v279_v54  ;;  %v8135_v54 = vpack.c.bf16 %v316_v15, %v315_v7  ;;  %v299_v62 = vld [vmem:[%s9605_s2 + $0x210] sm:$0xff] }
 0x221   : > { %5910 = vmatprep.subr.bf16.mxu0 %v7988_v44  ;;  %v8081_v56 = vpack.c.bf16 %v294_v52, %v293_v8  ;;  %v8117_v8 = vpack.c.bf16 %v314_v33, %v313_v41  ;;  %v297_v52 = vld [vmem:[%s9605_s2 + $0x200] sm:$0xff]  ;;  %v300_v41 = vld [vmem:[%s9605_s2 + $0x218] sm:$0xff] }
 0x222   : > { %9919 = vst [vmem:[#allocation33_spill] sm:$0xff] %v8078_v13  ;;  %9923 = vst [vmem:[#allocation37_spill] sm:$0xff] %v8114_v27  ;;  %v8132_v14 = vpack.c.bf16 %v298_v20, %v297_v52  ;;  %v317_v33 = vld [vmem:[%s9605_s2 + $0x2a0] sm:$0xff]  ;;  %v318_v52 = vld [vmem:[%s9605_s2 + $0x2a8] sm:$0xff]  ;;  %v8151_v20 = vpack.c.bf16 %v300_v41, %v299_v62 }
 0x223   : > { %9920 = vst [vmem:[#allocation34_spill] sm:$0xff] %v8081_v56  ;;  %9924 = vst [vmem:[#allocation38_spill] sm:$0xff] %v8117_v8  ;;  %v8154_v7 = vpack.c.bf16 %v318_v52, %v317_v33  ;;  %v301_v15 = vld [vmem:[%s9605_s2 + $0x220] sm:$0xff]  ;;  %v320_v62 = vld [vmem:[%s9605_s2 + $0x2b8] sm:$0xff] }
 0x224   : > { %5912 = vmatpush3.bf16.msra.mxu0 %v8005_v32  ;;  %9925 = vst [vmem:[#allocation39_spill] sm:$0xff] %v8132_v14  ;;  %9926 = vst [vmem:[#allocation40_spill] sm:$0xff] %v8135_v54  ;;  %v8169_v41 = vpack.c.bf16 %v302_v29, %v301_v15  ;;  %v8172_v33 = vpack.c.bf16 %v320_v62, %v319_v5  ;;  %v303_v52 = vld [vmem:[%s9605_s2 + $0x230] sm:$0xff]  ;;  %v322_v29 = vld [vmem:[%s9605_s2 + $0x2c8] sm:$0xff] }
 0x225   : > { %5914 = vmatprep.subr.bf16.mxu0 %v8009_v18  ;;  %9927 = vst [vmem:[#allocation41_spill] sm:$0xff] %v8151_v20  ;;  %9928 = vst [vmem:[#allocation42_spill] sm:$0xff] %v8154_v7  ;;  %v8187_v5 = vpack.c.bf16 %v304_v24, %v303_v52  ;;  %v8190_v15 = vpack.c.bf16 %v322_v29, %v321_v21  ;;  %v305_v62 = vld [vmem:[%s9605_s2 + $0x240] sm:$0xff]  ;;  %v324_v24 = vld [vmem:[%s9605_s2 + $0x2d8] sm:$0xff] }
 0x226   : > { %9929 = vst [vmem:[#allocation43_spill] sm:$0xff] %v8169_v41  ;;  %9930 = vst [vmem:[#allocation44_spill] sm:$0xff] %v8172_v33  ;;  %v8205_v21 = vpack.c.bf16 %v306_v36, %v305_v62  ;;  %v8208_v52 = vpack.c.bf16 %v324_v24, %v323_v19  ;;  %v307_v29 = vld [vmem:[%s9605_s2 + $0x250] sm:$0xff]  ;;  %v326_v36 = vld [vmem:[%s9605_s2 + $0x2e8] sm:$0xff] }
 0x227   : > { %9931 = vst [vmem:[#allocation45_spill] sm:$0xff] %v8187_v5  ;;  %9932 = vst [vmem:[#allocation46_spill] sm:$0xff] %v8190_v15  ;;  %v8223_v19 = vpack.c.bf16 %v308_v47, %v307_v29  ;;  %v8226_v62 = vpack.c.bf16 %v326_v36, %v325_v51  ;;  %v309_v24 = vld [vmem:[%s9605_s2 + $0x260] sm:$0xff]  ;;  %v328_v47 = vld [vmem:[%s9605_s2 + $0x2f8] sm:$0xff] }
 0x228   : > { %5916 = vmatpush3.bf16.msra.mxu0 %v8024_v16  ;;  %9933 = vst [vmem:[#allocation47_spill] sm:$0xff] %v8205_v21  ;;  %9934 = vst [vmem:[#allocation48_spill] sm:$0xff] %v8208_v52  ;;  %v8241_v51 = vpack.c.bf16 %v310_v60, %v309_v24  ;;  %v8244_v29 = vpack.c.bf16 %v328_v47, %v327_v2  ;;  %v311_v36 = vld [vmem:[%s9605_s2 + $0x270] sm:$0xff]  ;;  %v2364_v24 = vmul.f32 %v7986_v37, %v7986_v37 }
 0x229   : > { %5918 = vmatprep.subr.bf16.mxu0 %v8027_v10  ;;  %9935 = vst [vmem:[#allocation49_spill] sm:$0xff] %v8223_v19  ;;  %9936 = vst [vmem:[#allocation50_spill] sm:$0xff] %v8226_v62  ;;  %v8253_v57 = vpack.c.bf16 %v312_v42, %v311_v36 }
 0x22a   : > { %9937 = vst [vmem:[#allocation51_spill] sm:$0xff] %v8241_v51  ;;  %9938 = vst [vmem:[#allocation52_spill] sm:$0xff] %v8244_v29 }
 0x22b   : > { %9939 = vst [vmem:[#allocation53_spill] sm:$0xff] %v8253_v57 }
 0x22c   : > { %5920 = vmatpush3.bf16.msra.mxu0 %v8042_v46 }
 0x22d   : > { %5922 = vmatprep.subr.bf16.mxu0 %v8045_v17 }
 0x230   : > { %5924 = vmatpush3.bf16.msra.mxu0 %v8060_v22 }
 0x231   : > { %5926 = vmatprep.subr.bf16.mxu0 %v8063_v53 }
 0x234   : > { %5928 = vmatpush3.bf16.msra.mxu0 %v8078_v13 }
 0x235   : > { %5930 = vmatprep.subr.bf16.mxu0 %v8081_v56 }
 0x238   : > { %5932 = vmatpush3.bf16.msra.mxu0 %v8096_v58 }
 0x239   : > { %5934 = vmatprep.subr.bf16.mxu0 %v8099_v23 }
 0x23c   : > { %5936 = vmatpush3.bf16.msra.mxu0 %v8114_v27 }
 0x23d   : > { %5938 = vmatprep.subr.bf16.mxu0 %v8117_v8 }
 0x23f   : > { %2218 = vmatmul.mubr.f32.vlgmr.msra.gmra.mrb[10].mxu0 %v7958_v43 }
 0x240   : > { %5940 = vmatpush3.bf16.msra.mxu0 %v8132_v14 }
 0x241   : > { %5942 = vmatprep.subr.bf16.mxu0 %v8135_v54 }
 0x244   : > { %5944 = vmatpush3.bf16.msra.mxu0 %v8151_v20 }
 0x245   : > { %5946 = vmatprep.subr.bf16.mxu0 %v8154_v7 }
 0x248   : > { %5948 = vmatpush3.bf16.msra.mxu0 %v8169_v41 }
 0x249   : > { %5950 = vmatprep.subr.bf16.mxu0 %v8172_v33 }
 0x24c   : > { %5952 = vmatpush3.bf16.msra.mxu0 %v8187_v5 }
 0x24d   : > { %5954 = vmatprep.subr.bf16.mxu0 %v8190_v15 }
 0x250   : > { %5956 = vmatpush3.bf16.msra.mxu0 %v8205_v21 }
 0x251   : > { %5958 = vmatprep.subr.bf16.mxu0 %v8208_v52 }
 0x254   : > { %5960 = vmatpush3.bf16.msra.mxu0 %v8223_v19 }
 0x255   : > { %5962 = vmatprep.subr.bf16.mxu0 %v8226_v62 }
 0x258   : > { %5964 = vmatpush3.bf16.msra.mxu0 %v8241_v51 }
 0x259   : > { %5966 = vmatprep.subr.bf16.mxu0 %v8244_v29 }
 0x25c   : > { %5968 = vmatpush3.bf16.msra.mxu0 %v8253_v57 }
 0x25d   : > { %6012 = vmatprep.subr.bf16.mxu0 %v7661_v35 }
 0x26d   : > { %v8258_v2 = vpop.f32.mrb[4].mxu0 }
 0x26e   : > { %v8260_v60 = vpop.f32.mrb[5].mxu0 }
 0x26f   : > { %2287 = vmatprep.mubr.f32.mxu0 %v8260_v60  ;;  %v2035_v47 = vpop.f32.mrb[6].mxu0 }
 0x270   : > { %2288 = vmatmul.mubr.f32.vlgmr.msra.gmra.mrb[12].mxu0 %v8258_v2  ;;  %v2036_v42 = vpop.f32.mrb[7].mxu0  ;;  %v2366_v47 = vmul.f32 %v7960_v45, %v7960_v45 }
 0x271   : > { %6014 = vmatpush3.bf16.msra.mxu0 %v7681_v50  ;;  %2438 = vmatprep.mubr.f32.mxu0 %v2364_v24 }
 0x272   : > { %6016 = vmatprep.subr.bf16.mxu0 %v7684_v59 }
 0x275   : > { %6018 = vmatpush3.bf16.msra.mxu0 %v7700_v25 }
 0x276   : > { %6020 = vmatprep.subr.bf16.mxu0 %v7703_v61 }
 0x278   : > { %v8270_v36 = vpop.f32.mrb[4].mxu1 }
 0x279   : > { %v8272_v35 = vpop.f32.mrb[5].mxu1  ;;  %6022 = vmatpush3.bf16.msra.mxu0 %v7718_v49 }
 0x27a   : > { %v2076_v42 = vpop.f32.mrb[6].mxu1  ;;  %5316 = vmatprep.mubr.msk.f32.mxu1 %vm9756_vm6, %v8272_v35  ;;  %6024 = vmatprep.subr.bf16.mxu0 %v7721_v31 }
 0x27b   : > { %v2077_v24 = vpop.f32.mrb[7].mxu1  ;;  %2358 = vmatmul.mubr.f32.vlgmr.msra.gmra.mrb[8].mxu1 %v8270_v36  ;;  %v2368_v42 = vmul.f32 %v8260_v60, %v8260_v60 }
 0x27c   : > { %6046 = vmatpush3.bf16.msra.mxu1 %v7984_v4  ;;  %2508 = vmatprep.mubr.f32.mxu1 %v2366_v47  ;;  %v2363_v47 = vmul.f32 %v7982_v1, %v7982_v1  ;;  %v2365_v24 = vmul.f32 %v7958_v43, %v7958_v43 }
 0x27d   : > { %6048 = vmatprep.subr.bf16.mxu1 %v7988_v44  ;;  %6026 = vmatpush3.bf16.msra.mxu0 %v7738_v12 }
 0x27e   : > { %6028 = vmatprep.subr.bf16.mxu0 %v7741_v38 }
 0x280   : > { %6050 = vmatpush3.bf16.msra.mxu1 %v8005_v32 }
 0x281   : > { %6052 = vmatprep.subr.bf16.mxu1 %v8009_v18  ;;  %6030 = vmatpush3.bf16.msra.mxu0 %v7757_v30 }
 0x282   : > { %6032 = vmatprep.subr.bf16.mxu0 %v7760_v9 }
 0x284   : > { %6054 = vmatpush3.bf16.msra.mxu1 %v8024_v16 }
 0x285   : > { %6056 = vmatprep.subr.bf16.mxu1 %v8027_v10  ;;  %6034 = vmatpush3.bf16.msra.mxu0 %v7775_v3 }
 0x286   : > { %6036 = vmatprep.subr.bf16.mxu0 %v7778_v34 }
 0x288   : > { %6058 = vmatpush3.bf16.msra.mxu1 %v8042_v46 }
 0x289   : > { %6060 = vmatprep.subr.bf16.mxu1 %v8045_v17  ;;  %6038 = vmatpush3.bf16.msra.mxu0 %v7793_v0 }
 0x28a   : > { %6040 = vmatprep.subr.bf16.mxu0 %v7796_v26 }
 0x28c   : > { %6062 = vmatpush3.bf16.msra.mxu1 %v8060_v22 }
 0x28d   : > { %6064 = vmatprep.subr.bf16.mxu1 %v8063_v53  ;;  %6042 = vmatpush3.bf16.msra.mxu0 %v7811_v40 }
 0x28e   : > { %6076 = vmatprep.subr.bf16.mxu0 %v8117_v8 }
 0x290   : > { %6066 = vmatpush3.bf16.msra.mxu1 %v8078_v13  ;;  %2439 = vmatmul.mubr.f32.vlgmr.msra.gmra.mrb[14].mxu0 %v2363_v47  ;;  %v9940_v47 = vmov 0.0|0.0  }
 0x291   : > { %6068 = vmatprep.subr.bf16.mxu1 %v8081_v56  ;;  %6078 = vmatpush3.bf16.msra.mxu0 %v8132_v14 }
 0x292   : > { %2578 = vmatprep.mubr.f32.mxu0 %v2368_v42  ;;  %6080 = vmatprep.subr.bf16.mxu0 %v8135_v54  ;;  %v2370_v42 = vmul.f32 %v8272_v35, %v8272_v35 }
 0x294   : > { %6070 = vmatpush3.bf16.msra.mxu1 %v8096_v58 }
 0x295   : > { %6072 = vmatprep.subr.bf16.mxu1 %v8099_v23  ;;  %6082 = vmatpush3.bf16.msra.mxu0 %v8151_v20 }
 0x296   : > { %6084 = vmatprep.subr.bf16.mxu0 %v8154_v7 }
 0x298   : > { %6074 = vmatpush3.bf16.msra.mxu1 %v8114_v27 }
 0x299   : > { %6107 = vmatprep.subr.bf16.mxu1 %v9940_v47  ;;  %6086 = vmatpush3.bf16.msra.mxu0 %v8169_v41 }
 0x29a   : > { %6088 = vmatprep.subr.bf16.mxu0 %v8172_v33 }
 0x29b   : > { %2509 = vmatmul.mubr.f32.vlgmr.msra.gmra.mrb[10].mxu1 %v2365_v24  ;;  %v2367_v24 = vmul.f32 %v8258_v2, %v8258_v2 }
 0x29c   : > { %6109 = vmatpush1.bf16.msra.mxu1 %v7825_v63  ;;  %5317 = vmatprep.mubr.msk.f32.mxu1 %vm9756_vm6, %v2370_v42  ;;  %v9941_v42 = vld [vmem:[#allocation15_spill] sm:$0xff]  ;;  %vm9762_vm6 = vcmask 89088  }
 0x29d   : > { %6110 = vmatprep.subr.bf16.mxu1 %v9940_v47  ;;  %6090 = vmatpush3.bf16.msra.mxu0 %v8187_v5 }
 0x29e   : > { %6092 = vmatprep.subr.bf16.mxu0 %v8190_v15 }
 0x2a0   : > { %6112 = vmatpush1.bf16.msra.mxu1 %v7835_v55 }
 0x2a1   : > { %6113 = vmatprep.subr.bf16.mxu1 %v9940_v47  ;;  %6094 = vmatpush3.bf16.msra.mxu0 %v8205_v21 }
 0x2a2   : > { %6096 = vmatprep.subr.bf16.mxu0 %v8208_v52 }
 0x2a4   : > { %6115 = vmatpush1.bf16.msra.mxu1 %v7845_v39  ;;  %v9949_v39 = vld [vmem:[#allocation22_spill] sm:$0xff] }
 0x2a5   : > { %6116 = vmatprep.subr.bf16.mxu1 %v9940_v47  ;;  %6098 = vmatpush3.bf16.msra.mxu0 %v8223_v19 }
 0x2a6   : > { %6100 = vmatprep.subr.bf16.mxu0 %v8226_v62 }
 0x2a8   : > { %6118 = vmatpush1.bf16.msra.mxu1 %v7854_v48  ;;  %v9943_v48 = vld [vmem:[#allocation17_spill] sm:$0xff] }
 0x2a9   : > { %6119 = vmatprep.subr.bf16.mxu1 %v9940_v47  ;;  %6102 = vmatpush3.bf16.msra.mxu0 %v8241_v51 }
 0x2aa   : > { %6104 = vmatprep.subr.bf16.mxu0 %v8244_v29 }
 0x2ac   : > { %6121 = vmatpush1.bf16.msra.mxu1 %v7864_v6  ;;  %v9942_v6 = vld [vmem:[#allocation16_spill] sm:$0xff] }
 0x2ad   : > { %6122 = vmatprep.subr.bf16.mxu1 %v9940_v47  ;;  %6106 = vmatpush3.bf16.msra.mxu0 %v8253_v57 }
 0x2b0   : > { %6124 = vmatpush1.bf16.msra.mxu1 %v7874_v28  ;;  %2579 = vmatmul.mubr.f32.vlgmr.msra.gmra.mrb[16].mxu0 %v2367_v24  ;;  %v9944_v28 = vld [vmem:[#allocation18_spill] sm:$0xff]  ;;  %v9945_v24 = vld [vmem:[#allocation19_spill] sm:$0xff] }
 0x2b1   : > { %6125 = vmatprep.subr.bf16.mxu1 %v9940_v47 }
 0x2b4   : > { %6127 = vmatpush1.bf16.msra.mxu1 %v7884_v11  ;;  %v9946_v11 = vld [vmem:[#allocation20_spill] sm:$0xff] }
 0x2b5   : > { %6128 = vmatprep.subr.bf16.mxu1 %v9940_v47 }
 0x2b8   : > { %6130 = vmatpush1.bf16.msra.mxu1 %v9941_v42  ;;  %v9947_v42 = vld [vmem:[#allocation21_spill] sm:$0xff] }
 0x2b9   : > { %6131 = vmatprep.subr.bf16.mxu1 %v9940_v47 }
 0x2bc   : > { %6133 = vmatpush1.bf16.msra.mxu1 %v9942_v6  ;;  %v9948_v6 = vmov 0.0  }
 0x2bd   : > { %6134 = vmatprep.subr.bf16.mxu1 %v9940_v47 }
 0x2c0   : > { %6136 = vmatpush1.bf16.msra.mxu1 %v9943_v48  ;;  %v2369_v48 = vmul.f32 %v8270_v36, %v8270_v36 }
 0x2c1   : > { %6137 = vmatprep.subr.bf16.mxu1 %v9940_v47 }
 0x2c4   : > { %6139 = vmatpush1.bf16.msra.mxu1 %v9944_v28  ;;  %v6536_v28 = vmov 0  }
 0x2c5   : > { %6140 = vmatprep.subr.bf16.mxu1 %v9940_v47  ;;  %6481 = vset.pattern.permute.xlu1 %v6536_v28  ;;  %2760 = vst [vmem:[#allocation3] sm:$0xf] %v6536_v28  ;;  %2763 = vst.msk [vmem:[#allocation3 + $0x20] sm:$0xff] %vm2762_vm8, %v6536_v28  ;;  %vm2822_vm8 = vcmask 908288  }
 0x2c6   : > { %6482 = vset.pattern.permute.xlu0 %v6536_v28 }
 0x2c8   : > { %6142 = vmatpush1.bf16.msra.mxu1 %v9945_v24 }
 0x2c9   : > { %6143 = vmatprep.subr.bf16.mxu1 %v9940_v47 }
 0x2cc   : > { %6145 = vmatpush1.bf16.msra.mxu1 %v9946_v11 }
 0x2cd   : > { %6146 = vmatprep.subr.bf16.mxu1 %v9940_v47 }
 0x2d0   : > { %6148 = vmatpush1.bf16.msra.mxu1 %v9947_v42 }
 0x2d1   : > { %2640 = vmatprep.subr.mxu1 %v9948_v6 }
 0x2d4   : > { %2641 = vmatpush1.msra.mxu1 %v9949_v39 }
 0x2d5   : > { %2649 = vmatmul.mubr.f32.vlgmr.msra.gmra.mrb[12].mxu1 %v2369_v48 }
 0x2f2   : > { %v5485_v11 = vpop.f32.mrb[8].mxu0 }
 0x2f3   : > { %v5486_v24 = vpop.f32.mrb[9].mxu0 }
 0x2f4   : > { %v5487_v55 = vadd.f32 %v5486_v24, %v5485_v11 }
 0x312   : > { %v5520_v42 = vpop.f32.mrb[10].mxu0 }
 0x313   : > { %v5521_v63 = vpop.f32.mrb[11].mxu0 }
 0x314   : > { %v5522_v6 = vadd.f32 %v5521_v63, %v5520_v42 }
 0x316   : > { %v2220_v47 = vadd.f32 %v5522_v6, %v5487_v55 }
 0x343   : > { %v5555_v27 = vpop.f32.mrb[12].mxu0 }
 0x344   : > { %v5556_v23 = vpop.f32.mrb[13].mxu0 }
 0x345   : > { %v5557_v58 = vadd.f32 %v5556_v23, %v5555_v27 }
 0x347   : > { %v2290_v56 = vadd.f32 %v5557_v58, %v2220_v47 }
 0x34e   : > { %v2359_v39 = vpop.f32.mrb[8].mxu1 }
 0x34f   : > { %v2360_v13 = vadd.f32 %v2359_v39, %v2290_v56  ;;  %v2361_v53 = vpop.f32.mrb[9].mxu1 }
 0x351   : > { %v2654_v22 = vmul.f32 0.001953125, %v2360_v13 }
 0x353   : > { %2661 = vperm.xlu1 %6481, %v2654_v22   ;;  %v2656_v58 = vmul.f32 %v2654_v22, %v2654_v22 }
 0x363   : > { %v5590_v17 = vpop.f32.mrb[14].mxu0 }
 0x364   : > { %v5591_v48 = vpop.f32.mrb[15].mxu0 }
 0x365   : > { %v5592_v46 = vadd.f32 %v5591_v48, %v5590_v17  ;;  %v2712_v17 = vlaneseq }
 0x367   : > { %v2713_v39 = vshrl.u32 %v2712_v17, 7 }
 0x369   : > { %v2714_v48 = vsub.s32 0, %v2713_v39 }
 0x36e   : > { %v5625_v28 = vpop.f32.mrb[10].mxu1 }
 0x36f   : > { %v5626_v10 = vpop.f32.mrb[11].mxu1 }
 0x370   : > { %v5627_v16 = vadd.f32 %v5626_v10, %v5625_v28  ;;  %v2718_v10 = vsub.s32 1, %v2713_v39  ;;  %v2730_v28 = vsub.s32 4, %v2713_v39 }
 0x372   : > { %v2511_v11 = vadd.f32 %v5627_v16, %v5592_v46  ;;  %v2722_v16 = vsub.s32 2, %v2713_v39  ;;  %v2726_v46 = vsub.s32 3, %v2713_v39 }
 0x383   : > { %v5660_v24 = vpop.f32.mrb[16].mxu0 }
 0x384   : > { %v5661_v18 = vpop.f32.mrb[17].mxu0 }
 0x385   : > { %v5662_v63 = vadd.f32 %v5661_v18, %v5660_v24  ;;  %v232_v18 = vld [vmem:[%s9604_s1] sm:$0xff] }
 0x386   : > { %v2715_v24 = vrot.slane %v232_v18, %v2714_v48 }
 0x387   : > { %v2581_v55 = vadd.f32 %v5662_v63, %v2511_v11  ;;  %v2734_v11 = vsub.s32 5, %v2713_v39  ;;  %v2719_v63 = vrot.slane %v232_v18, %v2718_v10 }
 0x3a8   : > { %v2650_v6 = vpop.f32.mrb[12].mxu1 }
 0x3a9   : > { %v2651_v42 = vadd.f32 %v2650_v6, %v2581_v55  ;;  %v2652_v23 = vpop.f32.mrb[13].mxu1  ;;  %v2738_v55 = vsub.s32 6, %v2713_v39  ;;  %v2742_v6 = vsub.s32 7, %v2713_v39 }
 0x3aa   : > { %v2727_v23 = vrot.slane %v232_v18, %v2726_v46 }
 0x3ab   : > { %v2655_v27 = vmul.f32 0.001953125, %v2651_v42  ;;  %v2723_v42 = vrot.slane %v232_v18, %v2722_v16 }
 0x3ad   : > { %v2657_v56 = vsub.f32 %v2655_v27, %v2656_v58  ;;  %v2731_v58 = vrot.slane %v232_v18, %v2730_v28  ;;  %v2735_v27 = vrot.slane %v232_v18, %v2734_v11 }
 0x3af   : > { %v2658_v53 = vmax.f32 %v2657_v56, 0.0 }
 0x3b1   : > { %v2672_v13 = vadd.f32 1e-05, %v2658_v53 }
 0x3b3   : > { %6491 = vrsqrt.f32 %v2672_v13 }
 0x3bd   : > { %v6492_v47 = vpop.eup %6491 }
 0x3be   : > { %2676 = vperm.xlu0 %6482, %v6492_v47  }
 0x3d2   : > { %v2662_v22 = vpop.permute.xlu1 %2661 }
 0x3d3   : > { %v2664_v56 = vsub.f32 %v7982_v1, %v2662_v22  ;;  %v2665_v53 = vsub.f32 %v7986_v37, %v2662_v22  ;;  %v2666_v13 = vsub.f32 %v7958_v43, %v2662_v22  ;;  %v2667_v47 = vsub.f32 %v7960_v45, %v2662_v22 }
 0x3d4   : > { %v2668_v17 = vsub.f32 %v8258_v2, %v2662_v22  ;;  %v2669_v32 = vsub.f32 %v8260_v60, %v2662_v22  ;;  %v2670_v48 = vsub.f32 %v8270_v36, %v2662_v22  ;;  %v2671_v39 = vsub.f32 %v8272_v35, %v2662_v22 }
 0x3d5   : > { %v2739_v43 = vrot.slane %v232_v18, %v2738_v55  ;;  %v2743_v60 = vrot.slane %v232_v18, %v2742_v6 }
 0x43d   : > { %v2677_v10 = vpop.permute.xlu0 %2676 }
 0x43e   : > { %v2679_v16 = vmul.f32 %v2677_v10, %v2664_v56  ;;  %v2680_v46 = vmul.f32 %v2677_v10, %v2665_v53  ;;  %v2681_v28 = vmul.f32 %v2677_v10, %v2666_v13  ;;  %v2682_v11 = vmul.f32 %v2677_v10, %v2667_v47 }
 0x43f   : > { %v2683_v1 = vmul.f32 %v2677_v10, %v2668_v17  ;;  %v2684_v44 = vmul.f32 %v2677_v10, %v2669_v32  ;;  %v2685_v37 = vmul.f32 %v2677_v10, %v2670_v48  ;;  %v2686_v4 = vmul.f32 %v2677_v10, %v2671_v39 }
 0x440   : > { %vm2687_vm10 = vcmp.ge.f32.partialorder %v2679_v16, 0.0  ;;  %vm2688_vm12 = vcmp.ge.f32.partialorder %v2680_v46, 0.0  ;;  %vm2689_vm13 = vcmp.ge.f32.partialorder %v2681_v28, 0.0  ;;  %vm2690_vm14 = vcmp.ge.f32.partialorder %v2682_v11, 0.0 }
 0x441   : > { %vm2691_vm15 = vcmp.ge.f32.partialorder %v2683_v1, 0.0  ;;  %vm2692_vm5 = vcmp.ge.f32.partialorder %v2684_v44, 0.0  ;;  %vm2693_vm4 = vcmp.ge.f32.partialorder %v2685_v37, 0.0  ;;  %vm2694_vm7 = vcmp.ge.f32.partialorder %v2686_v4, 0.0 }
 0x442   : > { %v2695_v45 = vmul.f32 0.2, %v2679_v16  ;;  %v2696_v35 = vmul.f32 0.2, %v2680_v46  ;;  %v2697_v2 = vmul.f32 0.2, %v2681_v28 }
 0x443   : > { %v2698_v36 = vmul.f32 0.2, %v2682_v11  ;;  %v2699_v22 = vmul.f32 0.2, %v2683_v1  ;;  %v2700_v56 = vmul.f32 0.2, %v2684_v44 }
 0x444   : > { %v2701_v53 = vmul.f32 0.2, %v2685_v37  ;;  %v2702_v32 = vmul.f32 0.2, %v2686_v4  ;;  %v2703_v13 = vsel %vm2687_vm10, %v2679_v16, %v2695_v45  ;;  %v2704_v47 = vsel %vm2688_vm12, %v2680_v46, %v2696_v35 }
 0x445   : > { %v2705_v17 = vsel %vm2689_vm13, %v2681_v28, %v2697_v2  ;;  %v2706_v48 = vsel %vm2690_vm14, %v2682_v11, %v2698_v36  ;;  %v2707_v39 = vsel %vm2691_vm15, %v2683_v1, %v2699_v22  ;;  %v2708_v55 = vsel %vm2692_vm5, %v2684_v44, %v2700_v56 }
 0x446   : > { %v2709_v10 = vsel %vm2693_vm4, %v2685_v37, %v2701_v53  ;;  %v2710_v18 = vsel %vm2694_vm7, %v2686_v4, %v2702_v32  ;;  %v8384_v6 = vmul.f32 %v2715_v24, %v2703_v13  ;;  %v8386_v57 = vmul.f32 %v2719_v63, %v2704_v47  ;;  %v8544_v13 = vld [vmem:[%s9607_s4] sm:$0xff] }
 0x447   : > { %v8388_v29 = vmul.f32 %v2723_v42, %v2705_v17  ;;  %v8390_v16 = vmul.f32 %v2727_v23, %v2706_v48  ;;  %v8392_v46 = vmul.f32 %v2731_v58, %v2707_v39  ;;  %v8394_v28 = vmul.f32 %v2735_v27, %v2708_v55 }
 0x448   : > { %9950 = vst [vmem:[#allocation22_spill] sm:$0xff] %v8384_v6  ;;  %9951 = vst [vmem:[#allocation54_spill] sm:$0xff] %v8386_v57  ;;  %v8396_v11 = vmul.f32 %v2739_v43, %v2709_v10  ;;  %v8398_v1 = vmul.f32 %v2743_v60, %v2710_v18  ;;  %v5449_v44 = vpack.c.bf16 %v8386_v57, %v8384_v6  ;;  %vm2850_vm10 = vcmask 900096  }
 0x449   : > { %9952 = vst [vmem:[#allocation55_spill] sm:$0xff] %v8388_v29  ;;  %9953 = vst [vmem:[#allocation56_spill] sm:$0xff] %v8390_v16  ;;  %v5450_v4 = vpack.c.bf16 %v8390_v16, %v8388_v29  ;;  %v5451_v24 = vpack.c.bf16 %v8394_v28, %v8392_v46  ;;  %v8548_v47 = vcombine.high %v8544_v13, %v8544_v13  ;;  %vm2878_vm12 = vcmask 891904  }
 0x44a   : > { %9954 = vst [vmem:[#allocation57_spill] sm:$0xff] %v8392_v46  ;;  %9955 = vst [vmem:[#allocation58_spill] sm:$0xff] %v8394_v28  ;;  %v5452_v63 = vpack.c.bf16 %v8398_v1, %v8396_v11  ;;  %vm2910_vm13 = vcmask 826368   ;;  %vm2942_vm14 = vcmask 818176   ;;  %vm2974_vm15 = vcmask 809984  }
 0x44b   : > { %9956 = vst [vmem:[#allocation59_spill] sm:$0xff] %v8396_v11  ;;  %9957 = vst [vmem:[#allocation60_spill] sm:$0xff] %v8398_v1  ;;  %5437 = vmatprep.mubr.msk.bf16.mxu0 %vm1887_vm11, %v8548_v47  ;;  %5439 = vmatprep.mubr.msk.bf16.mxu1 %vm1887_vm11, %v8548_v47  ;;  %vm3006_vm5 = vcmask 744448   ;;  %vm3038_vm4 = vcmask 736256   ;;  %vm9757_vm7 = vcmask 728064  }
 0x44c   : > { %2796 = vst [vmem:[#allocation3 + $0x4] sm:$0xff] %v5449_v44  ;;  %2797 = vst [vmem:[#allocation3 + $0xc] sm:$0xff] %v5450_v4 }
 0x44d   : > { %2798 = vst [vmem:[#allocation3 + $0x14] sm:$0xff] %v5451_v24  ;;  %2799 = vst.msk [vmem:[#allocation3 + $0x1c] sm:$0xff] %vm7355_vm9, %v5452_v63 }
 0x453   : > { %v8410_v23 = vld [vmem:[#allocation3] sm:$0xff]  ;;  %v8412_v58 = vld [vmem:[#allocation3 + $0x8] sm:$0xff] }
 0x454   : > { %v8414_v27 = vld [vmem:[#allocation3 + $0x10] sm:$0xff]  ;;  %2837 = vrot.lane.b32.xlu0 %v8410_v23, %s6537_s12  ;;  %2809 = vrot.lane.b32.xlu1 %v8410_v23, %s6538_s14  ;;  %v3214_v37 = vrot.slane %v8410_v23, 4  ;;  %v8421_v43 = vld [vmem:[#allocation3 + $0x18] sm:$0xff]  ;;  %v8423_v45 = vld [vmem:[#allocation3 + $0x20] sm:$0xff]  ;;  %v3215_v35 = vrot.slane %v8412_v58, 4 }
 0x455   : > { %v3216_v2 = vrot.slane %v8414_v27, 4  ;;  %v3217_v60 = vrot.slane %v8421_v43, 4  ;;  %v3218_v36 = vrot.slane %v8423_v45, 4 }
 0x456   : > { %v8430_v22 = vsel %vm378_vm0, %v3214_v37, %v3215_v35 }
 0x457   : > { %v3220_v56 = vsel %vm378_vm0, %v3215_v35, %v3216_v2  ;;  %v3221_v53 = vsel %vm378_vm0, %v3216_v2, %v3217_v60  ;;  %v3222_v32 = vsel %vm378_vm0, %v3217_v60, %v3218_v36 }
 0x458   : > { %2865 = vrot.lane.b32.xlu0 %v8410_v23, %s6539_s15  ;;  %2811 = vrot.lane.b32.xlu1 %v8412_v58, %s6538_s14  ;;  %3228 = vst [vmem:[#allocation4 + $0x1a8] sm:$0xff] %v3220_v56  ;;  %3229 = vst [vmem:[#allocation4 + $0x1b0] sm:$0xff] %v3221_v53 }
 0x459   : > { %3230 = vst.msk [vmem:[#allocation4 + $0x1b8] sm:$0xff] %vm7355_vm9, %v3222_v32 }
 0x45c   : > { %2894 = vrot.lane.b32.xlu0 %v8410_v23, %s6540_s16  ;;  %2839 = vrot.lane.b32.xlu1 %v8412_v58, %s6537_s12 }
 0x460   : > { %2926 = vrot.lane.b32.xlu0 %v8410_v23, %s6541_s20  ;;  %2867 = vrot.lane.b32.xlu1 %v8412_v58, %s6539_s15 }
 0x464   : > { %2958 = vrot.lane.b32.xlu0 %v8410_v23, %s6542_s21  ;;  %2896 = vrot.lane.b32.xlu1 %v8412_v58, %s6540_s16 }
 0x468   : > { %2990 = vrot.lane.b32.xlu0 %v8410_v23, %s6543_s22  ;;  %2928 = vrot.lane.b32.xlu1 %v8412_v58, %s6541_s20 }
 0x46c   : > { %3022 = vrot.lane.b32.xlu0 %v8410_v23, %s6544_s8  ;;  %2960 = vrot.lane.b32.xlu1 %v8412_v58, %s6542_s21 }
 0x470   : > { %3054 = vrot.lane.b32.xlu0 %v8410_v23, %s9735_s9  ;;  %2992 = vrot.lane.b32.xlu1 %v8412_v58, %s6543_s22 }
 0x474   : > { %3086 = vrot.lane.b32.xlu0 %v8410_v23, %s9737_s10  ;;  %3024 = vrot.lane.b32.xlu1 %v8412_v58, %s6544_s8 }
 0x478   : > { %3118 = vrot.lane.b32.xlu0 %v8410_v23, %s9739_s11  ;;  %3056 = vrot.lane.b32.xlu1 %v8412_v58, %s9735_s9  ;;  %s6551_s9 = smov 119  }
 0x47c   : > { %3150 = vrot.lane.b32.xlu0 %v8410_v23, %s6548_s23  ;;  %3088 = vrot.lane.b32.xlu1 %v8412_v58, %s9737_s10  ;;  %s6552_s10 = smov 118  }
 0x480   : > { %3182 = vrot.lane.b32.xlu0 %v8410_v23, %s6549_s13  ;;  %3120 = vrot.lane.b32.xlu1 %v8412_v58, %s9739_s11  ;;  %s6553_s11 = smov 117  }
 0x484   : > { %3231 = vrot.lane.b32.xlu0 %v8410_v23, %s6550_s17  ;;  %3152 = vrot.lane.b32.xlu1 %v8412_v58, %s6548_s23 }
 0x488   : > { %3263 = vrot.lane.b32.xlu0 %v8410_v23, %s6551_s9  ;;  %3184 = vrot.lane.b32.xlu1 %v8412_v58, %s6549_s13 }
 0x48c   : > { %3295 = vrot.lane.b32.xlu0 %v8410_v23, %s6552_s10  ;;  %3233 = vrot.lane.b32.xlu1 %v8412_v58, %s6550_s17 }
 0x490   : > { %3327 = vrot.lane.b32.xlu0 %v8410_v23, %s6553_s11  ;;  %3265 = vrot.lane.b32.xlu1 %v8412_v58, %s6551_s9 }
 0x494   : > { %3359 = vrot.lane.b32.xlu0 %v8410_v23, %s6508_s25  ;;  %3297 = vrot.lane.b32.xlu1 %v8412_v58, %s6552_s10 }
 0x498   : > { %3390 = vrot.lane.b32.xlu0 %v8410_v23, %s6507_s24  ;;  %3329 = vrot.lane.b32.xlu1 %v8412_v58, %s6553_s11 }
 0x49c   : > { %3421 = vrot.lane.b32.xlu0 %v8410_v23, %s6509_s26  ;;  %3361 = vrot.lane.b32.xlu1 %v8412_v58, %s6508_s25 }
 0x4a0   : > { %3452 = vrot.lane.b32.xlu0 %v8410_v23, %s6510_s27  ;;  %3392 = vrot.lane.b32.xlu1 %v8412_v58, %s6507_s24 }
 0x4a4   : > { %3483 = vrot.lane.b32.xlu0 %v8410_v23, %s9741_s28  ;;  %3423 = vrot.lane.b32.xlu1 %v8412_v58, %s6509_s26 }
 0x4a8   : > { %3514 = vrot.lane.b32.xlu0 %v8410_v23, %s9743_s29  ;;  %3454 = vrot.lane.b32.xlu1 %v8412_v58, %s6510_s27 }
 0x4ac   : > { %3545 = vrot.lane.b32.xlu0 %v8410_v23, %s6513_s30  ;;  %3485 = vrot.lane.b32.xlu1 %v8412_v58, %s9741_s28  ;;  %s9959_s28 = smov 89  }
 0x4b0   : > { %3576 = vrot.lane.b32.xlu0 %v8410_v23, %s6514_s6  ;;  %3516 = vrot.lane.b32.xlu1 %v8412_v58, %s9743_s29  ;;  %s9960_s29 = smov 11  }
 0x4b4   : > { %3607 = vrot.lane.b32.xlu0 %v8410_v23, %s6515_s7  ;;  %3547 = vrot.lane.b32.xlu1 %v8412_v58, %s6513_s30 }
 0x4b8   : > { %2813 = vrot.lane.b32.xlu0 %v8414_v27, %s6538_s14  ;;  %3578 = vrot.lane.b32.xlu1 %v8412_v58, %s6514_s6 }
 0x4bc   : > { %2841 = vrot.lane.b32.xlu0 %v8414_v27, %s6537_s12  ;;  %3609 = vrot.lane.b32.xlu1 %v8412_v58, %s6515_s7 }
 0x4c0   : > { %2869 = vrot.lane.b32.xlu0 %v8414_v27, %s6539_s15  ;;  %2815 = vrot.lane.b32.xlu1 %v8421_v43, %s6538_s14  ;;  %s9962_s14 = smov 28  }
 0x4c4   : > { %2898 = vrot.lane.b32.xlu0 %v8414_v27, %s6540_s16  ;;  %2843 = vrot.lane.b32.xlu1 %v8421_v43, %s6537_s12  ;;  %s9961_s12 = smov 10  }
 0x4c6   : > { %v2838_v17 = vpop.permute.xlu0 %2837  ;;  %v2810_v48 = vpop.permute.xlu1 %2809 }
 0x4c7   : > { %v2817_v10 = vrot.slane %v2810_v48, 4  ;;  %v2845_v23 = vrot.slane %v2838_v17, 4 }
 0x4c8   : > { %2930 = vrot.lane.b32.xlu0 %v8414_v27, %s6541_s20  ;;  %2871 = vrot.lane.b32.xlu1 %v8421_v43, %s6539_s15  ;;  %s9963_s15 = smov 27  }
 0x4ca   : > { %v2866_v39 = vpop.permute.xlu0 %2865  ;;  %v8566_v55 = vpop.permute.xlu1 %2811 }
 0x4cb   : > { %v9749_v18 = vrot.slane %v8566_v55, 4  ;;  %v2873_v36 = vrot.slane %v2866_v39, 4 }
 0x4cc   : > { %2962 = vrot.lane.b32.xlu0 %v8414_v27, %s6542_s21  ;;  %2900 = vrot.lane.b32.xlu1 %v8421_v43, %s6540_s16 }
 0x4cd   : > { %v2821_v44 = vsel %vm378_vm0, %v2817_v10, %v9749_v18 }
 0x4ce   : > { %v2823_v4 = vsel %vm2822_vm8, %v2810_v48, %v2821_v44  ;;  %v2895_v24 = vpop.permute.xlu0 %2894  ;;  %v8577_v63 = vpop.permute.xlu1 %2839 }
 0x4cf   : > { %v9747_v58 = vrot.slane %v8577_v63, 4 }
 0x4d0   : > { %2994 = vrot.lane.b32.xlu0 %v8414_v27, %s6543_s22  ;;  %2932 = vrot.lane.b32.xlu1 %v8421_v43, %s6541_s20 }
 0x4d1   : > { %v2849_v37 = vsel %vm378_vm0, %v2845_v23, %v9747_v58  ;;  %v2904_v23 = vrot.slane %v2895_v24, 4 }
 0x4d2   : > { %v2851_v35 = vsel %vm2850_vm10, %v2838_v17, %v2849_v37  ;;  %v2927_v2 = vpop.permute.xlu0 %2926  ;;  %v8588_v60 = vpop.permute.xlu1 %2867 }
 0x4d3   : > { %v9745_v56 = vrot.slane %v8588_v60, 4  ;;  %v5324_v53 = vcombine.low %v2823_v4, %v2851_v35  ;;  %v5325_v32 = vcombine.high %v2823_v4, %v2851_v35 }
 0x4d4   : > { %3026 = vrot.lane.b32.xlu0 %v8414_v27, %s6544_s8  ;;  %2964 = vrot.lane.b32.xlu1 %v8421_v43, %s6542_s21 }
 0x4d5   : > { %v2877_v48 = vsel %vm378_vm0, %v2873_v36, %v9745_v56  ;;  %4320 = vmatprep.subr.bf16.mxu0 %v5325_v32 }
 0x4d6   : > { %v2879_v17 = vsel %vm2878_vm12, %v2866_v39, %v2877_v48  ;;  %v2959_v10 = vpop.permute.xlu0 %2958  ;;  %v8599_v44 = vpop.permute.xlu1 %2896  ;;  %4321 = vmatpush1.bf16.msra.mxu0 %v5324_v53  ;;  %v2936_v53 = vrot.slane %v2927_v2, 4 }
 0x4d7   : > { %v9746_v4 = vrot.slane %v8599_v44, 4  ;;  %v2968_v58 = vrot.slane %v2959_v10, 4 }
 0x4d8   : > { %3058 = vrot.lane.b32.xlu0 %v8414_v27, %s9959_s28  ;;  %2996 = vrot.lane.b32.xlu1 %v8421_v43, %s6543_s22 }
 0x4d9   : > { %v2909_v37 = vsel %vm378_vm0, %v2904_v23, %v9746_v4 }
 0x4da   : > { %v2911_v39 = vsel %vm2910_vm13, %v2895_v24, %v2909_v37  ;;  %v2991_v35 = vpop.permute.xlu0 %2990  ;;  %v8610_v36 = vpop.permute.xlu1 %2928 }
 0x4db   : > { %v9748_v32 = vrot.slane %v8610_v36, 4  ;;  %v5332_v48 = vcombine.low %v2879_v17, %v2911_v39  ;;  %v5333_v56 = vcombine.high %v2879_v17, %v2911_v39 }
 0x4dc   : > { %3090 = vrot.lane.b32.xlu0 %v8414_v27, %s9960_s29  ;;  %3028 = vrot.lane.b32.xlu1 %v8421_v43, %s6544_s8 }
 0x4dd   : > { %v2941_v23 = vsel %vm378_vm0, %v2936_v53, %v9748_v32  ;;  %4322 = vmatprep.subr.bf16.mxu0 %v5333_v56 }
 0x4de   : > { %v2943_v24 = vsel %vm2942_vm14, %v2927_v2, %v2941_v23  ;;  %v3023_v37 = vpop.permute.xlu0 %3022  ;;  %v8621_v4 = vpop.permute.xlu1 %2960  ;;  %4323 = vmatpush1.bf16.msra.mxu0 %v5332_v48  ;;  %v3000_v48 = vrot.slane %v2991_v35, 4 }
 0x4df   : > { %v9750_v17 = vrot.slane %v8621_v4, 4  ;;  %v3032_v1 = vrot.slane %v3023_v37, 4 }
 0x4e0   : > { %3122 = vrot.lane.b32.xlu0 %v8414_v27, %s9961_s12  ;;  %3060 = vrot.lane.b32.xlu1 %v8421_v43, %s9959_s28 }
 0x4e1   : > { %v2973_v56 = vsel %vm378_vm0, %v2968_v58, %v9750_v17 }
 0x4e2   : > { %v2975_v2 = vsel %vm2974_vm15, %v2959_v10, %v2973_v56  ;;  %v3055_v39 = vpop.permute.xlu0 %3054  ;;  %v8632_v53 = vpop.permute.xlu1 %2992 }
 0x4e3   : > { %v9752_v23 = vrot.slane %v8632_v53, 4  ;;  %v5340_v32 = vcombine.low %v2943_v24, %v2975_v2  ;;  %v5341_v18 = vcombine.high %v2943_v24, %v2975_v2 }
 0x4e4   : > { %3154 = vrot.lane.b32.xlu0 %v8414_v27, %s6548_s23  ;;  %3092 = vrot.lane.b32.xlu1 %v8421_v43, %s9960_s29 }
 0x4e5   : > { %v3005_v58 = vsel %vm378_vm0, %v3000_v48, %v9752_v23  ;;  %4324 = vmatprep.subr.bf16.mxu0 %v5341_v18 }
 0x4e6   : > { %v3007_v10 = vsel %vm3006_vm5, %v2991_v35, %v3005_v58  ;;  %v3087_v56 = vpop.permute.xlu0 %3086  ;;  %v8643_v17 = vpop.permute.xlu1 %3024  ;;  %4325 = vmatpush1.bf16.msra.mxu0 %v5340_v32  ;;  %v3064_v32 = vrot.slane %v3055_v39, 4 }
 0x4e7   : > { %v9754_v24 = vrot.slane %v8643_v17, 4  ;;  %v3096_v28 = vrot.slane %v3087_v56, 4 }
 0x4e8   : > { %3186 = vrot.lane.b32.xlu0 %v8414_v27, %s6549_s13  ;;  %3124 = vrot.lane.b32.xlu1 %v8421_v43, %s9961_s12 }
 0x4e9   : > { %v3037_v18 = vsel %vm378_vm0, %v3032_v1, %v9754_v24 }
 0x4ea   : > { %v3039_v35 = vsel %vm3038_vm4, %v3023_v37, %v3037_v18  ;;  %v3119_v2 = vpop.permute.xlu0 %3118  ;;  %v8654_v48 = vpop.permute.xlu1 %3056 }
 0x4eb   : > { %v9758_v58 = vrot.slane %v8654_v48, 4  ;;  %v5348_v23 = vcombine.low %v3007_v10, %v3039_v35  ;;  %v5349_v11 = vcombine.high %v3007_v10, %v3039_v35 }
 0x4ec   : > { %3235 = vrot.lane.b32.xlu0 %v8414_v27, %s6550_s17  ;;  %3156 = vrot.lane.b32.xlu1 %v8421_v43, %s6548_s23 }
 0x4ed   : > { %v3069_v1 = vsel %vm378_vm0, %v3064_v32, %v9758_v58  ;;  %4326 = vmatprep.subr.bf16.mxu0 %v5349_v11 }
 0x4ee   : > { %v3071_v37 = vsel %vm9757_vm7, %v3055_v39, %v3069_v1  ;;  %v3151_v18 = vpop.permute.xlu0 %3150  ;;  %v8665_v24 = vpop.permute.xlu1 %3088  ;;  %4327 = vmatpush1.bf16.msra.mxu0 %v5348_v23  ;;  %vm9763_vm7 = vcmask 80896   ;;  %v3128_v23 = vrot.slane %v3119_v2, 4 }
 0x4ef   : > { %v9760_v10 = vrot.slane %v8665_v24, 4  ;;  %v3160_v16 = vrot.slane %v3151_v18, 4 }
 0x4f0   : > { %3267 = vrot.lane.b32.xlu0 %v8414_v27, %s6551_s9  ;;  %3188 = vrot.lane.b32.xlu1 %v8421_v43, %s6549_s13 }
 0x4f1   : > { %v3101_v11 = vsel %vm378_vm0, %v3096_v28, %v9760_v10 }
 0x4f2   : > { %v3103_v39 = vsel %vm9762_vm6, %v3087_v56, %v3101_v11  ;;  %v3183_v35 = vpop.permute.xlu0 %3182  ;;  %v8676_v32 = vpop.permute.xlu1 %3120  ;;  %vm9766_vm6 = vcmask 72704  }
 0x4f3   : > { %v9764_v1 = vrot.slane %v8676_v32, 4  ;;  %v5356_v58 = vcombine.low %v3071_v37, %v3103_v39  ;;  %v5357_v46 = vcombine.high %v3071_v37, %v3103_v39 }
 0x4f4   : > { %3299 = vrot.lane.b32.xlu0 %v8414_v27, %s6552_s10  ;;  %3237 = vrot.lane.b32.xlu1 %v8421_v43, %s6550_s17 }
 0x4f5   : > { %v3133_v28 = vsel %vm378_vm0, %v3128_v23, %v9764_v1  ;;  %4328 = vmatprep.subr.bf16.mxu0 %v5357_v46 }
 0x4f6   : > { %v3135_v56 = vsel %vm9763_vm7, %v3119_v2, %v3133_v28  ;;  %v3232_v11 = vpop.permute.xlu0 %3231  ;;  %v8687_v10 = vpop.permute.xlu1 %3152  ;;  %4329 = vmatpush1.bf16.msra.mxu0 %v5356_v58  ;;  %vm9770_vm7 = vcmask 7168   ;;  %v3192_v58 = vrot.slane %v3183_v35, 4 }
 0x4f7   : > { %v9767_v37 = vrot.slane %v8687_v10, 4  ;;  %v3241_v57 = vrot.slane %v3232_v11, 4 }
 0x4f8   : > { %3331 = vrot.lane.b32.xlu0 %v8414_v27, %s6553_s11  ;;  %3269 = vrot.lane.b32.xlu1 %v8421_v43, %s6551_s9 }
 0x4f9   : > { %v3165_v46 = vsel %vm378_vm0, %v3160_v16, %v9767_v37 }
 0x4fa   : > { %v3167_v2 = vsel %vm9766_vm6, %v3151_v18, %v3165_v46  ;;  %v3264_v39 = vpop.permute.xlu0 %3263  ;;  %v8698_v23 = vpop.permute.xlu1 %3184  ;;  %vm9771_vm6 = vcmask 1039360  }
 0x4fb   : > { %v9774_v28 = vrot.slane %v8698_v23, 4  ;;  %v5364_v1 = vcombine.low %v3135_v56, %v3167_v2  ;;  %v5365_v29 = vcombine.high %v3135_v56, %v3167_v2 }
 0x4fc   : > { %3363 = vrot.lane.b32.xlu0 %v8414_v27, %s6508_s25  ;;  %3301 = vrot.lane.b32.xlu1 %v8421_v43, %s6552_s10 }
 0x4fd   : > { %v3197_v16 = vsel %vm378_vm0, %v3192_v58, %v9774_v28  ;;  %4330 = vmatprep.subr.bf16.mxu0 %v5365_v29  ;;  %v3273_v58 = vrot.slane %v3264_v39, 4 }
 0x4fe   : > { %v3199_v18 = vsel %vm9770_vm7, %v3183_v35, %v3197_v16  ;;  %v3296_v46 = vpop.permute.xlu0 %3295  ;;  %v8709_v37 = vpop.permute.xlu1 %3233  ;;  %4331 = vmatpush1.bf16.msra.mxu0 %v5364_v1  ;;  %vm9775_vm7 = vcmask 973824  }
 0x4ff   : > { %v9772_v56 = vrot.slane %v8709_v37, 4  ;;  %v5372_v2 = vcombine.low %v3199_v18, %v8430_v22  ;;  %v5373_v6 = vcombine.high %v3199_v18, %v8430_v22  ;;  %v3305_v39 = vrot.slane %v3296_v46, 4 }
 0x500   : > { %3394 = vrot.lane.b32.xlu0 %v8414_v27, %s6507_s24  ;;  %3333 = vrot.lane.b32.xlu1 %v8421_v43, %s6553_s11 }
 0x501   : > { %v3246_v29 = vsel %vm378_vm0, %v3241_v57, %v9772_v56  ;;  %4332 = vmatprep.subr.bf16.mxu0 %v5373_v6 }
 0x502   : > { %v3248_v35 = vsel %vm9771_vm6, %v3246_v29, %v8709_v37  ;;  %v3328_v1 = vpop.permute.xlu0 %3327  ;;  %v8723_v11 = vpop.permute.xlu1 %3265  ;;  %4333 = vmatpush1.bf16.msra.mxu0 %v5372_v2  ;;  %vm3311_vm6 = vcmask 965632  }
 0x503   : > { %v9773_v22 = vrot.slane %v8723_v11, 4  ;;  %v3337_v28 = vrot.slane %v3328_v1, 4 }
 0x504   : > { %3425 = vrot.lane.b32.xlu0 %v8414_v27, %s6509_s26  ;;  %3365 = vrot.lane.b32.xlu1 %v8421_v43, %s6508_s25 }
 0x505   : > { %v3278_v57 = vsel %vm378_vm0, %v3273_v58, %v9773_v22 }
 0x506   : > { %v3280_v6 = vsel %vm9775_vm7, %v3278_v57, %v8723_v11  ;;  %v3360_v16 = vpop.permute.xlu0 %3359  ;;  %v8735_v18 = vpop.permute.xlu1 %3297  ;;  %vm3343_vm7 = vcmask 957440  }
 0x507   : > { %v9776_v2 = vrot.slane %v8735_v18, 4  ;;  %v5380_v29 = vcombine.low %v3248_v35, %v3280_v6  ;;  %v5381_v56 = vcombine.high %v3248_v35, %v3280_v6  ;;  %v3369_v1 = vrot.slane %v3360_v16, 4 }
 0x508   : > { %3456 = vrot.lane.b32.xlu0 %v8414_v27, %s6510_s27  ;;  %3396 = vrot.lane.b32.xlu1 %v8421_v43, %s6507_s24 }
 0x509   : > { %v3310_v58 = vsel %vm378_vm0, %v3305_v39, %v9776_v2  ;;  %4334 = vmatprep.subr.bf16.mxu0 %v5381_v56 }
 0x50a   : > { %v3312_v57 = vsel %vm3311_vm6, %v3310_v58, %v8735_v18  ;;  %v3391_v22 = vpop.permute.xlu0 %3390  ;;  %v8747_v46 = vpop.permute.xlu1 %3329  ;;  %4335 = vmatpush1.bf16.msra.mxu0 %v5380_v29 }
 0x50b   : > { %v9779_v35 = vrot.slane %v8747_v46, 4  ;;  %v3400_v62 = vrot.slane %v3391_v22, 4 }
 0x50c   : > { %3487 = vrot.lane.b32.xlu0 %v8414_v27, %s9962_s14  ;;  %3427 = vrot.lane.b32.xlu1 %v8421_v43, %s6509_s26 }
 0x50d   : > { %v3342_v56 = vsel %vm378_vm0, %v3337_v28, %v9779_v35 }
 0x50e   : > { %v3344_v6 = vsel %vm3343_vm7, %v3342_v56, %v8747_v46  ;;  %v3422_v39 = vpop.permute.xlu0 %3421  ;;  %v8759_v58 = vpop.permute.xlu1 %3361 }
 0x50f   : > { %v9782_v29 = vrot.slane %v8759_v58, 4  ;;  %v5388_v2 = vcombine.low %v3312_v57, %v3344_v6  ;;  %v5389_v51 = vcombine.high %v3312_v57, %v3344_v6 }
 0x510   : > { %3518 = vrot.lane.b32.xlu0 %v8414_v27, %s9963_s15  ;;  %3458 = vrot.lane.b32.xlu1 %v8421_v43, %s6510_s27 }
 0x511   : > { %v3374_v28 = vsel %vm378_vm0, %v3369_v1, %v9782_v29  ;;  %4336 = vmatprep.subr.bf16.mxu0 %v5389_v51 }
 0x512   : > { %v3375_v56 = vsel %vm380_vm2, %v3374_v28, %v8759_v58  ;;  %v3453_v35 = vpop.permute.xlu0 %3452  ;;  %v8771_v16 = vpop.permute.xlu1 %3392  ;;  %4337 = vmatpush1.bf16.msra.mxu0 %v5388_v2  ;;  %v3431_v2 = vrot.slane %v3422_v39, 4 }
 0x513   : > { %v9785_v57 = vrot.slane %v8771_v16, 4  ;;  %v3462_v52 = vrot.slane %v3453_v35, 4 }
 0x514   : > { %3549 = vrot.lane.b32.xlu0 %v8414_v27, %s6513_s30  ;;  %3489 = vrot.lane.b32.xlu1 %v8421_v43, %s9962_s14 }
 0x515   : > { %v3405_v51 = vsel %vm378_vm0, %v3400_v62, %v9785_v57 }
 0x516   : > { %v3406_v6 = vsel %vm9788_vm1, %v3405_v51, %v8771_v16  ;;  %v3484_v1 = vpop.permute.xlu0 %3483  ;;  %v8783_v28 = vpop.permute.xlu1 %3423  ;;  %vm9964_vm1 = vcmask 236544  }
 0x517   : > { %v9789_v22 = vrot.slane %v8783_v28, 4  ;;  %v5396_v29 = vcombine.low %v3375_v56, %v3406_v6  ;;  %v5397_v19 = vcombine.high %v3375_v56, %v3406_v6 }
 0x518   : > { %3580 = vrot.lane.b32.xlu0 %v8414_v27, %s6514_s6  ;;  %3520 = vrot.lane.b32.xlu1 %v8421_v43, %s9963_s15 }
 0x519   : > { %v3436_v62 = vsel %vm378_vm0, %v3431_v2, %v9789_v22  ;;  %4338 = vmatprep.subr.bf16.mxu0 %v5397_v19 }
 0x51a   : > { %v3437_v51 = vsel %vm9793_vm3, %v3436_v62, %v8783_v28  ;;  %v3515_v57 = vpop.permute.xlu0 %3514  ;;  %v8795_v39 = vpop.permute.xlu1 %3454  ;;  %4339 = vmatpush1.bf16.msra.mxu0 %v5396_v29  ;;  %v3493_v29 = vrot.slane %v3484_v1, 4  ;;  %vm9966_vm3 = vcmask 220160  }
 0x51b   : > { %v9792_v56 = vrot.slane %v8795_v39, 4 }
 0x51c   : > { %3611 = vrot.lane.b32.xlu0 %v8414_v27, %s6515_s7  ;;  %3551 = vrot.lane.b32.xlu1 %v8421_v43, %s6513_s30 }
 0x51d   : > { %v3467_v19 = vsel %vm378_vm0, %v3462_v52, %v9792_v56  ;;  %v3524_v56 = vrot.slane %v3515_v57, 4 }
 0x51e   : > { %v3468_v6 = vsel %vm9964_vm1, %v3467_v19, %v8795_v39  ;;  %v3546_v2 = vpop.permute.xlu0 %3545  ;;  %v8807_v62 = vpop.permute.xlu1 %3485  ;;  %vm9965_vm1 = vcmask 228352  }
 0x51f   : > { %v9794_v35 = vrot.slane %v8807_v62, 4  ;;  %v5404_v22 = vcombine.low %v3437_v51, %v3468_v6  ;;  %v5405_v21 = vcombine.high %v3437_v51, %v3468_v6 }
 0x520   : > { %2902 = vrot.lane.b32.xlu0 %v8423_v45, %s6540_s16  ;;  %3582 = vrot.lane.b32.xlu1 %v8421_v43, %s6514_s6 }
 0x521   : > { %v3498_v52 = vsel %vm378_vm0, %v3493_v29, %v9794_v35  ;;  %4340 = vmatprep.subr.bf16.mxu0 %v5405_v21 }
 0x522   : > { %v3499_v27 = vsel %vm9965_vm1, %v3498_v52, %v8807_v62  ;;  %v3577_v19 = vpop.permute.xlu0 %3576  ;;  %v8819_v1 = vpop.permute.xlu1 %3516  ;;  %4341 = vmatpush1.bf16.msra.mxu0 %v5404_v22  ;;  %v3555_v22 = vrot.slane %v3546_v2, 4  ;;  %vm9969_vm1 = vcmask 146432  }
 0x523   : > { %v9797_v51 = vrot.slane %v8819_v1, 4 }
 0x524   : > { %2966 = vrot.lane.b32.xlu0 %v8423_v45, %s6542_s21  ;;  %3613 = vrot.lane.b32.xlu1 %v8421_v43, %s6515_s7 }
 0x525   : > { %v3529_v21 = vsel %vm378_vm0, %v3524_v56, %v9797_v51  ;;  %v3586_v51 = vrot.slane %v3577_v19, 4 }
 0x526   : > { %v3530_v6 = vsel %vm9966_vm3, %v3529_v21, %v8819_v1  ;;  %v3608_v29 = vpop.permute.xlu0 %3607  ;;  %v8831_v52 = vpop.permute.xlu1 %3547  ;;  %vm9967_vm3 = vcmask 154624  }
 0x527   : > { %v9798_v57 = vrot.slane %v8831_v52, 4  ;;  %v5412_v35 = vcombine.low %v3499_v27, %v3530_v6  ;;  %v5413_v15 = vcombine.high %v3499_v27, %v3530_v6 }
 0x528   : > { %3030 = vrot.lane.b32.xlu0 %v8423_v45, %s6544_s8  ;;  %2934 = vrot.lane.b32.xlu1 %v8423_v45, %s6541_s20 }
 0x529   : > { %v3560_v43 = vsel %vm378_vm0, %v3555_v22, %v9798_v57  ;;  %4342 = vmatprep.subr.bf16.mxu0 %v5413_v15  ;;  %v9968_v22 = vrot.slane %v8566_v55, 4  ;;  %v3617_v57 = vrot.slane %v3608_v29, 4 }
 0x52a   : > { %v3561_v56 = vsel %vm9967_vm3, %v3560_v43, %v8831_v52  ;;  %v2814_v21 = vpop.permute.xlu0 %2813  ;;  %v8843_v2 = vpop.permute.xlu1 %3578  ;;  %4343 = vmatpush1.bf16.msra.mxu0 %v5412_v35  ;;  %vm9971_vm3 = vcmask 138240  }
 0x52b   : > { %v2819_v27 = vrot.slane %v2814_v21, 4  ;;  %v9811_v6 = vrot.slane %v8843_v2, 4 }
 0x52c   : > { %3094 = vrot.lane.b32.xlu0 %v8423_v45, %s9960_s29  ;;  %2998 = vrot.lane.b32.xlu1 %v8423_v45, %s6543_s22 }
 0x52d   : > { %v2824_v15 = vsel %vm378_vm0, %v9968_v22, %v2819_v27  ;;  %v3591_v43 = vsel %vm378_vm0, %v3586_v51, %v9811_v6  ;;  %v9970_v51 = vrot.slane %v8577_v63, 4 }
 0x52e   : > { %v2825_v35 = vsel %vm2822_vm8, %v8566_v55, %v2824_v15  ;;  %v3592_v19 = vsel %vm9969_vm1, %v3591_v43, %v8843_v2  ;;  %v2842_v5 = vpop.permute.xlu0 %2841  ;;  %v8860_v33 = vpop.permute.xlu1 %3609 }
 0x52f   : > { %v2847_v41 = vrot.slane %v2842_v5, 4  ;;  %v9816_v7 = vrot.slane %v8860_v33, 4  ;;  %v5420_v20 = vcombine.low %v3561_v56, %v3592_v19  ;;  %v5421_v54 = vcombine.high %v3561_v56, %v3592_v19 }
 0x530   : > { %3158 = vrot.lane.b32.xlu0 %v8423_v45, %s6548_s23  ;;  %3062 = vrot.lane.b32.xlu1 %v8423_v45, %s9959_s28 }
 0x531   : > { %v2852_v55 = vsel %vm378_vm0, %v9970_v51, %v2847_v41  ;;  %v3622_v29 = vsel %vm378_vm0, %v3617_v57, %v9816_v7  ;;  %4344 = vmatprep.subr.bf16.mxu0 %v5421_v54 }
 0x532   : > { %v2853_v22 = vsel %vm2850_vm10, %v8577_v63, %v2852_v55  ;;  %v3623_v56 = vsel %vm9971_vm3, %v3622_v29, %v8860_v33  ;;  %v2870_v15 = vpop.permute.xlu0 %2869  ;;  %v2816_v43 = vpop.permute.xlu1 %2815  ;;  %4345 = vmatpush1.bf16.msra.mxu0 %v5420_v20  ;;  %v9972_v63 = vrot.slane %v8588_v60, 4  ;;  %vm9986_vm3 = vcmask 72704  }
 0x533   : > { %v2875_v19 = vrot.slane %v2870_v15, 4  ;;  %v2820_v6 = vrot.slane %v2816_v43, 4  ;;  %v5429_v14 = vcombine.high %v3623_v56, %v3623_v56  ;;  %v5326_v8 = vcombine.low %v2825_v35, %v2853_v22 }
 0x534   : > { %3239 = vrot.lane.b32.xlu0 %v8423_v45, %s6550_s17  ;;  %3126 = vrot.lane.b32.xlu1 %v8423_v45, %s9961_s12  ;;  %v5327_v54 = vcombine.high %v2825_v35, %v2853_v22  ;;  %v5428_v57 = vcombine.low %v3623_v56, %v3623_v56 }
 0x535   : > { %v2880_v51 = vsel %vm378_vm0, %v9972_v63, %v2875_v19  ;;  %v2826_v55 = vsel %vm378_vm0, %v2819_v27, %v2820_v6  ;;  %v2828_v20 = vsel %vm2822_vm8, %v2816_v43, %v2820_v6  ;;  %5436 = vmatprep.subr.msk.bf16.mxu0 %vm378_vm0, %v5429_v14  ;;  %v8895_v27 = vcombine.low %v8544_v13, %v8544_v13 }
 0x536   : > { %v2881_v29 = vsel %vm2878_vm12, %v8588_v60, %v2880_v51  ;;  %v2827_v7 = vsel %vm2822_vm8, %v2814_v21, %v2826_v55  ;;  %2836 = vst.msk [vmem:[#allocation4 + $0x18] sm:$0xff] %vm7355_vm9, %v2828_v20  ;;  %v2899_v35 = vpop.permute.xlu0 %2898  ;;  %v2844_v22 = vpop.permute.xlu1 %2843  ;;  %4361 = vmatprep.subr.bf16.mxu1 %v5327_v54  ;;  %v4297_v56 = vsel %vm378_vm0, %v5428_v57, 0  ;;  %v9973_v14 = vrot.slane %v8599_v44, 4 }
 0x537   : > { %v2906_v6 = vrot.slane %v2899_v35, 4  ;;  %v2848_v43 = vrot.slane %v2844_v22, 4  ;;  %4362 = vmatpush1.bf16.msra.mxu1 %v5326_v8  ;;  %4347 = vmatpush1.bf16.msra.mxu0 %v4297_v56  ;;  %vm9979_vm8 = vcmask 728064  }
 0x538   : > { %3303 = vrot.lane.b32.xlu0 %v8423_v45, %s6552_s10  ;;  %3190 = vrot.lane.b32.xlu1 %v8423_v45, %s6549_s13  ;;  %vm9984_vm1 = vmmov %vm9979_vm8 }
 0x539   : > { %v2912_v60 = vsel %vm378_vm0, %v9973_v14, %v2906_v6  ;;  %v2854_v21 = vsel %vm378_vm0, %v2847_v41, %v2848_v43  ;;  %v2856_v54 = vsel %vm2850_vm10, %v2844_v22, %v2848_v43 }
 0x53a   : > { %v2913_v13 = vsel %vm2910_vm13, %v8599_v44, %v2912_v60  ;;  %v2855_v8 = vsel %vm2850_vm10, %v2842_v5, %v2854_v21  ;;  %2864 = vst.msk [vmem:[#allocation4 + $0x38] sm:$0xff] %vm7355_vm9, %v2856_v54  ;;  %v2931_v57 = vpop.permute.xlu0 %2930  ;;  %v2872_v63 = vpop.permute.xlu1 %2871  ;;  %4353 = vmatmul.mubr.bf16.vlgmr.msra.gmra.mrb[20].mxu0 %v8895_v27  ;;  %v9974_v44 = vrot.slane %v8610_v36, 4  ;;  %vm9981_vm10 = vcmask 89088  }
 0x53b   : > { %v2938_v51 = vrot.slane %v2931_v57, 4  ;;  %v2876_v55 = vrot.slane %v2872_v63, 4  ;;  %v5334_v20 = vcombine.low %v2881_v29, %v2913_v13  ;;  %v5335_v56 = vcombine.high %v2881_v29, %v2913_v13  ;;  %5441 = vmatprep.mubr.msk.bf16.mxu0 %vm1887_vm11, %v8548_v47 }
 0x53c   : > { %3367 = vrot.lane.b32.xlu0 %v8423_v45, %s6508_s25  ;;  %3271 = vrot.lane.b32.xlu1 %v8423_v45, %s6551_s9  ;;  %v5328_v41 = vcombine.low %v2827_v7, %v2855_v8  ;;  %v5329_v5 = vcombine.high %v2827_v7, %v2855_v8 }
 0x53d   : > { %v2944_v22 = vsel %vm378_vm0, %v9974_v44, %v2938_v51  ;;  %v2882_v43 = vsel %vm378_vm0, %v2875_v19, %v2876_v55  ;;  %v2884_v14 = vsel %vm2878_vm12, %v2872_v63, %v2876_v55  ;;  %4363 = vmatprep.subr.bf16.mxu1 %v5335_v56 }
 0x53e   : > { %v2945_v29 = vsel %vm2942_vm14, %v8610_v36, %v2944_v22  ;;  %v2883_v60 = vsel %vm2878_vm12, %v2870_v15, %v2882_v43  ;;  %2892 = vst.msk [vmem:[#allocation4 + $0x58] sm:$0xff] %vm7355_vm9, %v2884_v14  ;;  %v2963_v21 = vpop.permute.xlu0 %2962  ;;  %v8928_v54 = vpop.permute.xlu1 %2900  ;;  %4402 = vmatprep.subr.bf16.mxu0 %v5329_v5  ;;  %4364 = vmatpush1.bf16.msra.mxu1 %v5334_v20  ;;  %v9975_v36 = vrot.slane %v8621_v4, 4  ;;  %vm9983_vm12 = vcmask 80896  }
 0x53f   : > { %v2970_v7 = vrot.slane %v2963_v21, 4  ;;  %v2907_v13 = vrot.slane %v8928_v54, 4  ;;  %4403 = vmatpush1.bf16.msra.mxu0 %v5328_v41 }
 0x540   : > { %3429 = vrot.lane.b32.xlu0 %v8423_v45, %s6509_s26  ;;  %3335 = vrot.lane.b32.xlu1 %v8423_v45, %s6553_s11  ;;  %s5448_s26 = sshll.u32 %s10111_s19, 6 }
 0x541   : > { %v2976_v15 = vsel %vm378_vm0, %v9975_v36, %v2970_v7  ;;  %v2914_v19 = vsel %vm378_vm0, %v2906_v6, %v2907_v13  ;;  %s224_s19 = scalar_lea.vmem %s9608_s5, %s5448_s26 }
 0x542   : > { %v2977_v8 = vsel %vm2974_vm15, %v8621_v4, %v2976_v15  ;;  %v2915_v63 = vsel %vm2910_vm13, %v2899_v35, %v2914_v19  ;;  %v2995_v55 = vpop.permute.xlu0 %2994  ;;  %v8944_v20 = vpop.permute.xlu1 %2932  ;;  %v9976_v4 = vrot.slane %v8632_v53, 4 }
 0x543   : > { %v3002_v56 = vrot.slane %v2995_v55, 4  ;;  %v9818_v41 = vrot.slane %v8944_v20, 4  ;;  %v5342_v5 = vcombine.low %v2945_v29, %v2977_v8  ;;  %v5343_v44 = vcombine.high %v2945_v29, %v2977_v8 }
 0x544   : > { %3491 = vrot.lane.b32.xlu0 %v8423_v45, %s9962_s14  ;;  %3398 = vrot.lane.b32.xlu1 %v8423_v45, %s6507_s24  ;;  %v5336_v6 = vcombine.low %v2883_v60, %v2915_v63  ;;  %v5337_v22 = vcombine.high %v2883_v60, %v2915_v63 }
 0x545   : > { %v3008_v35 = vsel %vm378_vm0, %v9976_v4, %v3002_v56  ;;  %v2946_v43 = vsel %vm378_vm0, %v2938_v51, %v9818_v41  ;;  %4365 = vmatprep.subr.bf16.mxu1 %v5343_v44  ;;  %v9977_v51 = vrot.slane %v8643_v17, 4 }
 0x546   : > { %v3009_v14 = vsel %vm3006_vm5, %v8632_v53, %v3008_v35  ;;  %v2947_v29 = vsel %vm2942_vm14, %v2931_v57, %v2946_v43  ;;  %v3027_v36 = vpop.permute.xlu0 %3026  ;;  %v8960_v15 = vpop.permute.xlu1 %2964  ;;  %4404 = vmatprep.subr.bf16.mxu0 %v5337_v22  ;;  %4366 = vmatpush1.bf16.msra.mxu1 %v5342_v5  ;;  %v6495_v35 = vld [vmem:[#allocation3 + $0x20] sm:$0xff] }
 0x547   : > { %v3034_v60 = vrot.slane %v3027_v36, 4  ;;  %v9819_v19 = vrot.slane %v8960_v15, 4  ;;  %4405 = vmatpush1.bf16.msra.mxu0 %v5336_v6 }
 0x548   : > { %3553 = vrot.lane.b32.xlu0 %v8423_v45, %s6513_s30  ;;  %3460 = vrot.lane.b32.xlu1 %v8423_v45, %s6510_s27 }
 0x549   : > { %v3040_v53 = vsel %vm378_vm0, %v9977_v51, %v3034_v60  ;;  %v2978_v57 = vsel %vm378_vm0, %v2970_v7, %v9819_v19  ;;  %v9978_v51 = vrot.slane %v8654_v48, 4 }
 0x54a   : > { %v3041_v8 = vsel %vm3038_vm4, %v8643_v17, %v3040_v53  ;;  %v2979_v63 = vsel %vm2974_vm15, %v2963_v21, %v2978_v57  ;;  %v3059_v5 = vpop.permute.xlu0 %3058  ;;  %v8976_v44 = vpop.permute.xlu1 %2996 }
 0x54b   : > { %v3066_v6 = vrot.slane %v3059_v5, 4  ;;  %v9817_v22 = vrot.slane %v8976_v44, 4  ;;  %v5350_v45 = vcombine.low %v3009_v14, %v3041_v8  ;;  %v5351_v4 = vcombine.high %v3009_v14, %v3041_v8 }
 0x54c   : > { %3615 = vrot.lane.b32.xlu0 %v6495_v35, %s6515_s7  ;;  %3522 = vrot.lane.b32.xlu1 %v6495_v35, %s9963_s15  ;;  %v5344_v43 = vcombine.low %v2947_v29, %v2979_v63  ;;  %v5345_v7 = vcombine.high %v2947_v29, %v2979_v63 }
 0x54d   : > { %v3072_v17 = vsel %vm378_vm0, %v9978_v51, %v3066_v6  ;;  %v3010_v21 = vsel %vm378_vm0, %v3002_v56, %v9817_v22  ;;  %4367 = vmatprep.subr.bf16.mxu1 %v5351_v4  ;;  %v9980_v51 = vrot.slane %v8665_v24, 4 }
 0x54e   : > { %v3073_v53 = vsel %vm9979_vm8, %v8654_v48, %v3072_v17  ;;  %v3011_v14 = vsel %vm3006_vm5, %v2995_v55, %v3010_v21  ;;  %v3091_v57 = vpop.permute.xlu0 %3090  ;;  %v8990_v8 = vpop.permute.xlu1 %3028  ;;  %4406 = vmatprep.subr.bf16.mxu0 %v5345_v7  ;;  %4368 = vmatpush1.bf16.msra.mxu1 %v5350_v45  ;;  %vm9987_vm8 = vmmov %vm9981_vm10 }
 0x54f   : > { %v3098_v29 = vrot.slane %v3091_v57, 4  ;;  %v9821_v63 = vrot.slane %v8990_v8, 4  ;;  %4407 = vmatpush1.bf16.msra.mxu0 %v5344_v43 }
 0x550   : > { %3584 = vrot.lane.b32.xlu1 %v6495_v35, %s6514_s6 }
 0x551   : > { %v3104_v56 = vsel %vm378_vm0, %v9980_v51, %v3098_v29  ;;  %v3042_v48 = vsel %vm378_vm0, %v3034_v60, %v9821_v63  ;;  %v9982_v51 = vrot.slane %v8676_v32, 4 }
 0x552   : > { %v3105_v55 = vsel %vm9981_vm10, %v8665_v24, %v3104_v56  ;;  %v3043_v4 = vsel %vm3038_vm4, %v3027_v36, %v3042_v48  ;;  %v3123_v45 = vpop.permute.xlu0 %3122  ;;  %v9003_v7 = vpop.permute.xlu1 %3060  ;;  %vm9989_vm10 = vcmask 7168  }
 0x553   : > { %v3130_v17 = vrot.slane %v3123_v45, 4  ;;  %v9820_v43 = vrot.slane %v9003_v7, 4  ;;  %v5358_v35 = vcombine.low %v3073_v53, %v3105_v55  ;;  %v5359_v21 = vcombine.high %v3073_v53, %v3105_v55 }
 0x554   : > { %v5352_v22 = vcombine.low %v3011_v14, %v3043_v4  ;;  %v5353_v41 = vcombine.high %v3011_v14, %v3043_v4  ;;  %v9985_v55 = vrot.slane %v8687_v10, 4 }
 0x555   : > { %v3136_v19 = vsel %vm378_vm0, %v9982_v51, %v3130_v17  ;;  %v3074_v24 = vsel %vm378_vm0, %v3066_v6, %v9820_v43  ;;  %4369 = vmatprep.subr.bf16.mxu1 %v5359_v21 }
 0x556   : > { %v3137_v36 = vsel %vm9983_vm12, %v8676_v32, %v3136_v19  ;;  %v3075_v60 = vsel %vm9984_vm1, %v3059_v5, %v3074_v24  ;;  %v3155_v56 = vpop.permute.xlu0 %3154  ;;  %v9015_v48 = vpop.permute.xlu1 %3092  ;;  %4408 = vmatprep.subr.bf16.mxu0 %v5353_v41  ;;  %4370 = vmatpush1.bf16.msra.mxu1 %v5358_v35  ;;  %vm9991_vm1 = vcmask 1039360  }
 0x557   : > { %v3162_v53 = vrot.slane %v3155_v56, 4  ;;  %v3099_v14 = vrot.slane %v9015_v48, 4  ;;  %4409 = vmatpush1.bf16.msra.mxu0 %v5352_v22 }
 0x559   : > { %v3168_v4 = vsel %vm378_vm0, %v9985_v55, %v3162_v53  ;;  %v3106_v6 = vsel %vm378_vm0, %v3098_v29, %v3099_v14  ;;  %v9988_v55 = vrot.slane %v8698_v23, 4 }
 0x55a   : > { %v3169_v32 = vsel %vm9986_vm3, %v8687_v10, %v3168_v4  ;;  %v3107_v19 = vsel %vm9987_vm8, %v3091_v57, %v3106_v6  ;;  %v3187_v5 = vpop.permute.xlu0 %3186  ;;  %v9027_v41 = vpop.permute.xlu1 %3124  ;;  %vm9993_vm8 = vcmask 973824  }
 0x55b   : > { %v3194_v35 = vrot.slane %v3187_v5, 4  ;;  %v9822_v21 = vrot.slane %v9027_v41, 4  ;;  %v5366_v22 = vcombine.low %v3137_v36, %v3169_v32  ;;  %v5367_v51 = vcombine.high %v3137_v36, %v3169_v32  ;;  %v6496_v32 = vld [vmem:[#allocation4 + $0x1a8] sm:$0xff] }
 0x55c   : > { %v5360_v24 = vcombine.low %v3075_v60, %v3107_v19  ;;  %v5361_v43 = vcombine.high %v3075_v60, %v3107_v19 }
 0x55d   : > { %v3200_v63 = vsel %vm378_vm0, %v9988_v55, %v3194_v35  ;;  %v3138_v10 = vsel %vm378_vm0, %v3130_v17, %v9822_v21  ;;  %4371 = vmatprep.subr.bf16.mxu1 %v5367_v51  ;;  %v9990_v17 = vrot.slane %v8709_v37, 4 }
 0x55e   : > { %v3201_v57 = vsel %vm9989_vm10, %v8698_v23, %v3200_v63  ;;  %v3139_v29 = vsel %vm9983_vm12, %v3123_v45, %v3138_v10  ;;  %v3236_v4 = vpop.permute.xlu0 %3235  ;;  %v9039_v6 = vpop.permute.xlu1 %3156  ;;  %4410 = vmatprep.subr.bf16.mxu0 %v5361_v43  ;;  %4372 = vmatpush1.bf16.msra.mxu1 %v5366_v22  ;;  %vm9995_vm12 = vmmov %vm9991_vm1 }
 0x55f   : > { %v3243_v36 = vrot.slane %v3236_v4, 4  ;;  %v9823_v60 = vrot.slane %v9039_v6, 4  ;;  %4411 = vmatpush1.bf16.msra.mxu0 %v5360_v24  ;;  %v5374_v19 = vcombine.low %v3201_v57, %v6496_v32  ;;  %v5375_v55 = vcombine.high %v3201_v57, %v6496_v32 }
 0x560   : > { %v9992_v32 = vrot.slane %v8723_v11, 4 }
 0x561   : > { %v3249_v51 = vsel %vm378_vm0, %v9990_v17, %v3243_v36  ;;  %v3170_v23 = vsel %vm378_vm0, %v3162_v53, %v9823_v60  ;;  %4373 = vmatprep.subr.bf16.mxu1 %v5375_v55  ;;  %v9994_v60 = vrot.slane %v8735_v18, 4 }
 0x562   : > { %v3250_v63 = vsel %vm9991_vm1, %v3249_v51, %v3236_v4  ;;  %v3171_v45 = vsel %vm9986_vm3, %v3155_v56, %v3170_v23  ;;  %v3268_v43 = vpop.permute.xlu0 %3267  ;;  %v9050_v22 = vpop.permute.xlu1 %3188  ;;  %4374 = vmatpush1.bf16.msra.mxu1 %v5374_v19  ;;  %vm9997_vm1 = vmmov %vm9993_vm8  ;;  %vm10000_vm3 = vcmask 310272  }
 0x563   : > { %v3275_v24 = vrot.slane %v3268_v43, 4  ;;  %v9825_v10 = vrot.slane %v9050_v22, 4  ;;  %v5368_v57 = vcombine.low %v3139_v29, %v3171_v45  ;;  %v5369_v37 = vcombine.high %v3139_v29, %v3171_v45  ;;  %v6497_v45 = vld [vmem:[#allocation4 + $0x1b0] sm:$0xff] }
 0x565   : > { %v3281_v17 = vsel %vm378_vm0, %v9992_v32, %v3275_v24  ;;  %v3202_v53 = vsel %vm378_vm0, %v3194_v35, %v9825_v10  ;;  %4412 = vmatprep.subr.bf16.mxu0 %v5369_v37 }
 0x566   : > { %v3282_v56 = vsel %vm9993_vm8, %v3281_v17, %v3268_v43  ;;  %v3203_v4 = vsel %vm9989_vm10, %v3187_v5, %v3202_v53  ;;  %v3300_v55 = vpop.permute.xlu0 %3299  ;;  %v9061_v19 = vpop.permute.xlu1 %3237  ;;  %4413 = vmatpush1.bf16.msra.mxu0 %v5368_v57  ;;  %vm10002_vm8 = vcmask 302080   ;;  %vm10004_vm10 = vcmask 236544  }
 0x567   : > { %v3307_v51 = vrot.slane %v3300_v55, 4  ;;  %v3244_v29 = vrot.slane %v9061_v19, 4  ;;  %v5382_v23 = vcombine.low %v3250_v63, %v3282_v56  ;;  %v5383_v11 = vcombine.high %v3250_v63, %v3282_v56 }
 0x568   : > { %v5376_v32 = vcombine.low %v3203_v4, %v6497_v45  ;;  %v5377_v21 = vcombine.high %v3203_v4, %v6497_v45 }
 0x569   : > { %v3313_v35 = vsel %vm378_vm0, %v9994_v60, %v3307_v51  ;;  %v3251_v5 = vsel %vm378_vm0, %v3243_v36, %v3244_v29  ;;  %4375 = vmatprep.subr.bf16.mxu1 %v5383_v11  ;;  %v9996_v60 = vrot.slane %v8747_v46, 4 }
 0x56a   : > { %v3314_v43 = vsel %vm3311_vm6, %v3313_v35, %v3300_v55  ;;  %v3252_v57 = vsel %vm9995_vm12, %v3251_v5, %v9061_v19  ;;  %v3332_v37 = vpop.permute.xlu0 %3331  ;;  %v9073_v17 = vpop.permute.xlu1 %3269  ;;  %4414 = vmatprep.subr.bf16.mxu0 %v5377_v21  ;;  %4376 = vmatpush1.bf16.msra.mxu1 %v5382_v23  ;;  %v9998_v5 = vrot.slane %v8759_v58, 4  ;;  %vm10005_vm12 = vmmov %vm10000_vm3 }
 0x56b   : > { %v3339_v63 = vrot.slane %v3332_v37, 4  ;;  %v9824_v18 = vrot.slane %v9073_v17, 4  ;;  %4415 = vmatpush1.bf16.msra.mxu0 %v5376_v32 }
 0x56d   : > { %v3345_v53 = vsel %vm378_vm0, %v9996_v60, %v3339_v63  ;;  %v3283_v36 = vsel %vm378_vm0, %v3275_v24, %v9824_v18 }
 0x56e   : > { %v3346_v56 = vsel %vm3343_vm7, %v3345_v53, %v3332_v37  ;;  %v3284_v4 = vsel %vm9997_vm1, %v3283_v36, %v9073_v17  ;;  %v3364_v55 = vpop.permute.xlu0 %3363  ;;  %v9085_v21 = vpop.permute.xlu1 %3301  ;;  %vm10007_vm1 = vcmask 228352  }
 0x56f   : > { %v3371_v23 = vrot.slane %v3364_v55, 4  ;;  %v3308_v11 = vrot.slane %v9085_v21, 4  ;;  %v5390_v45 = vcombine.low %v3314_v43, %v3346_v56  ;;  %v5391_v32 = vcombine.high %v3314_v43, %v3346_v56 }
 0x570   : > { %v5384_v46 = vcombine.low %v3252_v57, %v3284_v4  ;;  %v5385_v35 = vcombine.high %v3252_v57, %v3284_v4  ;;  %v9999_v57 = vrot.slane %v8771_v16, 4 }
 0x571   : > { %v3376_v60 = vsel %vm378_vm0, %v9998_v5, %v3371_v23  ;;  %v3315_v24 = vsel %vm378_vm0, %v3307_v51, %v3308_v11  ;;  %4377 = vmatprep.subr.bf16.mxu1 %v5391_v32 }
 0x572   : > { %v3377_v37 = vsel %vm380_vm2, %v3376_v60, %v3364_v55  ;;  %v3316_v53 = vsel %vm3311_vm6, %v3315_v24, %v9085_v21  ;;  %v3395_v36 = vpop.permute.xlu0 %3394  ;;  %v9097_v18 = vpop.permute.xlu1 %3333  ;;  %4416 = vmatprep.subr.bf16.mxu0 %v5385_v35  ;;  %4378 = vmatpush1.bf16.msra.mxu1 %v5390_v45 }
 0x573   : > { %v3402_v43 = vrot.slane %v3395_v36, 4  ;;  %v9826_v58 = vrot.slane %v9097_v18, 4  ;;  %4417 = vmatpush1.bf16.msra.mxu0 %v5384_v46 }
 0x575   : > { %v3407_v56 = vsel %vm378_vm0, %v9999_v57, %v3402_v43  ;;  %v3347_v51 = vsel %vm378_vm0, %v3339_v63, %v9826_v58  ;;  %v10001_v57 = vrot.slane %v8783_v28, 4 }
 0x576   : > { %v3408_v4 = vsel %vm10000_vm3, %v3407_v56, %v3395_v36  ;;  %v3348_v55 = vsel %vm3343_vm7, %v3347_v51, %v9097_v18  ;;  %v3426_v32 = vpop.permute.xlu0 %3425  ;;  %v9109_v35 = vpop.permute.xlu1 %3365  ;;  %vm10008_vm3 = vmmov %vm10002_vm8 }
 0x577   : > { %v3433_v45 = vrot.slane %v3426_v32, 4  ;;  %v9827_v5 = vrot.slane %v9109_v35, 4  ;;  %v5398_v46 = vcombine.low %v3377_v37, %v3408_v4  ;;  %v5399_v60 = vcombine.high %v3377_v37, %v3408_v4 }
 0x578   : > { %v5392_v16 = vcombine.low %v3316_v53, %v3348_v55  ;;  %v5393_v24 = vcombine.high %v3316_v53, %v3348_v55  ;;  %v10003_v53 = vrot.slane %v8795_v39, 4 }
 0x579   : > { %v3438_v10 = vsel %vm378_vm0, %v10001_v57, %v3433_v45  ;;  %v3378_v63 = vsel %vm378_vm0, %v3371_v23, %v9827_v5  ;;  %4379 = vmatprep.subr.bf16.mxu1 %v5399_v60 }
 0x57a   : > { %v3439_v36 = vsel %vm10002_vm8, %v3438_v10, %v3426_v32  ;;  %v3379_v56 = vsel %vm380_vm2, %v3378_v63, %v9109_v35  ;;  %v3457_v51 = vpop.permute.xlu0 %3456  ;;  %v9121_v58 = vpop.permute.xlu1 %3396  ;;  %4418 = vmatprep.subr.bf16.mxu0 %v5393_v24  ;;  %4380 = vmatpush1.bf16.msra.mxu1 %v5398_v46  ;;  %vm10010_vm8 = vcmask 220160  }
 0x57b   : > { %v3464_v37 = vrot.slane %v3457_v51, 4  ;;  %v9828_v28 = vrot.slane %v9121_v58, 4  ;;  %4419 = vmatpush1.bf16.msra.mxu0 %v5392_v16 }
 0x57d   : > { %v3469_v4 = vsel %vm378_vm0, %v10003_v53, %v3464_v37  ;;  %v3409_v10 = vsel %vm378_vm0, %v3402_v43, %v9828_v28  ;;  %v10006_v53 = vrot.slane %v8807_v62, 4 }
 0x57e   : > { %v3470_v23 = vsel %vm10004_vm10, %v3469_v4, %v3457_v51  ;;  %v3410_v55 = vsel %vm10005_vm12, %v3409_v10, %v9121_v58  ;;  %v3488_v32 = vpop.permute.xlu0 %3487  ;;  %v9133_v60 = vpop.permute.xlu1 %3427  ;;  %vm10012_vm12 = vcmask 154624  }
 0x57f   : > { %v3495_v46 = vrot.slane %v3488_v32, 4  ;;  %v9829_v24 = vrot.slane %v9133_v60, 4  ;;  %v5406_v16 = vcombine.low %v3439_v36, %v3470_v23  ;;  %v5407_v57 = vcombine.high %v3439_v36, %v3470_v23 }
 0x580   : > { %v5400_v39 = vcombine.low %v3379_v56, %v3410_v55  ;;  %v5401_v63 = vcombine.high %v3379_v56, %v3410_v55  ;;  %v10009_v56 = vrot.slane %v8819_v1, 4 }
 0x581   : > { %v3500_v5 = vsel %vm378_vm0, %v10006_v53, %v3495_v46  ;;  %v3440_v43 = vsel %vm378_vm0, %v3433_v45, %v9829_v24  ;;  %4381 = vmatprep.subr.bf16.mxu1 %v5407_v57 }
 0x582   : > { %v3501_v51 = vsel %vm10007_vm1, %v3500_v5, %v3488_v32  ;;  %v3441_v4 = vsel %vm10008_vm3, %v3440_v43, %v9133_v60  ;;  %v3519_v10 = vpop.permute.xlu0 %3518  ;;  %v9145_v28 = vpop.permute.xlu1 %3458  ;;  %4420 = vmatprep.subr.bf16.mxu0 %v5401_v63  ;;  %4382 = vmatpush1.bf16.msra.mxu1 %v5406_v16  ;;  %vm10014_vm3 = vcmask 146432  }
 0x583   : > { %v3526_v36 = vrot.slane %v3519_v10, 4  ;;  %v9830_v62 = vrot.slane %v9145_v28, 4  ;;  %4421 = vmatpush1.bf16.msra.mxu0 %v5400_v39 }
 0x585   : > { %v3531_v23 = vsel %vm378_vm0, %v10009_v56, %v3526_v36  ;;  %v3471_v45 = vsel %vm378_vm0, %v3464_v37, %v9830_v62  ;;  %v10011_v56 = vrot.slane %v8831_v52, 4 }
 0x586   : > { %v3532_v5 = vsel %vm10010_vm8, %v3531_v23, %v3519_v10  ;;  %v3472_v55 = vsel %vm10004_vm10, %v3471_v45, %v9145_v28  ;;  %v3550_v32 = vpop.permute.xlu0 %3549  ;;  %v9157_v57 = vpop.permute.xlu1 %3489  ;;  %vm10016_vm10 = vcmask 138240  }
 0x587   : > { %v3557_v16 = vrot.slane %v3550_v32, 4  ;;  %v9831_v63 = vrot.slane %v9157_v57, 4  ;;  %v5414_v39 = vcombine.low %v3501_v51, %v3532_v5  ;;  %v5415_v53 = vcombine.high %v3501_v51, %v3532_v5 }
 0x588   : > { %v5408_v1 = vcombine.low %v3441_v4, %v3472_v55  ;;  %v5409_v43 = vcombine.high %v3441_v4, %v3472_v55  ;;  %v10013_v4 = vrot.slane %v8843_v2, 4 }
 0x589   : > { %v3562_v24 = vsel %vm378_vm0, %v10011_v56, %v3557_v16  ;;  %v3502_v37 = vsel %vm378_vm0, %v3495_v46, %v9831_v63  ;;  %4383 = vmatprep.subr.bf16.mxu1 %v5415_v53 }
 0x58a   : > { %v3563_v10 = vsel %vm10012_vm12, %v3562_v24, %v3550_v32  ;;  %v3503_v23 = vsel %vm10007_vm1, %v3502_v37, %v9157_v57  ;;  %v3581_v45 = vpop.permute.xlu0 %3580  ;;  %v9169_v62 = vpop.permute.xlu1 %3520  ;;  %4422 = vmatprep.subr.bf16.mxu0 %v5409_v43  ;;  %4384 = vmatpush1.bf16.msra.mxu1 %v5414_v39  ;;  %vm10017_vm1 = vmmov %vm10014_vm3 }
 0x58b   : > { %v3588_v51 = vrot.slane %v3581_v45, 4  ;;  %v9832_v52 = vrot.slane %v9169_v62, 4  ;;  %4423 = vmatpush1.bf16.msra.mxu0 %v5408_v1 }
 0x58d   : > { %v3593_v5 = vsel %vm378_vm0, %v10013_v4, %v3588_v51  ;;  %v3533_v46 = vsel %vm378_vm0, %v3526_v36, %v9832_v52  ;;  %v10015_v4 = vrot.slane %v8860_v33, 4 }
 0x58e   : > { %v3594_v24 = vsel %vm10014_vm3, %v3593_v5, %v3581_v45  ;;  %v3534_v55 = vsel %vm10010_vm8, %v3533_v46, %v9169_v62  ;;  %v3612_v32 = vpop.permute.xlu0 %3611  ;;  %v9181_v53 = vpop.permute.xlu1 %3551  ;;  %vm10033_vm3 = vcmask 7168   ;;  %vm10043_vm8 = vcmask 310272  }
 0x58f   : > { %v3619_v39 = vrot.slane %v3612_v32, 4  ;;  %v3558_v43 = vrot.slane %v9181_v53, 4  ;;  %v5422_v1 = vcombine.low %v3563_v10, %v3594_v24  ;;  %v5423_v56 = vcombine.high %v3563_v10, %v3594_v24  ;;  %v3646_v10 = vld [vmem:[#allocation4 + $0x38] sm:$0xff] }
 0x590   : > { %v5416_v2 = vcombine.low %v3503_v23, %v3534_v55  ;;  %v5417_v37 = vcombine.high %v3503_v23, %v3534_v55 }
 0x591   : > { %v3624_v63 = vsel %vm378_vm0, %v10015_v4, %v3619_v39  ;;  %v3564_v36 = vsel %vm378_vm0, %v3557_v16, %v3558_v43  ;;  %4385 = vmatprep.subr.bf16.mxu1 %v5423_v56  ;;  %v3642_v4 = vld [vmem:[#allocation4 + $0x18] sm:$0xff] }
 0x592   : > { %v3625_v45 = vsel %vm10016_vm10, %v3624_v63, %v3612_v32  ;;  %v3565_v5 = vsel %vm10012_vm12, %v3564_v36, %v9181_v53  ;;  %v2903_v46 = vpop.permute.xlu0 %2902  ;;  %v9193_v52 = vpop.permute.xlu1 %3582  ;;  %4424 = vmatprep.subr.bf16.mxu0 %v5417_v37  ;;  %4386 = vmatpush1.bf16.msra.mxu1 %v5422_v1  ;;  %v5331_v1 = vcombine.high %v3642_v4, %v3646_v10 }
 0x593   : > { %v2908_v23 = vrot.slane %v2903_v46, 4  ;;  %v3589_v33 = vrot.slane %v9193_v52, 4  ;;  %4425 = vmatpush1.bf16.msra.mxu0 %v5416_v2  ;;  %v5431_v24 = vcombine.high %v3625_v45, %v3625_v45  ;;  %v5430_v55 = vcombine.low %v3625_v45, %v3625_v45 }
 0x595   : > { %v2916_v16 = vsel %vm378_vm0, %v2907_v13, %v2908_v23  ;;  %v3595_v63 = vsel %vm378_vm0, %v3588_v51, %v3589_v33  ;;  %5438 = vmatprep.subr.msk.bf16.mxu1 %vm378_vm0, %v5431_v24  ;;  %v4303_v32 = vsel %vm378_vm0, %v5430_v55, 0  ;;  %v5330_v23 = vcombine.low %v3642_v4, %v3646_v10 }
 0x596   : > { %v2917_v56 = vsel %vm2910_vm13, %v8928_v54, %v2916_v16  ;;  %v3596_v2 = vsel %vm10017_vm1, %v3595_v63, %v9193_v52  ;;  %v2967_v37 = vpop.permute.xlu0 %2966  ;;  %v9208_v36 = vpop.permute.xlu1 %3613  ;;  %4388 = vmatpush1.bf16.msra.mxu1 %v4303_v32  ;;  %v10018_v24 = vrot.slane %v8960_v15, 4  ;;  %vm10019_vm13 = vmmov %vm10016_vm10 }
 0x597   : > { %2925 = vst.msk [vmem:[#allocation4 + $0x78] sm:$0xff] %vm7355_vm9, %v2917_v56  ;;  %v2972_v13 = vrot.slane %v2967_v37, 4  ;;  %v3620_v51 = vrot.slane %v9208_v36, 4  ;;  %4443 = vmatprep.subr.bf16.mxu1 %v5331_v1  ;;  %v5424_v45 = vcombine.low %v3565_v5, %v3596_v2  ;;  %v5425_v46 = vcombine.high %v3565_v5, %v3596_v2  ;;  %vm10045_vm10 = vmmov %vm10012_vm12 }
 0x598   : > { %v10020_v56 = vrot.slane %v8990_v8, 4  ;;  %v10021_v2 = vrot.slane %v8944_v20, 4  ;;  %vm10046_vm12 = vcmask 236544   ;;  %vm10049_vm1 = vmmov %vm10019_vm13 }
 0x599   : > { %v2980_v54 = vsel %vm378_vm0, %v10018_v24, %v2972_v13  ;;  %v3626_v55 = vsel %vm378_vm0, %v3619_v39, %v3620_v51  ;;  %4394 = vmatmul.mubr.bf16.vlgmr.msra.gmra.mrb[16].mxu1 %v8895_v27  ;;  %4426 = vmatprep.subr.bf16.mxu0 %v5425_v46  ;;  %v3650_v24 = vld [vmem:[#allocation4 + $0x58] sm:$0xff] }
 0x59a   : > { %v2981_v16 = vsel %vm2974_vm15, %v8960_v15, %v2980_v54  ;;  %v3627_v63 = vsel %vm10019_vm13, %v3626_v55, %v9208_v36  ;;  %v3031_v32 = vpop.permute.xlu0 %3030  ;;  %v2935_v5 = vpop.permute.xlu1 %2934  ;;  %4444 = vmatpush1.bf16.msra.mxu1 %v5330_v23  ;;  %4427 = vmatpush1.bf16.msra.mxu0 %v5424_v45  ;;  %vm10028_vm15 = vcmask 728064   ;;  %vm10050_vm13 = vcmask 220160  }
 0x59b   : > { %2989 = vst.msk [vmem:[#allocation4 + $0xb8] sm:$0xff] %vm7355_vm9, %v2981_v16  ;;  %v3036_v10 = vrot.slane %v3031_v32, 4  ;;  %v2940_v4 = vrot.slane %v2935_v5, 4  ;;  %v5433_v1 = vcombine.high %v3627_v63, %v3627_v63  ;;  %v5432_v39 = vcombine.low %v3627_v63, %v3627_v63  ;;  %5443 = vmatprep.mubr.msk.bf16.mxu1 %vm1887_vm11, %v8548_v47  ;;  %v10022_v5 = vld [vmem:[#allocation6_spill] sm:$0xff] }
 0x59c   : > { %vm10024_vm11 = vcmask 89088  }
 0x59d   : > { %v3044_v15 = vsel %vm378_vm0, %v10020_v56, %v3036_v10  ;;  %v2948_v37 = vsel %vm378_vm0, %v10021_v2, %v2940_v4  ;;  %5440 = vmatprep.subr.msk.bf16.mxu0 %vm378_vm0, %v5433_v1  ;;  %v4309_v13 = vsel %vm378_vm0, %v5432_v39, 0 }
 0x59e   : > { %v3045_v45 = vsel %vm3038_vm4, %v8990_v8, %v3044_v15  ;;  %v2949_v46 = vsel %vm2942_vm14, %v8944_v20, %v2948_v37  ;;  %v3095_v23 = vpop.permute.xlu0 %3094  ;;  %v2999_v47 = vpop.permute.xlu1 %2998  ;;  %v3654_v54 = vld [vmem:[#allocation4 + $0x78] sm:$0xff]  ;;  %4429 = vmatpush1.bf16.msra.mxu0 %v4309_v13  ;;  %v10023_v8 = vrot.slane %v8976_v44, 4  ;;  %vm10027_vm14 = vcmask 72704  }
 0x59f   : > { %3053 = vst.msk [vmem:[#allocation4 + $0xf8] sm:$0xff] %vm7355_vm9, %v3045_v45  ;;  %2957 = vst.msk [vmem:[#allocation4 + $0x98] sm:$0xff] %vm7355_vm9, %v2949_v46  ;;  %v3100_v55 = vrot.slane %v3095_v23, 4  ;;  %v3004_v16 = vrot.slane %v2999_v47, 4  ;;  %v5338_v63 = vcombine.low %v3650_v24, %v3654_v54  ;;  %v5339_v32 = vcombine.high %v3650_v24, %v3654_v54  ;;  %6150 = vmatprep.subr.bf16.mxu0 %v10022_v5 }
 0x5a0   : > { %vm10031_vm4 = vcmask 80896  }
 0x5a1   : > { %v3108_v20 = vsel %vm378_vm0, %v3099_v14, %v3100_v55  ;;  %v3012_v10 = vsel %vm378_vm0, %v10023_v8, %v3004_v16  ;;  %4445 = vmatprep.subr.bf16.mxu1 %v5339_v32  ;;  %4435 = vmatmul.mubr.bf16.vlgmr.msra.gmra.mrb[24].mxu0 %v8895_v27 }
 0x5a2   : > { %v3109_v4 = vsel %vm10024_vm11, %v9015_v48, %v3108_v20  ;;  %v3013_v1 = vsel %vm3006_vm5, %v8976_v44, %v3012_v10  ;;  %v3159_v39 = vpop.permute.xlu0 %3158  ;;  %v3063_v56 = vpop.permute.xlu1 %3062  ;;  %4446 = vmatpush1.bf16.msra.mxu1 %v5338_v63  ;;  %6152 = vmatpush3.bf16.msra.mxu0 %v7681_v50  ;;  %v10025_v48 = vrot.slane %v9039_v6, 4  ;;  %v10026_v44 = vrot.slane %v9003_v7, 4  ;;  %v3662_v24 = vld [vmem:[#allocation4 + $0xb8] sm:$0xff] }
 0x5a3   : > { %3117 = vst.msk [vmem:[#allocation4 + $0x138] sm:$0xff] %vm7355_vm9, %v3109_v4  ;;  %3021 = vst.msk [vmem:[#allocation4 + $0xd8] sm:$0xff] %vm7355_vm9, %v3013_v1  ;;  %v3164_v14 = vrot.slane %v3159_v39, 4  ;;  %v3068_v15 = vrot.slane %v3063_v56, 4  ;;  %6154 = vmatprep.subr.bf16.mxu0 %v7684_v59  ;;  %vm10030_vm5 = vcmask 1039360   ;;  %vm10051_vm11 = vcmask 146432  }
 0x5a5   : > { %v3172_v2 = vsel %vm378_vm0, %v10025_v48, %v3164_v14  ;;  %v3076_v37 = vsel %vm378_vm0, %v10026_v44, %v3068_v15  ;;  %v10032_v15 = vrot.slane %v9050_v22, 4 }
 0x5a6   : > { %v3173_v13 = vsel %vm10027_vm14, %v9039_v6, %v3172_v2  ;;  %v3077_v45 = vsel %vm10028_vm15, %v9003_v7, %v3076_v37  ;;  %v3240_v46 = vpop.permute.xlu0 %3239  ;;  %v3127_v23 = vpop.permute.xlu1 %3126  ;;  %v3658_v47 = vld [vmem:[#allocation4 + $0x98] sm:$0xff]  ;;  %6156 = vmatpush3.bf16.msra.mxu0 %v7700_v25  ;;  %v10029_v6 = vrot.slane %v9027_v41, 4 }
 0x5a7   : > { %3181 = vst.msk [vmem:[#allocation4 + $0x178] sm:$0xff] %vm7355_vm9, %v3173_v13  ;;  %3085 = vst.msk [vmem:[#allocation4 + $0x118] sm:$0xff] %vm7355_vm9, %v3077_v45  ;;  %v3245_v54 = vrot.slane %v3240_v46, 4  ;;  %v3132_v55 = vrot.slane %v3127_v23, 4  ;;  %v5346_v16 = vcombine.low %v3658_v47, %v3662_v24  ;;  %v5347_v63 = vcombine.high %v3658_v47, %v3662_v24  ;;  %6158 = vmatprep.subr.bf16.mxu0 %v7703_v61  ;;  %v3670_v39 = vld [vmem:[#allocation4 + $0xf8] sm:$0xff] }
 0x5a9   : > { %v3253_v7 = vsel %vm378_vm0, %v3244_v29, %v3245_v54  ;;  %v3140_v32 = vsel %vm378_vm0, %v10029_v6, %v3132_v55  ;;  %4447 = vmatprep.subr.bf16.mxu1 %v5347_v63  ;;  %v10035_v54 = vrot.slane %v9073_v17, 4 }
 0x5aa   : > { %v3254_v20 = vsel %vm10030_vm5, %v3253_v7, %v3240_v46  ;;  %v3141_v8 = vsel %vm10031_vm4, %v9027_v41, %v3140_v32  ;;  %v3304_v10 = vpop.permute.xlu0 %3303  ;;  %4448 = vmatpush1.bf16.msra.mxu1 %v5346_v16  ;;  %v3191_v4 = vpop.permute.xlu1 %3190  ;;  %v3666_v1 = vld [vmem:[#allocation4 + $0xd8] sm:$0xff]  ;;  %6160 = vmatpush3.bf16.msra.mxu0 %v7718_v49 }
 0x5ab   : > { %3262 = vst.msk [vmem:[#allocation4 + $0x1d8] sm:$0xff] %vm7355_vm9, %v3254_v20  ;;  %3149 = vst.msk [vmem:[#allocation4 + $0x158] sm:$0xff] %vm7355_vm9, %v3141_v8  ;;  %v3309_v19 = vrot.slane %v3304_v10, 4  ;;  %v3196_v29 = vrot.slane %v3191_v4, 4  ;;  %v5354_v56 = vcombine.low %v3666_v1, %v3670_v39  ;;  %v5355_v14 = vcombine.high %v3666_v1, %v3670_v39  ;;  %6162 = vmatprep.subr.bf16.mxu0 %v7721_v31  ;;  %v3678_v46 = vld [vmem:[#allocation4 + $0x138] sm:$0xff] }
 0x5ac   : > { %v10037_v4 = vrot.slane %v9133_v60, 4  ;;  %v10038_v39 = vrot.slane %v9097_v18, 4 }
 0x5ad   : > { %v3317_v41 = vsel %vm378_vm0, %v3308_v11, %v3309_v19  ;;  %v3204_v48 = vsel %vm378_vm0, %v10032_v15, %v3196_v29  ;;  %4449 = vmatprep.subr.bf16.mxu1 %v5355_v14 }
 0x5ae   : > { %v3318_v2 = vsel %vm3311_vm6, %v3317_v41, %v3304_v10  ;;  %v3205_v44 = vsel %vm10033_vm3, %v9050_v22, %v3204_v48  ;;  %v3368_v37 = vpop.permute.xlu0 %3367  ;;  %4450 = vmatpush1.bf16.msra.mxu1 %v5354_v56  ;;  %v3272_v13 = vpop.permute.xlu1 %3271  ;;  %v3674_v45 = vld [vmem:[#allocation4 + $0x118] sm:$0xff]  ;;  %6164 = vmatpush3.bf16.msra.mxu0 %v7738_v12  ;;  %v10034_v22 = vrot.slane %v9109_v35, 4  ;;  %vm10036_vm6 = vcmask 973824  }
 0x5af   : > { %3326 = vst.msk [vmem:[#allocation4 + $0x218] sm:$0xff] %vm7355_vm9, %v3318_v2  ;;  %3213 = vst.msk [vmem:[#allocation4 + $0x198] sm:$0xff] %vm7355_vm9, %v3205_v44  ;;  %v3373_v21 = vrot.slane %v3368_v37, 4  ;;  %v3277_v11 = vrot.slane %v3272_v13, 4  ;;  %v5362_v23 = vcombine.low %v3674_v45, %v3678_v46  ;;  %v5363_v47 = vcombine.high %v3674_v45, %v3678_v46  ;;  %6166 = vmatprep.subr.bf16.mxu0 %v7741_v38  ;;  %v3686_v20 = vld [vmem:[#allocation4 + $0x178] sm:$0xff] }
 0x5b0   : > { %v3694_v48 = vld [vmem:[#allocation4 + $0x1b8] sm:$0xff]  ;;  %v10041_v45 = vrot.slane %v9121_v58, 4 }
 0x5b1   : > { %v3380_v24 = vsel %vm378_vm0, %v10034_v22, %v3373_v21  ;;  %v3285_v55 = vsel %vm378_vm0, %v10035_v54, %v3277_v11  ;;  %4451 = vmatprep.subr.bf16.mxu1 %v5363_v47 }
 0x5b2   : > { %v3381_v16 = vsel %vm380_vm2, %v3380_v24, %v3368_v37  ;;  %v3286_v63 = vsel %vm10036_vm6, %v3285_v55, %v3272_v13  ;;  %v3430_v7 = vpop.permute.xlu0 %3429  ;;  %4452 = vmatpush1.bf16.msra.mxu1 %v5362_v23  ;;  %v3336_v6 = vpop.permute.xlu1 %3335  ;;  %v3682_v32 = vld [vmem:[#allocation4 + $0x158] sm:$0xff]  ;;  %6168 = vmatpush3.bf16.msra.mxu0 %v7757_v30  ;;  %vm10039_vm2 = vcmask 302080   ;;  %v10040_v37 = vrot.slane %v9157_v57, 4 }
 0x5b3   : > { %3389 = vst.msk [vmem:[#allocation4 + $0x258] sm:$0xff] %vm7355_vm9, %v3381_v16  ;;  %3294 = vst.msk [vmem:[#allocation4 + $0x1f8] sm:$0xff] %vm7355_vm9, %v3286_v63  ;;  %v3435_v17 = vrot.slane %v3430_v7, 4  ;;  %v3341_v35 = vrot.slane %v3336_v6, 4  ;;  %v5370_v8 = vcombine.low %v3682_v32, %v3686_v20  ;;  %v5371_v10 = vcombine.high %v3682_v32, %v3686_v20  ;;  %6170 = vmatprep.subr.bf16.mxu0 %v7760_v9  ;;  %v3698_v22 = vld [vmem:[#allocation4 + $0x1d8] sm:$0xff] }
 0x5b4   : > { %v10044_v63 = vrot.slane %v9145_v28, 4 }
 0x5b5   : > { %v3442_v1 = vsel %vm378_vm0, %v10037_v4, %v3435_v17  ;;  %v3349_v19 = vsel %vm378_vm0, %v10038_v39, %v3341_v35  ;;  %4453 = vmatprep.subr.bf16.mxu1 %v5371_v10  ;;  %v10047_v4 = vld [vmem:[#allocation7_spill] sm:$0xff]  ;;  %v10048_v39 = vrot.slane %v9169_v62, 4 }
 0x5b6   : > { %v3443_v29 = vsel %vm10039_vm2, %v3442_v1, %v3430_v7  ;;  %v3350_v56 = vsel %vm3343_vm7, %v3349_v19, %v3336_v6  ;;  %v3492_v14 = vpop.permute.xlu0 %3491  ;;  %4454 = vmatpush1.bf16.msra.mxu1 %v5370_v8  ;;  %v3399_v41 = vpop.permute.xlu1 %3398  ;;  %v3690_v15 = vld [vmem:[#allocation4 + $0x198] sm:$0xff]  ;;  %6172 = vmatpush3.bf16.msra.mxu0 %v7775_v3  ;;  %vm10042_vm7 = vcmask 228352  }
 0x5b7   : > { %3451 = vst.msk [vmem:[#allocation4 + $0x298] sm:$0xff] %vm7355_vm9, %v3443_v29  ;;  %3358 = vst.msk [vmem:[#allocation4 + $0x238] sm:$0xff] %vm7355_vm9, %v3350_v56  ;;  %v3497_v18 = vrot.slane %v3492_v14, 4  ;;  %v3404_v60 = vrot.slane %v3399_v41, 4  ;;  %v5378_v2 = vcombine.low %v3690_v15, %v3694_v48  ;;  %v5379_v44 = vcombine.high %v3690_v15, %v3694_v48  ;;  %6174 = vmatprep.subr.bf16.mxu0 %v7778_v34  ;;  %v3706_v35 = vld [vmem:[#allocation4 + $0x218] sm:$0xff] }
 0x5b9   : > { %v3504_v13 = vsel %vm378_vm0, %v10040_v37, %v3497_v18  ;;  %v3411_v46 = vsel %vm378_vm0, %v10041_v45, %v3404_v60  ;;  %4455 = vmatprep.subr.bf16.mxu1 %v5379_v44 }
 0x5ba   : > { %v3505_v21 = vsel %vm10042_vm7, %v3504_v13, %v3492_v14  ;;  %v3412_v11 = vsel %vm10043_vm8, %v3411_v46, %v3399_v41  ;;  %v3554_v23 = vpop.permute.xlu0 %3553  ;;  %4456 = vmatpush1.bf16.msra.mxu1 %v5378_v2  ;;  %v3461_v47 = vpop.permute.xlu1 %3460  ;;  %v3702_v24 = vld [vmem:[#allocation4 + $0x1f8] sm:$0xff]  ;;  %6176 = vmatpush3.bf16.msra.mxu0 %v7793_v0 }
 0x5bb   : > { %3513 = vst.msk [vmem:[#allocation4 + $0x2d8] sm:$0xff] %vm7355_vm9, %v3505_v21  ;;  %3420 = vst.msk [vmem:[#allocation4 + $0x278] sm:$0xff] %vm7355_vm9, %v3412_v11  ;;  %v3559_v58 = vrot.slane %v3554_v23, 4  ;;  %v3466_v57 = vrot.slane %v3461_v47, 4  ;;  %v5386_v54 = vcombine.low %v3698_v22, %v3702_v24  ;;  %v5387_v55 = vcombine.high %v3698_v22, %v3702_v24  ;;  %6178 = vmatprep.subr.bf16.mxu0 %v7796_v26  ;;  %v3714_v41 = vld [vmem:[#allocation4 + $0x258] sm:$0xff] }
 0x5bd   : > { %v3566_v16 = vsel %vm378_vm0, %v3558_v43, %v3559_v58  ;;  %v3473_v7 = vsel %vm378_vm0, %v10044_v63, %v3466_v57  ;;  %4457 = vmatprep.subr.bf16.mxu1 %v5387_v55  ;;  %v10052_v58 = vld [vmem:[#allocation38_spill] sm:$0xff]  ;;  %v10053_v57 = vld [vmem:[#allocation39_spill] sm:$0xff]  ;;  %v10055_v55 = vld [vmem:[#allocation41_spill] sm:$0xff] }
 0x5be   : > { %v3567_v6 = vsel %vm10045_vm10, %v3566_v16, %v3554_v23  ;;  %v3474_v32 = vsel %vm10046_vm12, %v3473_v7, %v3461_v47  ;;  %v3616_v20 = vpop.permute.xlu0 %3615  ;;  %4458 = vmatpush1.bf16.msra.mxu1 %v5386_v54  ;;  %v3523_v17 = vpop.permute.xlu1 %3522  ;;  %v3710_v8 = vld [vmem:[#allocation4 + $0x238] sm:$0xff]  ;;  %6180 = vmatpush3.bf16.msra.mxu0 %v7811_v40  ;;  %v10056_v16 = vld [vmem:[#allocation42_spill] sm:$0xff]  ;;  %v10057_v63 = vld [vmem:[#allocation43_spill] sm:$0xff] }
 0x5bf   : > { %3575 = vst.msk [vmem:[#allocation4 + $0x318] sm:$0xff] %vm7355_vm9, %v3567_v6  ;;  %3482 = vst.msk [vmem:[#allocation4 + $0x2b8] sm:$0xff] %vm7355_vm9, %v3474_v32  ;;  %v3621_v28 = vrot.slane %v3616_v20, 4  ;;  %v3528_v53 = vrot.slane %v3523_v17, 4  ;;  %v5394_v43 = vcombine.low %v3706_v35, %v3710_v8  ;;  %v5395_v10 = vcombine.high %v3706_v35, %v3710_v8  ;;  %6182 = vmatprep.subr.bf16.mxu0 %v10047_v4  ;;  %v3722_v60 = vld [vmem:[#allocation4 + $0x298] sm:$0xff]  ;;  %v10059_v6 = vld [vmem:[#allocation45_spill] sm:$0xff] }
 0x5c0   : > { %v10054_v54 = vld [vmem:[#allocation40_spill] sm:$0xff]  ;;  %v10060_v32 = vld [vmem:[#allocation46_spill] sm:$0xff]  ;;  %v10065_v8 = vld [vmem:[#allocation51_spill] sm:$0xff] }
 0x5c1   : > { %v3628_v1 = vsel %vm378_vm0, %v3620_v51, %v3621_v28  ;;  %v3535_v19 = vsel %vm378_vm0, %v10048_v39, %v3528_v53  ;;  %4459 = vmatprep.subr.bf16.mxu1 %v5395_v10  ;;  %v10058_v7 = vld [vmem:[#allocation44_spill] sm:$0xff]  ;;  %v10064_v35 = vld [vmem:[#allocation50_spill] sm:$0xff]  ;;  %v10067_v53 = vld [vmem:[#allocation53_spill] sm:$0xff] }
 0x5c2   : > { %v3629_v29 = vsel %vm10049_vm1, %v3628_v1, %v3616_v20  ;;  %v3536_v56 = vsel %vm10050_vm13, %v3535_v19, %v3523_v17  ;;  %4460 = vmatpush1.bf16.msra.mxu1 %v5394_v43  ;;  %v3585_v14 = vpop.permute.xlu1 %3584  ;;  %v3718_v15 = vld [vmem:[#allocation4 + $0x278] sm:$0xff]  ;;  %v10061_v20 = vld [vmem:[#allocation47_spill] sm:$0xff] }
 0x5c3   : > { %3637 = vst.msk [vmem:[#allocation4 + $0x358] sm:$0xff] %vm7355_vm9, %v3629_v29  ;;  %3544 = vst.msk [vmem:[#allocation4 + $0x2f8] sm:$0xff] %vm7355_vm9, %v3536_v56  ;;  %v3590_v36 = vrot.slane %v3585_v14, 4  ;;  %v5402_v51 = vcombine.low %v3714_v41, %v3718_v15  ;;  %v5403_v62 = vcombine.high %v3714_v41, %v3718_v15  ;;  %v3730_v13 = vld [vmem:[#allocation4 + $0x2d8] sm:$0xff]  ;;  %v10068_v19 = vld [vmem:[#allocation23_spill] sm:$0xff] }
 0x5c4   : > { %v10062_v17 = vld [vmem:[#allocation48_spill] sm:$0xff]  ;;  %v10070_v56 = vld [vmem:[#allocation25_spill] sm:$0xff]  ;;  %v10072_v41 = vld [vmem:[#allocation27_spill] sm:$0xff] }
 0x5c5   : > { %v3597_v48 = vsel %vm378_vm0, %v3589_v33, %v3590_v36  ;;  %4461 = vmatprep.subr.bf16.mxu1 %v5403_v62  ;;  %v10066_v28 = vld [vmem:[#allocation52_spill] sm:$0xff]  ;;  %v10074_v15 = vld [vmem:[#allocation29_spill] sm:$0xff]  ;;  %v10075_v36 = vld [vmem:[#allocation30_spill] sm:$0xff] }
 0x5c6   : > { %v3598_v18 = vsel %vm10051_vm11, %v3597_v48, %v3585_v14  ;;  %4462 = vmatpush1.bf16.msra.mxu1 %v5402_v51  ;;  %v3726_v2 = vld [vmem:[#allocation4 + $0x2b8] sm:$0xff]  ;;  %v10071_v14 = vld [vmem:[#allocation26_spill] sm:$0xff]  ;;  %v10076_v51 = vld [vmem:[#allocation31_spill] sm:$0xff] }
 0x5c7   : > { %3606 = vst.msk [vmem:[#allocation4 + $0x338] sm:$0xff] %vm7355_vm9, %v3598_v18  ;;  %v5410_v44 = vcombine.low %v3722_v60, %v3726_v2  ;;  %v5411_v37 = vcombine.high %v3722_v60, %v3726_v2  ;;  %v3738_v52 = vld [vmem:[#allocation4 + $0x318] sm:$0xff]  ;;  %v10078_v48 = vld [vmem:[#allocation33_spill] sm:$0xff]  ;;  %v10079_v18 = vld [vmem:[#allocation34_spill] sm:$0xff] }
 0x5c8   : > { %v10069_v29 = vld [vmem:[#allocation24_spill] sm:$0xff]  ;;  %v10080_v60 = vld [vmem:[#allocation35_spill] sm:$0xff] }
 0x5c9   : > { %4463 = vmatprep.subr.bf16.mxu1 %v5411_v37  ;;  %v10077_v62 = vld [vmem:[#allocation32_spill] sm:$0xff]  ;;  %v10083_v37 = vmov 0.0|0.0  }
 0x5ca   : > { %4464 = vmatpush1.bf16.msra.mxu1 %v5410_v44  ;;  %v3734_v45 = vld [vmem:[#allocation4 + $0x2f8] sm:$0xff]  ;;  %v10082_v44 = vld [vmem:[#allocation37_spill] sm:$0xff] }
 0x5cb   : > { %v5418_v46 = vcombine.low %v3730_v13, %v3734_v45  ;;  %v5419_v21 = vcombine.high %v3730_v13, %v3734_v45  ;;  %v3746_v11 = vld [vmem:[#allocation4 + $0x358] sm:$0xff] }
 0x5cc   : > { %v5435_v22 = vcombine.high %v3746_v11, %v3746_v11  ;;  %v5434_v24 = vcombine.low %v3746_v11, %v3746_v11  ;;  %v10081_v2 = vld [vmem:[#allocation36_spill] sm:$0xff] }
 0x5cd   : > { %4465 = vmatprep.subr.bf16.mxu1 %v5419_v21 }
 0x5ce   : > { %4466 = vmatpush1.bf16.msra.mxu1 %v5418_v46  ;;  %v3742_v33 = vld [vmem:[#allocation4 + $0x338] sm:$0xff]  ;;  %v4315_v42 = vsel %vm378_vm0, %v5434_v24, 0 }
 0x5cf   : > { %v5426_v23 = vcombine.low %v3738_v52, %v3742_v33  ;;  %v5427_v47 = vcombine.high %v3738_v52, %v3742_v33  ;;  %v10084_v52 = vld [vmem:[#allocation8_spill] sm:$0xff]  ;;  %v10085_v33 = vld [vmem:[#allocation9_spill] sm:$0xff] }
 0x5d1   : > { %4467 = vmatprep.subr.bf16.mxu1 %v5427_v47 }
 0x5d2   : > { %4468 = vmatpush1.bf16.msra.mxu1 %v5426_v23 }
 0x5d3   : > { %5442 = vmatprep.subr.msk.bf16.mxu1 %vm378_vm0, %v5435_v22  ;;  %vm10099_vm0 = vcmask 850944  }
 0x5d4   : > { %vm10100_vm9 = vmmov %vm10099_vm0 }
 0x5d5   : > { %vm10109_vm8 = vmmov %vm10099_vm0 }
 0x5d6   : > { %4470 = vmatpush1.bf16.msra.mxu1 %v4315_v42  ;;  %v10086_v42 = vld [vmem:[#allocation10_spill] sm:$0xff] }
 0x5d7   : > { %6214 = vmatprep.subr.bf16.mxu1 %v10052_v58 }
 0x5d9   : > { %4476 = vmatmul.mubr.bf16.vlgmr.msra.gmra.mrb[20].mxu1 %v8895_v27  ;;  %v10063_v27 = vld [vmem:[#allocation49_spill] sm:$0xff] }
 0x5da   : > { %6216 = vmatpush3.bf16.msra.mxu1 %v10053_v57 }
 0x5db   : > { %6218 = vmatprep.subr.bf16.mxu1 %v10054_v54 }
 0x5de   : > { %6220 = vmatpush3.bf16.msra.mxu1 %v10055_v55 }
 0x5df   : > { %6222 = vmatprep.subr.bf16.mxu1 %v10056_v16 }
 0x5e2   : > { %6224 = vmatpush3.bf16.msra.mxu1 %v10057_v63 }
 0x5e3   : > { %6226 = vmatprep.subr.bf16.mxu1 %v10058_v7 }
 0x5e6   : > { %6228 = vmatpush3.bf16.msra.mxu1 %v10059_v6 }
 0x5e7   : > { %6230 = vmatprep.subr.bf16.mxu1 %v10060_v32 }
 0x5ea   : > { %6232 = vmatpush3.bf16.msra.mxu1 %v10061_v20 }
 0x5eb   : > { %6234 = vmatprep.subr.bf16.mxu1 %v10062_v17 }
 0x5ee   : > { %6236 = vmatpush3.bf16.msra.mxu1 %v10063_v27 }
 0x5ef   : > { %6238 = vmatprep.subr.bf16.mxu1 %v10064_v35 }
 0x5f2   : > { %6240 = vmatpush3.bf16.msra.mxu1 %v10065_v8 }
 0x5f3   : > { %6242 = vmatprep.subr.bf16.mxu1 %v10066_v28 }
 0x5f6   : > { %6244 = vmatpush3.bf16.msra.mxu1 %v10067_v53 }
 0x5f7   : > { %6288 = vmatprep.subr.bf16.mxu1 %v10022_v5  ;;  %v10073_v5 = vld [vmem:[#allocation28_spill] sm:$0xff] }
 0x60d   : > { %v9402_v43 = vpop.f32.mrb[20].mxu0 }
 0x60e   : > { %v9404_v10 = vpop.f32.mrb[21].mxu0 }
 0x60f   : > { %v4358_v1 = vpop.f32.mrb[22].mxu0  ;;  %4551 = vmatprep.mubr.f32.mxu0 %v9404_v10  ;;  %v4768_v22 = vmul.f32 %v9404_v10, %v9404_v10 }
 0x610   : > { %v4359_v39 = vpop.f32.mrb[23].mxu0  ;;  %4552 = vmatmul.mubr.f32.vlgmr.msra.gmra.mrb[18].mxu0 %v9402_v43  ;;  %v10087_v1 = vld [vmem:[#allocation11_spill] sm:$0xff] }
 0x611   : > { %6184 = vmatpush3.bf16.msra.mxu0 %v10068_v19  ;;  %v10088_v39 = vld [vmem:[#allocation12_spill] sm:$0xff] }
 0x612   : > { %6186 = vmatprep.subr.bf16.mxu0 %v10069_v29 }
 0x615   : > { %6188 = vmatpush3.bf16.msra.mxu0 %v10070_v56 }
 0x616   : > { %6190 = vmatprep.subr.bf16.mxu0 %v10071_v14 }
 0x619   : > { %6192 = vmatpush3.bf16.msra.mxu0 %v10072_v41 }
 0x61a   : > { %6194 = vmatprep.subr.bf16.mxu0 %v10073_v5 }
 0x61d   : > { %6196 = vmatpush3.bf16.msra.mxu0 %v10074_v15 }
 0x61e   : > { %6198 = vmatprep.subr.bf16.mxu0 %v10075_v36 }
 0x621   : > { %6200 = vmatpush3.bf16.msra.mxu0 %v10076_v51 }
 0x622   : > { %6202 = vmatprep.subr.bf16.mxu0 %v10077_v62 }
 0x625   : > { %6204 = vmatpush3.bf16.msra.mxu0 %v10078_v48 }
 0x626   : > { %6206 = vmatprep.subr.bf16.mxu0 %v10079_v18 }
 0x629   : > { %6208 = vmatpush3.bf16.msra.mxu0 %v10080_v60 }
 0x62a   : > { %6210 = vmatprep.subr.bf16.mxu0 %v10081_v2 }
 0x62d   : > { %6212 = vmatpush3.bf16.msra.mxu0 %v10082_v44 }
 0x62e   : > { %6245 = vmatprep.subr.bf16.mxu0 %v10083_v37 }
 0x66c   : > { %v9424_v13 = vpop.f32.mrb[16].mxu1 }
 0x66d   : > { %v9426_v45 = vpop.f32.mrb[17].mxu1 }
 0x66e   : > { %4621 = vmatprep.mubr.f32.mxu0 %v9426_v45  ;;  %v4399_v46 = vpop.f32.mrb[18].mxu1 }
 0x66f   : > { %4622 = vmatmul.mubr.f32.vlgmr.msra.gmra.mrb[28].mxu0 %v9424_v13  ;;  %v4400_v21 = vpop.f32.mrb[19].mxu1 }
 0x670   : > { %6247 = vmatpush1.bf16.msra.mxu0 %v10084_v52 }
 0x671   : > { %6248 = vmatprep.subr.bf16.mxu0 %v10083_v37 }
 0x674   : > { %6250 = vmatpush1.bf16.msra.mxu0 %v10085_v33  ;;  %v9433_v11 = vpop.f32.mrb[24].mxu0 }
 0x675   : > { %v9435_v23 = vpop.f32.mrb[25].mxu0  ;;  %6251 = vmatprep.subr.bf16.mxu0 %v10083_v37 }
 0x676   : > { %v4440_v47 = vpop.f32.mrb[26].mxu0  ;;  %4691 = vmatprep.mubr.f32.mxu1 %v9435_v23 }
 0x677   : > { %v4441_v24 = vpop.f32.mrb[27].mxu0  ;;  %4692 = vmatmul.mubr.f32.vlgmr.msra.gmra.mrb[14].mxu1 %v9433_v11 }
 0x678   : > { %6253 = vmatpush1.bf16.msra.mxu0 %v10086_v42  ;;  %6290 = vmatpush3.bf16.msra.mxu1 %v7681_v50  ;;  %v10089_v50 = vld [vmem:[#allocation13_spill] sm:$0xff] }
 0x679   : > { %4842 = vmatprep.mubr.f32.mxu1 %v4768_v22  ;;  %6254 = vmatprep.subr.bf16.mxu0 %v10083_v37 }
 0x67a   : > { %6292 = vmatprep.subr.bf16.mxu1 %v7684_v59  ;;  %v10090_v59 = vld [vmem:[#allocation14_spill] sm:$0xff] }
 0x67c   : > { %6256 = vmatpush1.bf16.msra.mxu0 %v10087_v1  ;;  %6294 = vmatpush3.bf16.msra.mxu1 %v7700_v25  ;;  %v10091_v25 = vld [vmem:[#allocation15_spill] sm:$0xff] }
 0x67d   : > { %6257 = vmatprep.subr.bf16.mxu0 %v10083_v37  ;;  %6296 = vmatprep.subr.bf16.mxu1 %v7703_v61  ;;  %v10092_v61 = vld [vmem:[#allocation16_spill] sm:$0xff] }
 0x680   : > { %6259 = vmatpush1.bf16.msra.mxu0 %v10088_v39  ;;  %6298 = vmatpush3.bf16.msra.mxu1 %v7718_v49  ;;  %v10093_v49 = vld [vmem:[#allocation17_spill] sm:$0xff] }
 0x681   : > { %6260 = vmatprep.subr.bf16.mxu0 %v10083_v37  ;;  %6300 = vmatprep.subr.bf16.mxu1 %v7721_v31  ;;  %v4767_v31 = vmul.f32 %v9402_v43, %v9402_v43 }
 0x684   : > { %6262 = vmatpush1.bf16.msra.mxu0 %v10089_v50  ;;  %6302 = vmatpush3.bf16.msra.mxu1 %v7738_v12  ;;  %v4770_v12 = vmul.f32 %v9426_v45, %v9426_v45 }
 0x685   : > { %6263 = vmatprep.subr.bf16.mxu0 %v10083_v37  ;;  %6304 = vmatprep.subr.bf16.mxu1 %v7741_v38  ;;  %v10094_v38 = vld [vmem:[#allocation18_spill] sm:$0xff] }
 0x688   : > { %6265 = vmatpush1.bf16.msra.mxu0 %v10090_v59  ;;  %6306 = vmatpush3.bf16.msra.mxu1 %v7757_v30  ;;  %v10095_v30 = vld [vmem:[#allocation19_spill] sm:$0xff] }
 0x689   : > { %6266 = vmatprep.subr.bf16.mxu0 %v10083_v37  ;;  %6308 = vmatprep.subr.bf16.mxu1 %v7760_v9  ;;  %v10096_v9 = vld [vmem:[#allocation20_spill] sm:$0xff] }
 0x68c   : > { %6268 = vmatpush1.bf16.msra.mxu0 %v10091_v25  ;;  %6310 = vmatpush3.bf16.msra.mxu1 %v7775_v3  ;;  %v10097_v3 = vld [vmem:[#allocation21_spill] sm:$0xff] }
 0x68d   : > { %6269 = vmatprep.subr.bf16.mxu0 %v10083_v37  ;;  %6312 = vmatprep.subr.bf16.mxu1 %v7778_v34  ;;  %v10098_v34 = vmov 0.0  }
 0x690   : > { %6271 = vmatpush1.bf16.msra.mxu0 %v10092_v61  ;;  %6314 = vmatpush3.bf16.msra.mxu1 %v7793_v0  ;;  %v9497_v0 = vld [vmem:[%s9605_s2 + $0x3e0] sm:$0xff] }
 0x691   : > { %6272 = vmatprep.subr.bf16.mxu0 %v10083_v37  ;;  %6316 = vmatprep.subr.bf16.mxu1 %v7796_v26 }
 0x694   : > { %6274 = vmatpush1.bf16.msra.mxu0 %v10093_v49  ;;  %6318 = vmatpush3.bf16.msra.mxu1 %v7811_v40 }
 0x695   : > { %6275 = vmatprep.subr.bf16.mxu0 %v10083_v37  ;;  %6320 = vmatprep.subr.bf16.mxu1 %v10047_v4  ;;  %v4772_v4 = vmul.f32 %v9435_v23, %v9435_v23 }
 0x697   : > { %4843 = vmatmul.mubr.f32.vlgmr.msra.gmra.mrb[24].mxu1 %v4767_v31 }
 0x698   : > { %6277 = vmatpush1.bf16.msra.mxu0 %v10094_v38  ;;  %6322 = vmatpush3.bf16.msra.mxu1 %v10068_v19 }
 0x699   : > { %4912 = vmatprep.mubr.f32.mxu1 %v4770_v12  ;;  %6278 = vmatprep.subr.bf16.mxu0 %v10083_v37 }
 0x69a   : > { %6324 = vmatprep.subr.bf16.mxu1 %v10069_v29  ;;  %v4769_v29 = vmul.f32 %v9424_v13, %v9424_v13 }
 0x69c   : > { %6280 = vmatpush1.bf16.msra.mxu0 %v10095_v30  ;;  %6326 = vmatpush3.bf16.msra.mxu1 %v10070_v56 }
 0x69d   : > { %6281 = vmatprep.subr.bf16.mxu0 %v10083_v37  ;;  %6328 = vmatprep.subr.bf16.mxu1 %v10071_v14 }
 0x6a0   : > { %6283 = vmatpush1.bf16.msra.mxu0 %v10096_v9  ;;  %6330 = vmatpush3.bf16.msra.mxu1 %v10072_v41 }
 0x6a1   : > { %6284 = vmatprep.subr.bf16.mxu0 %v10083_v37  ;;  %6332 = vmatprep.subr.bf16.mxu1 %v10073_v5 }
 0x6a4   : > { %6286 = vmatpush1.bf16.msra.mxu0 %v10097_v3  ;;  %6334 = vmatpush3.bf16.msra.mxu1 %v10074_v15 }
 0x6a5   : > { %4753 = vmatprep.subr.mxu0 %v10098_v34  ;;  %6336 = vmatprep.subr.bf16.mxu1 %v10075_v36 }
 0x6a8   : > { %4754 = vmatpush1.msra.mxu0 %v9497_v0  ;;  %6338 = vmatpush3.bf16.msra.mxu1 %v10076_v51 }
 0x6a9   : > { %6352 = vmatprep.subr.bf16.mxu0 %v10052_v58  ;;  %6340 = vmatprep.subr.bf16.mxu1 %v10077_v62 }
 0x6ac   : > { %v9503_v26 = vpop.f32.mrb[20].mxu1  ;;  %6342 = vmatpush3.bf16.msra.mxu1 %v10078_v48 }
 0x6ad   : > { %v9506_v40 = vpop.f32.mrb[21].mxu1  ;;  %6344 = vmatprep.subr.bf16.mxu1 %v10079_v18 }
 0x6ae   : > { %5444 = vmatprep.mubr.msk.f32.mxu0 %vm10099_vm0, %v9506_v40  ;;  %v4481_v19 = vpop.f32.mrb[22].mxu1  ;;  %v4774_v56 = vmul.f32 %v9506_v40, %v9506_v40 }
 0x6af   : > { %4762 = vmatmul.mubr.f32.vlgmr.msra.gmra.mrb[30].mxu0 %v9503_v26  ;;  %v4482_v58 = vpop.f32.mrb[23].mxu1 }
 0x6b0   : > { %6354 = vmatpush3.bf16.msra.mxu0 %v10053_v57  ;;  %4982 = vmatprep.mubr.f32.mxu0 %v4772_v4  ;;  %v4771_v57 = vmul.f32 %v9433_v11, %v9433_v11 }
 0x6b1   : > { %6356 = vmatprep.subr.bf16.mxu0 %v10054_v54  ;;  %6346 = vmatpush3.bf16.msra.mxu1 %v10080_v60 }
 0x6b2   : > { %6348 = vmatprep.subr.bf16.mxu1 %v10081_v2 }
 0x6b4   : > { %6358 = vmatpush3.bf16.msra.mxu0 %v10055_v55 }
 0x6b5   : > { %6360 = vmatprep.subr.bf16.mxu0 %v10056_v16  ;;  %6350 = vmatpush3.bf16.msra.mxu1 %v10082_v44 }
 0x6b6   : > { %6383 = vmatprep.subr.bf16.mxu1 %v10083_v37 }
 0x6b8   : > { %6362 = vmatpush3.bf16.msra.mxu0 %v10057_v63  ;;  %4913 = vmatmul.mubr.f32.vlgmr.msra.gmra.mrb[26].mxu1 %v4769_v29  ;;  %v4773_v63 = vmul.f32 %v9503_v26, %v9503_v26 }
 0x6b9   : > { %6364 = vmatprep.subr.bf16.mxu0 %v10058_v7  ;;  %6385 = vmatpush1.bf16.msra.mxu1 %v10084_v52 }
 0x6ba   : > { %6386 = vmatprep.subr.bf16.mxu1 %v10083_v37  ;;  %5445 = vmatprep.mubr.msk.f32.mxu1 %vm10100_vm9, %v4774_v56 }
 0x6bc   : > { %6366 = vmatpush3.bf16.msra.mxu0 %v10059_v6 }
 0x6bd   : > { %6368 = vmatprep.subr.bf16.mxu0 %v10060_v32  ;;  %6388 = vmatpush1.bf16.msra.mxu1 %v10085_v33 }
 0x6be   : > { %6389 = vmatprep.subr.bf16.mxu1 %v10083_v37 }
 0x6c0   : > { %6370 = vmatpush3.bf16.msra.mxu0 %v10061_v20 }
 0x6c1   : > { %6372 = vmatprep.subr.bf16.mxu0 %v10062_v17  ;;  %6391 = vmatpush1.bf16.msra.mxu1 %v10086_v42 }
 0x6c2   : > { %6392 = vmatprep.subr.bf16.mxu1 %v10083_v37 }
 0x6c4   : > { %6374 = vmatpush3.bf16.msra.mxu0 %v10063_v27 }
 0x6c5   : > { %6376 = vmatprep.subr.bf16.mxu0 %v10064_v35  ;;  %6394 = vmatpush1.bf16.msra.mxu1 %v10087_v1 }
 0x6c6   : > { %6395 = vmatprep.subr.bf16.mxu1 %v10083_v37 }
 0x6c8   : > { %6378 = vmatpush3.bf16.msra.mxu0 %v10065_v8 }
 0x6c9   : > { %6380 = vmatprep.subr.bf16.mxu0 %v10066_v28  ;;  %6397 = vmatpush1.bf16.msra.mxu1 %v10088_v39 }
 0x6ca   : > { %6398 = vmatprep.subr.bf16.mxu1 %v10083_v37 }
 0x6cc   : > { %6382 = vmatpush3.bf16.msra.mxu0 %v10067_v53 }
 0x6cd   : > { %6400 = vmatpush1.bf16.msra.mxu1 %v10089_v50 }
 0x6ce   : > { %6401 = vmatprep.subr.bf16.mxu1 %v10083_v37 }
 0x6cf   : > { %4983 = vmatmul.mubr.f32.vlgmr.msra.gmra.mrb[32].mxu0 %v4771_v57 }
 0x6d1   : > { %6403 = vmatpush1.bf16.msra.mxu1 %v10090_v59 }
 0x6d2   : > { %6404 = vmatprep.subr.bf16.mxu1 %v10083_v37 }
 0x6d5   : > { %6406 = vmatpush1.bf16.msra.mxu1 %v10091_v25 }
 0x6d6   : > { %6407 = vmatprep.subr.bf16.mxu1 %v10083_v37 }
 0x6d9   : > { %6409 = vmatpush1.bf16.msra.mxu1 %v10092_v61 }
 0x6da   : > { %6410 = vmatprep.subr.bf16.mxu1 %v10083_v37 }
 0x6dd   : > { %6412 = vmatpush1.bf16.msra.mxu1 %v10093_v49 }
 0x6de   : > { %6413 = vmatprep.subr.bf16.mxu1 %v10083_v37 }
 0x6e1   : > { %6415 = vmatpush1.bf16.msra.mxu1 %v10094_v38 }
 0x6e2   : > { %6416 = vmatprep.subr.bf16.mxu1 %v10083_v37 }
 0x6e3   : > { %v5695_v54 = vpop.f32.mrb[18].mxu0 }
 0x6e4   : > { %v5696_v55 = vpop.f32.mrb[19].mxu0 }
 0x6e5   : > { %6418 = vmatpush1.bf16.msra.mxu1 %v10095_v30  ;;  %v5697_v16 = vadd.f32 %v5696_v55, %v5695_v54 }
 0x6e6   : > { %6419 = vmatprep.subr.bf16.mxu1 %v10083_v37 }
 0x6e9   : > { %6421 = vmatpush1.bf16.msra.mxu1 %v10096_v9 }
 0x6ea   : > { %6422 = vmatprep.subr.bf16.mxu1 %v10083_v37 }
 0x6ed   : > { %6424 = vmatpush1.bf16.msra.mxu1 %v10097_v3 }
 0x6ee   : > { %5044 = vmatprep.subr.mxu1 %v10098_v34 }
 0x6f1   : > { %5045 = vmatpush1.msra.mxu1 %v9497_v0 }
 0x6f2   : > { %5053 = vmatmul.mubr.f32.vlgmr.msra.gmra.mrb[28].mxu1 %v4773_v63 }
 0x742   : > { %v5730_v7 = vpop.f32.mrb[28].mxu0 }
 0x743   : > { %v5731_v6 = vpop.f32.mrb[29].mxu0 }
 0x744   : > { %v5732_v32 = vadd.f32 %v5731_v6, %v5730_v7 }
 0x746   : > { %v4624_v20 = vadd.f32 %v5732_v32, %v5697_v16  ;;  %v10101_v32 = vld [vmem:[#allocation22_spill] sm:$0xff] }
 0x74a   : > { %v5765_v17 = vpop.f32.mrb[14].mxu1 }
 0x74b   : > { %v5766_v27 = vpop.f32.mrb[15].mxu1 }
 0x74c   : > { %v5767_v35 = vadd.f32 %v5766_v27, %v5765_v17  ;;  %v10102_v17 = vld [vmem:[#allocation54_spill] sm:$0xff] }
 0x74e   : > { %v4694_v8 = vadd.f32 %v5767_v35, %v4624_v20  ;;  %v10103_v35 = vld [vmem:[#allocation55_spill] sm:$0xff] }
 0x76a   : > { %v5800_v28 = vpop.f32.mrb[24].mxu1 }
 0x76b   : > { %v5801_v53 = vpop.f32.mrb[25].mxu1 }
 0x76c   : > { %v5802_v14 = vadd.f32 %v5801_v53, %v5800_v28  ;;  %v10104_v28 = vld [vmem:[#allocation56_spill] sm:$0xff] }
 0x782   : > { %v4763_v41 = vpop.f32.mrb[30].mxu0 }
 0x783   : > { %v4764_v5 = vadd.f32 %v4763_v41, %v4694_v8  ;;  %v4765_v15 = vpop.f32.mrb[31].mxu0 }
 0x785   : > { %v5058_v36 = vmul.f32 0.001953125, %v4764_v5  ;;  %v10106_v5 = vld [vmem:[#allocation58_spill] sm:$0xff] }
 0x787   : > { %5065 = vperm.xlu1 %6481, %v5058_v36   ;;  %v5060_v33 = vmul.f32 %v5058_v36, %v5058_v36  ;;  %v10107_v36 = vld [vmem:[#allocation59_spill] sm:$0xff] }
 0x78b   : > { %v5835_v51 = vpop.f32.mrb[26].mxu1 }
 0x78c   : > { %v5836_v62 = vpop.f32.mrb[27].mxu1 }
 0x78d   : > { %v5837_v48 = vadd.f32 %v5836_v62, %v5835_v51  ;;  %v10108_v62 = vld [vmem:[#allocation60_spill] sm:$0xff] }
 0x78f   : > { %v4915_v18 = vadd.f32 %v5837_v48, %v5802_v14  ;;  %v10105_v14 = vld [vmem:[#allocation57_spill] sm:$0xff] }
 0x7a2   : > { %v5870_v60 = vpop.f32.mrb[32].mxu0 }
 0x7a3   : > { %v5871_v2 = vpop.f32.mrb[33].mxu0 }
 0x7a4   : > { %v5872_v44 = vadd.f32 %v5871_v2, %v5870_v60 }
 0x7a6   : > { %v4985_v37 = vadd.f32 %v5872_v44, %v4915_v18 }
 0x7c5   : > { %v5054_v46 = vpop.f32.mrb[28].mxu1 }
 0x7c6   : > { %v5055_v21 = vadd.f32 %v5054_v46, %v4985_v37  ;;  %v5056_v52 = vpop.f32.mrb[29].mxu1 }
 0x7c8   : > { %v5059_v47 = vmul.f32 0.001953125, %v5055_v21 }
 0x7ca   : > { %v5061_v22 = vsub.f32 %v5059_v47, %v5060_v33 }
 0x7cc   : > { %v5062_v24 = vmax.f32 %v5061_v22, 0.0 }
 0x7ce   : > { %v5076_v42 = vadd.f32 1e-05, %v5062_v24 }
 0x7d0   : > { %6493 = vrsqrt.f32 %v5076_v42 }
 0x7da   : > { %v6494_v1 = vpop.eup %6493 }
 0x7db   : > { %5080 = vperm.xlu0 %6482, %v6494_v1  }
 0x806   : > { %v5066_v39 = vpop.permute.xlu1 %5065 }
 0x807   : > { %v5068_v50 = vsub.f32 %v9402_v43, %v5066_v39  ;;  %v5069_v59 = vsub.f32 %v9404_v10, %v5066_v39  ;;  %v5070_v25 = vsub.f32 %v9424_v13, %v5066_v39  ;;  %v5071_v61 = vsub.f32 %v9426_v45, %v5066_v39 }
 0x808   : > { %v5072_v49 = vsub.f32 %v9433_v11, %v5066_v39  ;;  %v5073_v31 = vsub.f32 %v9435_v23, %v5066_v39  ;;  %v5074_v12 = vsub.f32 %v9503_v26, %v5066_v39  ;;  %v5075_v38 = vsub.f32 %v9506_v40, %v5066_v39 }
 0x85a   : > { %v5081_v30 = vpop.permute.xlu0 %5080 }
 0x85b   : > { %v5083_v9 = vmul.f32 %v5081_v30, %v5068_v50  ;;  %v5084_v3 = vmul.f32 %v5081_v30, %v5069_v59  ;;  %v5085_v34 = vmul.f32 %v5081_v30, %v5070_v25  ;;  %v5086_v43 = vmul.f32 %v5081_v30, %v5071_v61 }
 0x85c   : > { %v5087_v0 = vmul.f32 %v5081_v30, %v5072_v49  ;;  %v5088_v10 = vmul.f32 %v5081_v30, %v5073_v31  ;;  %v5089_v4 = vmul.f32 %v5081_v30, %v5074_v12  ;;  %v5090_v13 = vmul.f32 %v5081_v30, %v5075_v38 }
 0x85d   : > { %vm5091_vm14 = vcmp.ge.f32.partialorder %v5083_v9, 0.0  ;;  %vm5092_vm15 = vcmp.ge.f32.partialorder %v5084_v3, 0.0  ;;  %vm5093_vm5 = vcmp.ge.f32.partialorder %v5085_v34, 0.0  ;;  %vm5094_vm4 = vcmp.ge.f32.partialorder %v5086_v43, 0.0 }
 0x85e   : > { %vm5095_vm3 = vcmp.ge.f32.partialorder %v5087_v0, 0.0  ;;  %vm5096_vm6 = vcmp.ge.f32.partialorder %v5088_v10, 0.0  ;;  %vm5097_vm2 = vcmp.ge.f32.partialorder %v5089_v4, 0.0  ;;  %vm5098_vm7 = vcmp.ge.f32.partialorder %v5090_v13, 0.0 }
 0x85f   : > { %v5099_v45 = vmul.f32 0.2, %v5083_v9  ;;  %v5100_v11 = vmul.f32 0.2, %v5084_v3  ;;  %v5101_v23 = vmul.f32 0.2, %v5085_v34 }
 0x860   : > { %v5102_v26 = vmul.f32 0.2, %v5086_v43  ;;  %v5103_v40 = vmul.f32 0.2, %v5087_v0  ;;  %v5104_v19 = vmul.f32 0.2, %v5088_v10 }
 0x861   : > { %v5105_v58 = vmul.f32 0.2, %v5089_v4  ;;  %v5106_v29 = vmul.f32 0.2, %v5090_v13  ;;  %v5107_v56 = vsel %vm5091_vm14, %v5083_v9, %v5099_v45  ;;  %v5108_v57 = vsel %vm5092_vm15, %v5084_v3, %v5100_v11 }
 0x862   : > { %v5109_v54 = vsel %vm5093_vm5, %v5085_v34, %v5101_v23  ;;  %v5110_v55 = vsel %vm5094_vm4, %v5086_v43, %v5102_v26  ;;  %v5111_v16 = vsel %vm5095_vm3, %v5087_v0, %v5103_v40  ;;  %v5112_v63 = vsel %vm5096_vm6, %v5088_v10, %v5104_v19 }
 0x863   : > { %v5113_v7 = vsel %vm5097_vm2, %v5089_v4, %v5105_v58  ;;  %v5114_v6 = vsel %vm5098_vm7, %v5090_v13, %v5106_v29  ;;  %v5115_v20 = vadd.f32 %v5107_v56, %v10101_v32  ;;  %v5116_v27 = vadd.f32 %v5108_v57, %v10102_v17 }
 0x864   : > { %v5117_v8 = vadd.f32 %v5109_v54, %v10103_v35  ;;  %v5118_v53 = vadd.f32 %v5110_v55, %v10104_v28  ;;  %v5119_v41 = vadd.f32 %v5111_v16, %v10105_v14  ;;  %v5120_v15 = vadd.f32 %v5112_v63, %v10106_v5 }
 0x865   : > { %v5121_v51 = vadd.f32 %v5113_v7, %v10107_v36  ;;  %v5122_v48 = vadd.f32 %v5114_v6, %v10108_v62  ;;  %5123 = vst [vmem:[%s224_s19] sm:$0xff] %v5115_v20  ;;  %5124 = vst [vmem:[%s224_s19 + $0x8] sm:$0xff] %v5116_v27 }
 0x866   : > { %5125 = vst [vmem:[%s224_s19 + $0x10] sm:$0xff] %v5117_v8  ;;  %5126 = vst [vmem:[%s224_s19 + $0x18] sm:$0xff] %v5118_v53 }
 0x867   : > { %5127 = vst [vmem:[%s224_s19 + $0x20] sm:$0xff] %v5119_v41  ;;  %5128 = vst [vmem:[%s224_s19 + $0x28] sm:$0xff] %v5120_v15 }
 0x868   : > { %5129 = vst [vmem:[%s224_s19 + $0x30] sm:$0xff] %v5121_v51  ;;  %5130 = vst.msk [vmem:[%s224_s19 + $0x38] sm:$0xff] %vm10109_vm8, %v5122_v48 }
 0x869 PF: > { %s15_s18 = sadd.s32 1, %s6505_s18  }
 0x86a   : > { %p12_p4 = scmp.ge.s32.totalorder %s15_s18, 4  }
 0x86c   :  { %14 = sbr.rel (!%p12_p4) target bundleno = 1 (0x1), region = 70 }

</bundles_post_ra>
